<compile_context>
chip_gen: v5e
topology: v5e:2x2
jax: 0.10.0
libtpu: 0.0.40
codegen_flags: <defaults>
</compile_context>

<pallas_src>
import jax
import jax.numpy as jnp
from jax import lax
from jax.experimental import pallas as pl
from jax.experimental.pallas import tpu as pltpu

CHANNELS = 8
GROWTH = 8          # residual add `out * s + x` requires growth == channels
RES_SCALE = 0.2
NEG_SLOPE = 0.2
NUM_LAYERS = 5


def _vmem_limit_bytes(default=32 * 1024 * 1024):
    """Per-generation scoped-VMEM limit (v5e default is only 16 MiB)."""
    try:
        cap = getattr(pltpu.get_tpu_info(), "vmem_capacity_bytes", None)
        if cap:
            return min(int(cap) * 3 // 4, 96 * 1024 * 1024)
    except Exception:
        pass
    return default


# ----------------------------- fused Pallas kernel -------------------------- #

def _make_rdb_kernel(H, W, C, G):
    WP = W + 2                     # padded row width
    PP = (H + 2) * WP              # padded flat spatial size (slab columns in use)
    PW = H * WP                    # "wide" output length: W valid + 2 junk cols/row
    CTOT = C + (NUM_LAYERS - 1) * G
    SLAB_W = PP + 2                # taps (dy=2, dx>=1) read 2 past PP (junk cols only)

    def kernel(xp_ref, w0, w1, w2, w3, w4, b_ref, colid_ref, o_ref, slab):
        # slab: VMEM (CTOT, SLAB_W) f32, channel-major replication-padded features.
        # Invariant: every grid step rewrites slab rows [0, CTOT), cols [0, SLAB_W)
        # before any layer reads them -- nothing is carried across grid steps.
        w_refs = (w0, w1, w2, w3, w4)

        slab[0:CTOT, PP:SLAB_W] = jnp.zeros((CTOT, 2), jnp.float32)

        xp = xp_ref[0]                                  # (C, PP) f32, pre-padded input
        slab[0:C, 0:PP] = xp
        x_res = xp[:, W + 3:W + 3 + PW]                 # original pixels, wide layout

        cid = colid_ref[...]                            # (G, PW) int32, p % WP
        is_left = cid == 0
        is_right = cid == WP - 1

        out = None
        for i in range(NUM_LAYERS):
            cin = C + i * G
            # Fused im2col: 9 shifted lane-slices stacked on the sublane axis
            # (cin is a multiple of 8 -> tile-aligned concat), one MXU dot/layer.
            taps = [slab[0:cin, dy * WP + dx: dy * WP + dx + PW]
                    for dy in range(3) for dx in range(3)]
            patch = jnp.concatenate(taps, axis=0).astype(jnp.bfloat16)   # (9*cin, PW)
            acc = jnp.dot(w_refs[i][...], patch,
                          preferred_element_type=jnp.float32)            # (G, PW) f32
            y = acc + b_ref[:, i:i + 1]
            y = jnp.where(y > 0, y, NEG_SLOPE * y)                       # LeakyReLU(0.2)

            if i < NUM_LAYERS - 1:
                c0 = C + i * G
                # Dense concat: write this layer's activation into its slab row
                # range, replication-padded, using lane-dense full-row stores.
                # Stage y at the interior offset, read 1-/2-shifted copies back,
                # select the left/right pad columns, then 3 row-range stores.
                slab[c0:c0 + G, W + 3:W + 3 + PW] = y
                s1 = slab[c0:c0 + G, W + 2:W + 2 + PW]       # y shifted right by 1
                s2 = slab[c0:c0 + G, W + 1:W + 1 + PW]       # y shifted right by 2
                hp = jnp.where(is_left, y, jnp.where(is_right, s2, s1))
                slab[c0:c0 + G, 0:WP] = hp[:, 0:WP]                 # top pad row
                slab[c0:c0 + G, WP:WP + PW] = hp                    # rows 1..H incl. pads
                slab[c0:c0 + G, WP + PW:PP] = hp[:, PW - WP:PW]     # bottom pad row
            else:
                out = y * RES_SCALE + x_res                         # fused residual add

        o_ref[...] = out.reshape(1, G, PW)

    return kernel, CTOT, PP, PW, SLAB_W


def residual_dense_block(x, weights, biases):
    """x: (N, C, H, W) f32; weights[i]: (3, 3, C+i*G, G) HWIO; biases[i]: (1, G)."""
    N, C, H, W = x.shape
    G = weights[0].shape[-1]
    assert G == C, "ResidualDenseBlock residual add requires growth == channels"
    assert C % 8 == 0 and G % 8 == 0, "sublane-aligned slab rows require C, G % 8 == 0"
    for i in range(NUM_LAYERS):
        assert weights[i].shape == (3, 3, C + i * G, G), weights[i].shape

    kernel, ctot, PP, PW, slab_w = _make_rdb_kernel(H, W, C, G)
    WP = W + 2

    # Host-side layout prep (pure XLA): replication-pad + flatten to channel-major
    # rows so the kernel's spatial axis is the lane axis (lane-dense DMA / compute).
    xp = jnp.pad(x, ((0, 0), (0, 0), (1, 1), (1, 1)), mode="edge")
    xp = xp.reshape(N, C, PP).astype(jnp.float32)

    # Weights -> lane-dense (G, 9*cin) bf16, K ordered (dy, dx, cin) to match the
    # in-kernel im2col stacking; biases stacked to (G, NUM_LAYERS) f32.
    w_k = [jnp.transpose(w, (3, 0, 1, 2)).reshape(G, -1).astype(jnp.bfloat16)
           for w in weights]
    b_k = jnp.concatenate([jnp.reshape(b, (G, 1)) for b in biases],
                          axis=1).astype(jnp.float32)
    colid = jnp.broadcast_to(
        (jnp.arange(PW, dtype=jnp.int32) % WP)[None, :], (G, PW))

    img_in_spec = pl.BlockSpec((1, C, PP), lambda n: (n, 0, 0))
    img_out_spec = pl.BlockSpec((1, C, PW), lambda n: (n, 0, 0))
    w_specs = [pl.BlockSpec(w.shape, lambda n: (0, 0)) for w in w_k]
    b_spec = pl.BlockSpec(b_k.shape, lambda n: (0, 0))
    colid_spec = pl.BlockSpec(colid.shape, lambda n: (0, 0))

    out_wide = pl.pallas_call(
        kernel,
        out_shape=jax.ShapeDtypeStruct((N, C, PW), jnp.float32),
        grid_spec=pltpu.PrefetchScalarGridSpec(
            num_scalar_prefetch=0,
            grid=(N,),                                   # one image per grid step
            in_specs=[img_in_spec] + w_specs + [b_spec, colid_spec],
            out_specs=img_out_spec,
            scratch_shapes=[pltpu.VMEM((ctot, slab_w), jnp.float32)]),
        compiler_params=pltpu.CompilerParams(
            dimension_semantics=("parallel",),           # shard images over TCs (v7x)
            vmem_limit_bytes=_vmem_limit_bytes()),
    )(xp, *w_k, b_k, colid)

    # Strip the 2 junk columns per row carried by the wide (W+2-stride) layout.
    return out_wide.reshape(N, C, H, WP)[:, :, :, :W]


# ------------------------------ pure-JAX reference -------------------------- #

def reference(x, weights, biases):
    # Matches the PyTorch forward (NCHW layout).
    feats = x
    out = None
    for i in range(NUM_LAYERS):
        p = jnp.pad(feats, ((0, 0), (0, 0), (1, 1), (1, 1)), mode="edge")
        y = lax.conv_general_dilated(
            p, weights[i], window_strides=(1, 1), padding="VALID",
            dimension_numbers=("NCHW", "HWIO", "NCHW"))
        y = y + jnp.reshape(biases[i], (1, -1, 1, 1))
        y = jnp.where(y > 0, y, NEG_SLOPE * y)
        out = y
        if i < NUM_LAYERS - 1:
            feats = jnp.concatenate([feats, y], axis=1)
    return out * RES_SCALE + x


# ----------------------------------- main ----------------------------------- #

if __name__ == "__main__":
    key = jax.random.PRNGKey(0)
    N, H, W = 2, 16, 16
    C, G = CHANNELS, GROWTH

    key, xk = jax.random.split(key)
    x = jax.random.normal(xk, (N, C, H, W), jnp.float32)

    weights, biases = [], []
    for i in range(NUM_LAYERS):
        cin = C + i * G
        key, wk, bk = jax.random.split(key, 3)
        weights.append(
            jax.random.normal(wk, (3, 3, cin, G), jnp.float32) / jnp.sqrt(float(cin * 9)))
        biases.append(0.05 * jax.random.normal(bk, (1, G), jnp.float32))

    out = jax.block_until_ready(residual_dense_block(x, weights, biases))
    ref = reference(x, weights, biases)

    assert out.shape == (N, C, H, W), out.shape
    max_err = float(jnp.max(jnp.abs(out - ref)))
    # bf16 matmul operands (f32 accumulation) -> looser tolerance than pure f32.
    assert max_err < 4e-2, f"max abs err {max_err}"
    print("KERNEL_OK")
</pallas_src>

<mosaic_0001>
module attributes {stable_mosaic.version = 11 : i64} {
  func.func @kernel(%arg0: i32, %arg1: memref<1x8x324xf32, #tpu.memory_space<vmem>>, %arg2: memref<8x72xbf16, #tpu.memory_space<vmem>>, %arg3: memref<8x144xbf16, #tpu.memory_space<vmem>>, %arg4: memref<8x216xbf16, #tpu.memory_space<vmem>>, %arg5: memref<8x288xbf16, #tpu.memory_space<vmem>>, %arg6: memref<8x360xbf16, #tpu.memory_space<vmem>>, %arg7: memref<8x5xf32, #tpu.memory_space<vmem>>, %arg8: memref<8x288xi32, #tpu.memory_space<vmem>>, %arg9: memref<1x8x288xf32, #tpu.memory_space<vmem>>, %arg10: memref<40x326xf32, #tpu.memory_space<vmem>>) attributes {dimension_semantics = [#tpu.dimension_semantics<parallel>], iteration_bounds = array<i64: 2>, scalar_prefetch = 0 : i64, scratch_operands = 1 : i64, tpu.core_type = #tpu.core_type<tc>, window_params = [{transform_indices = @transform_0, window_bounds = array<i64: 1, 8, 324>}, {pipeline_mode = #tpu.pipeline_mode<synchronous>, transform_indices = @transform_1, window_bounds = array<i64: 8, 72>}, {pipeline_mode = #tpu.pipeline_mode<synchronous>, transform_indices = @transform_2, window_bounds = array<i64: 8, 144>}, {pipeline_mode = #tpu.pipeline_mode<synchronous>, transform_indices = @transform_3, window_bounds = array<i64: 8, 216>}, {pipeline_mode = #tpu.pipeline_mode<synchronous>, transform_indices = @transform_4, window_bounds = array<i64: 8, 288>}, {pipeline_mode = #tpu.pipeline_mode<synchronous>, transform_indices = @transform_5, window_bounds = array<i64: 8, 360>}, {pipeline_mode = #tpu.pipeline_mode<synchronous>, transform_indices = @transform_6, window_bounds = array<i64: 8, 5>}, {pipeline_mode = #tpu.pipeline_mode<synchronous>, transform_indices = @transform_7, window_bounds = array<i64: 8, 288>}, {transform_indices = @transform_8, window_bounds = array<i64: 1, 8, 288>}]} {
    %cst = arith.constant 0.000000e+00 : f32
    %0 = vector.broadcast %cst : f32 to vector<40x2xf32>
    %c0 = arith.constant 0 : index
    %c324 = arith.constant 324 : index
    %1 = vector.load %arg10[%c0, %c324] : memref<40x326xf32, #tpu.memory_space<vmem>>, vector<40x2xf32>
    tpu.vector_store %arg10[%c0, %c324], %0 {strides = array<i32>} : memref<40x326xf32, #tpu.memory_space<vmem>>, vector<40x2xf32>,
    %c0_0 = arith.constant 0 : index
    %c0_1 = arith.constant 0 : index
    %c0_2 = arith.constant 0 : index
    %2 = vector.load %arg1[%c0_0, %c0_1, %c0_2] : memref<1x8x324xf32, #tpu.memory_space<vmem>>, vector<1x8x324xf32>
    %3 = vector.shape_cast %2 : vector<1x8x324xf32> to vector<8x324xf32>
    %c0_3 = arith.constant 0 : index
    %c0_4 = arith.constant 0 : index
    %4 = vector.load %arg10[%c0_3, %c0_4] : memref<40x326xf32, #tpu.memory_space<vmem>>, vector<8x324xf32>
    tpu.vector_store %arg10[%c0_3, %c0_4], %3 {strides = array<i32>} : memref<40x326xf32, #tpu.memory_space<vmem>>, vector<8x324xf32>,
    %5 = vector.extract_strided_slice %3 {offsets = [0, 19], sizes = [8, 288], strides = [1, 1]} : vector<8x324xf32> to vector<8x288xf32>
    %c0_5 = arith.constant 0 : index
    %c0_6 = arith.constant 0 : index
    %6 = vector.load %arg8[%c0_5, %c0_6] : memref<8x288xi32, #tpu.memory_space<vmem>>, vector<8x288xi32>
    %c0_i32 = arith.constant 0 : i32
    %7 = vector.broadcast %c0_i32 : i32 to vector<8x288xi32>
    %8 = arith.cmpi eq, %6, %7 : vector<8x288xi32>
    %c17_i32 = arith.constant 17 : i32
    %9 = vector.broadcast %c17_i32 : i32 to vector<8x288xi32>
    %10 = arith.cmpi eq, %6, %9 : vector<8x288xi32>
    %c0_7 = arith.constant 0 : index
    %c0_8 = arith.constant 0 : index
    %11 = vector.load %arg10[%c0_7, %c0_8] : memref<40x326xf32, #tpu.memory_space<vmem>>, vector<8x288xf32>
    %c0_9 = arith.constant 0 : index
    %c1 = arith.constant 1 : index
    %12 = vector.load %arg10[%c0_9, %c1] : memref<40x326xf32, #tpu.memory_space<vmem>>, vector<8x288xf32>
    %c0_10 = arith.constant 0 : index
    %c2 = arith.constant 2 : index
    %13 = vector.load %arg10[%c0_10, %c2] : memref<40x326xf32, #tpu.memory_space<vmem>>, vector<8x288xf32>
    %c0_11 = arith.constant 0 : index
    %c18 = arith.constant 18 : index
    %14 = vector.load %arg10[%c0_11, %c18] : memref<40x326xf32, #tpu.memory_space<vmem>>, vector<8x288xf32>
    %c0_12 = arith.constant 0 : index
    %c19 = arith.constant 19 : index
    %15 = vector.load %arg10[%c0_12, %c19] : memref<40x326xf32, #tpu.memory_space<vmem>>, vector<8x288xf32>
    %c0_13 = arith.constant 0 : index
    %c20 = arith.constant 20 : index
    %16 = vector.load %arg10[%c0_13, %c20] : memref<40x326xf32, #tpu.memory_space<vmem>>, vector<8x288xf32>
    %c0_14 = arith.constant 0 : index
    %c36 = arith.constant 36 : index
    %17 = vector.load %arg10[%c0_14, %c36] : memref<40x326xf32, #tpu.memory_space<vmem>>, vector<8x288xf32>
    %c0_15 = arith.constant 0 : index
    %c37 = arith.constant 37 : index
    %18 = vector.load %arg10[%c0_15, %c37] : memref<40x326xf32, #tpu.memory_space<vmem>>, vector<8x288xf32>
    %c0_16 = arith.constant 0 : index
    %c38 = arith.constant 38 : index
    %19 = vector.load %arg10[%c0_16, %c38] : memref<40x326xf32, #tpu.memory_space<vmem>>, vector<8x288xf32>
    %20 = tpu.concatenate %11, %12, %13, %14, %15, %16, %17, %18, %19 in 0 : vector<8x288xf32>, vector<8x288xf32>, vector<8x288xf32>, vector<8x288xf32>, vector<8x288xf32>, vector<8x288xf32>, vector<8x288xf32>, vector<8x288xf32>, vector<8x288xf32> -> vector<72x288xf32>
    %21 = arith.truncf %20 : vector<72x288xf32> to vector<72x288xbf16>
    %c0_17 = arith.constant 0 : index
    %c0_18 = arith.constant 0 : index
    %22 = vector.load %arg2[%c0_17, %c0_18] : memref<8x72xbf16, #tpu.memory_space<vmem>>, vector<8x72xbf16>
    %cst_19 = arith.constant dense<0.000000e+00> : vector<8x288xf32>
    %23 = tpu.matmul %22, %21, %cst_19 {dimension_numbers = #tpu.dot_dimension_numbers<[1], [0], [0], [1], [0, 0, 1, 1], [], []>} : vector<8x72xbf16>, vector<72x288xbf16>, vector<8x288xf32> -> vector<8x288xf32>
    %c0_20 = arith.constant 0 : index
    %c0_21 = arith.constant 0 : index
    %24 = vector.load %arg7[%c0_20, %c0_21] : memref<8x5xf32, #tpu.memory_space<vmem>>, vector<8x1xf32>
    %25 = vector.broadcast %24 : vector<8x1xf32> to vector<8x288xf32>
    %26 = arith.addf %23, %25 : vector<8x288xf32>
    %cst_22 = arith.constant 0.000000e+00 : f32
    %27 = vector.broadcast %cst_22 : f32 to vector<8x288xf32>
    %28 = arith.cmpf ogt, %26, %27 : vector<8x288xf32>
    %cst_23 = arith.constant 2.000000e-01 : f32
    %29 = vector.broadcast %cst_23 : f32 to vector<8x288xf32>
    %30 = arith.mulf %29, %26 : vector<8x288xf32>
    %31 = arith.select %28, %26, %30 : vector<8x288xi1>, vector<8x288xf32>
    %c8 = arith.constant 8 : index
    %c19_24 = arith.constant 19 : index
    %32 = vector.load %arg10[%c8, %c19_24] : memref<40x326xf32, #tpu.memory_space<vmem>>, vector<8x288xf32>
    tpu.vector_store %arg10[%c8, %c19_24], %31 {strides = array<i32>} : memref<40x326xf32, #tpu.memory_space<vmem>>, vector<8x288xf32>,
    %c8_25 = arith.constant 8 : index
    %c18_26 = arith.constant 18 : index
    %33 = vector.load %arg10[%c8_25, %c18_26] : memref<40x326xf32, #tpu.memory_space<vmem>>, vector<8x288xf32>
    %c8_27 = arith.constant 8 : index
    %c17 = arith.constant 17 : index
    %34 = vector.load %arg10[%c8_27, %c17] : memref<40x326xf32, #tpu.memory_space<vmem>>, vector<8x288xf32>
    %35 = arith.select %10, %34, %33 : vector<8x288xi1>, vector<8x288xf32>
    %36 = arith.select %8, %31, %35 : vector<8x288xi1>, vector<8x288xf32>
    %37 = vector.extract_strided_slice %36 {offsets = [0, 0], sizes = [8, 18], strides = [1, 1]} : vector<8x288xf32> to vector<8x18xf32>
    %c8_28 = arith.constant 8 : index
    %c0_29 = arith.constant 0 : index
    %38 = vector.load %arg10[%c8_28, %c0_29] : memref<40x326xf32, #tpu.memory_space<vmem>>, vector<8x18xf32>
    tpu.vector_store %arg10[%c8_28, %c0_29], %37 {strides = array<i32>} : memref<40x326xf32, #tpu.memory_space<vmem>>, vector<8x18xf32>,
    %c8_30 = arith.constant 8 : index
    %c18_31 = arith.constant 18 : index
    %39 = vector.load %arg10[%c8_30, %c18_31] : memref<40x326xf32, #tpu.memory_space<vmem>>, vector<8x288xf32>
    tpu.vector_store %arg10[%c8_30, %c18_31], %36 {strides = array<i32>} : memref<40x326xf32, #tpu.memory_space<vmem>>, vector<8x288xf32>,
    %40 = vector.extract_strided_slice %36 {offsets = [0, 270], sizes = [8, 18], strides = [1, 1]} : vector<8x288xf32> to vector<8x18xf32>
    %c8_32 = arith.constant 8 : index
    %c306 = arith.constant 306 : index
    %41 = vector.load %arg10[%c8_32, %c306] : memref<40x326xf32, #tpu.memory_space<vmem>>, vector<8x18xf32>
    tpu.vector_store %arg10[%c8_32, %c306], %40 {strides = array<i32>} : memref<40x326xf32, #tpu.memory_space<vmem>>, vector<8x18xf32>,
    %c0_33 = arith.constant 0 : index
    %c0_34 = arith.constant 0 : index
    %42 = vector.load %arg10[%c0_33, %c0_34] : memref<40x326xf32, #tpu.memory_space<vmem>>, vector<16x288xf32>
    %c0_35 = arith.constant 0 : index
    %c1_36 = arith.constant 1 : index
    %43 = vector.load %arg10[%c0_35, %c1_36] : memref<40x326xf32, #tpu.memory_space<vmem>>, vector<16x288xf32>
    %c0_37 = arith.constant 0 : index
    %c2_38 = arith.constant 2 : index
    %44 = vector.load %arg10[%c0_37, %c2_38] : memref<40x326xf32, #tpu.memory_space<vmem>>, vector<16x288xf32>
    %c0_39 = arith.constant 0 : index
    %c18_40 = arith.constant 18 : index
    %45 = vector.load %arg10[%c0_39, %c18_40] : memref<40x326xf32, #tpu.memory_space<vmem>>, vector<16x288xf32>
    %c0_41 = arith.constant 0 : index
    %c19_42 = arith.constant 19 : index
    %46 = vector.load %arg10[%c0_41, %c19_42] : memref<40x326xf32, #tpu.memory_space<vmem>>, vector<16x288xf32>
    %c0_43 = arith.constant 0 : index
    %c20_44 = arith.constant 20 : index
    %47 = vector.load %arg10[%c0_43, %c20_44] : memref<40x326xf32, #tpu.memory_space<vmem>>, vector<16x288xf32>
    %c0_45 = arith.constant 0 : index
    %c36_46 = arith.constant 36 : index
    %48 = vector.load %arg10[%c0_45, %c36_46] : memref<40x326xf32, #tpu.memory_space<vmem>>, vector<16x288xf32>
    %c0_47 = arith.constant 0 : index
    %c37_48 = arith.constant 37 : index
    %49 = vector.load %arg10[%c0_47, %c37_48] : memref<40x326xf32, #tpu.memory_space<vmem>>, vector<16x288xf32>
    %c0_49 = arith.constant 0 : index
    %c38_50 = arith.constant 38 : index
    %50 = vector.load %arg10[%c0_49, %c38_50] : memref<40x326xf32, #tpu.memory_space<vmem>>, vector<16x288xf32>
    %51 = tpu.concatenate %42, %43, %44, %45, %46, %47, %48, %49, %50 in 0 : vector<16x288xf32>, vector<16x288xf32>, vector<16x288xf32>, vector<16x288xf32>, vector<16x288xf32>, vector<16x288xf32>, vector<16x288xf32>, vector<16x288xf32>, vector<16x288xf32> -> vector<144x288xf32>
    %52 = arith.truncf %51 : vector<144x288xf32> to vector<144x288xbf16>
    %c0_51 = arith.constant 0 : index
    %c0_52 = arith.constant 0 : index
    %53 = vector.load %arg3[%c0_51, %c0_52] : memref<8x144xbf16, #tpu.memory_space<vmem>>, vector<8x144xbf16>
    %cst_53 = arith.constant dense<0.000000e+00> : vector<8x288xf32>
    %54 = tpu.matmul %53, %52, %cst_53 {dimension_numbers = #tpu.dot_dimension_numbers<[1], [0], [0], [1], [0, 0, 1, 1], [], []>} : vector<8x144xbf16>, vector<144x288xbf16>, vector<8x288xf32> -> vector<8x288xf32>
    %c0_54 = arith.constant 0 : index
    %c1_55 = arith.constant 1 : index
    %55 = vector.load %arg7[%c0_54, %c1_55] : memref<8x5xf32, #tpu.memory_space<vmem>>, vector<8x1xf32>
    %56 = vector.broadcast %55 : vector<8x1xf32> to vector<8x288xf32>
    %57 = arith.addf %54, %56 : vector<8x288xf32>
    %cst_56 = arith.constant 0.000000e+00 : f32
    %58 = vector.broadcast %cst_56 : f32 to vector<8x288xf32>
    %59 = arith.cmpf ogt, %57, %58 : vector<8x288xf32>
    %cst_57 = arith.constant 2.000000e-01 : f32
    %60 = vector.broadcast %cst_57 : f32 to vector<8x288xf32>
    %61 = arith.mulf %60, %57 : vector<8x288xf32>
    %62 = arith.select %59, %57, %61 : vector<8x288xi1>, vector<8x288xf32>
    %c16 = arith.constant 16 : index
    %c19_58 = arith.constant 19 : index
    %63 = vector.load %arg10[%c16, %c19_58] : memref<40x326xf32, #tpu.memory_space<vmem>>, vector<8x288xf32>
    tpu.vector_store %arg10[%c16, %c19_58], %62 {strides = array<i32>} : memref<40x326xf32, #tpu.memory_space<vmem>>, vector<8x288xf32>,
    %c16_59 = arith.constant 16 : index
    %c18_60 = arith.constant 18 : index
    %64 = vector.load %arg10[%c16_59, %c18_60] : memref<40x326xf32, #tpu.memory_space<vmem>>, vector<8x288xf32>
    %c16_61 = arith.constant 16 : index
    %c17_62 = arith.constant 17 : index
    %65 = vector.load %arg10[%c16_61, %c17_62] : memref<40x326xf32, #tpu.memory_space<vmem>>, vector<8x288xf32>
    %66 = arith.select %10, %65, %64 : vector<8x288xi1>, vector<8x288xf32>
    %67 = arith.select %8, %62, %66 : vector<8x288xi1>, vector<8x288xf32>
    %68 = vector.extract_strided_slice %67 {offsets = [0, 0], sizes = [8, 18], strides = [1, 1]} : vector<8x288xf32> to vector<8x18xf32>
    %c16_63 = arith.constant 16 : index
    %c0_64 = arith.constant 0 : index
    %69 = vector.load %arg10[%c16_63, %c0_64] : memref<40x326xf32, #tpu.memory_space<vmem>>, vector<8x18xf32>
    tpu.vector_store %arg10[%c16_63, %c0_64], %68 {strides = array<i32>} : memref<40x326xf32, #tpu.memory_space<vmem>>, vector<8x18xf32>,
    %c16_65 = arith.constant 16 : index
    %c18_66 = arith.constant 18 : index
    %70 = vector.load %arg10[%c16_65, %c18_66] : memref<40x326xf32, #tpu.memory_space<vmem>>, vector<8x288xf32>
    tpu.vector_store %arg10[%c16_65, %c18_66], %67 {strides = array<i32>} : memref<40x326xf32, #tpu.memory_space<vmem>>, vector<8x288xf32>,
    %71 = vector.extract_strided_slice %67 {offsets = [0, 270], sizes = [8, 18], strides = [1, 1]} : vector<8x288xf32> to vector<8x18xf32>
    %c16_67 = arith.constant 16 : index
    %c306_68 = arith.constant 306 : index
    %72 = vector.load %arg10[%c16_67, %c306_68] : memref<40x326xf32, #tpu.memory_space<vmem>>, vector<8x18xf32>
    tpu.vector_store %arg10[%c16_67, %c306_68], %71 {strides = array<i32>} : memref<40x326xf32, #tpu.memory_space<vmem>>, vector<8x18xf32>,
    %c0_69 = arith.constant 0 : index
    %c0_70 = arith.constant 0 : index
    %73 = vector.load %arg10[%c0_69, %c0_70] : memref<40x326xf32, #tpu.memory_space<vmem>>, vector<24x288xf32>
    %c0_71 = arith.constant 0 : index
    %c1_72 = arith.constant 1 : index
    %74 = vector.load %arg10[%c0_71, %c1_72] : memref<40x326xf32, #tpu.memory_space<vmem>>, vector<24x288xf32>
    %c0_73 = arith.constant 0 : index
    %c2_74 = arith.constant 2 : index
    %75 = vector.load %arg10[%c0_73, %c2_74] : memref<40x326xf32, #tpu.memory_space<vmem>>, vector<24x288xf32>
    %c0_75 = arith.constant 0 : index
    %c18_76 = arith.constant 18 : index
    %76 = vector.load %arg10[%c0_75, %c18_76] : memref<40x326xf32, #tpu.memory_space<vmem>>, vector<24x288xf32>
    %c0_77 = arith.constant 0 : index
    %c19_78 = arith.constant 19 : index
    %77 = vector.load %arg10[%c0_77, %c19_78] : memref<40x326xf32, #tpu.memory_space<vmem>>, vector<24x288xf32>
    %c0_79 = arith.constant 0 : index
    %c20_80 = arith.constant 20 : index
    %78 = vector.load %arg10[%c0_79, %c20_80] : memref<40x326xf32, #tpu.memory_space<vmem>>, vector<24x288xf32>
    %c0_81 = arith.constant 0 : index
    %c36_82 = arith.constant 36 : index
    %79 = vector.load %arg10[%c0_81, %c36_82] : memref<40x326xf32, #tpu.memory_space<vmem>>, vector<24x288xf32>
    %c0_83 = arith.constant 0 : index
    %c37_84 = arith.constant 37 : index
    %80 = vector.load %arg10[%c0_83, %c37_84] : memref<40x326xf32, #tpu.memory_space<vmem>>, vector<24x288xf32>
    %c0_85 = arith.constant 0 : index
    %c38_86 = arith.constant 38 : index
    %81 = vector.load %arg10[%c0_85, %c38_86] : memref<40x326xf32, #tpu.memory_space<vmem>>, vector<24x288xf32>
    %82 = tpu.concatenate %73, %74, %75, %76, %77, %78, %79, %80, %81 in 0 : vector<24x288xf32>, vector<24x288xf32>, vector<24x288xf32>, vector<24x288xf32>, vector<24x288xf32>, vector<24x288xf32>, vector<24x288xf32>, vector<24x288xf32>, vector<24x288xf32> -> vector<216x288xf32>
    %83 = arith.truncf %82 : vector<216x288xf32> to vector<216x288xbf16>
    %c0_87 = arith.constant 0 : index
    %c0_88 = arith.constant 0 : index
    %84 = vector.load %arg4[%c0_87, %c0_88] : memref<8x216xbf16, #tpu.memory_space<vmem>>, vector<8x216xbf16>
    %cst_89 = arith.constant dense<0.000000e+00> : vector<8x288xf32>
    %85 = tpu.matmul %84, %83, %cst_89 {dimension_numbers = #tpu.dot_dimension_numbers<[1], [0], [0], [1], [0, 0, 1, 1], [], []>} : vector<8x216xbf16>, vector<216x288xbf16>, vector<8x288xf32> -> vector<8x288xf32>
    %c0_90 = arith.constant 0 : index
    %c2_91 = arith.constant 2 : index
    %86 = vector.load %arg7[%c0_90, %c2_91] : memref<8x5xf32, #tpu.memory_space<vmem>>, vector<8x1xf32>
    %87 = vector.broadcast %86 : vector<8x1xf32> to vector<8x288xf32>
    %88 = arith.addf %85, %87 : vector<8x288xf32>
    %cst_92 = arith.constant 0.000000e+00 : f32
    %89 = vector.broadcast %cst_92 : f32 to vector<8x288xf32>
    %90 = arith.cmpf ogt, %88, %89 : vector<8x288xf32>
    %cst_93 = arith.constant 2.000000e-01 : f32
    %91 = vector.broadcast %cst_93 : f32 to vector<8x288xf32>
    %92 = arith.mulf %91, %88 : vector<8x288xf32>
    %93 = arith.select %90, %88, %92 : vector<8x288xi1>, vector<8x288xf32>
    %c24 = arith.constant 24 : index
    %c19_94 = arith.constant 19 : index
    %94 = vector.load %arg10[%c24, %c19_94] : memref<40x326xf32, #tpu.memory_space<vmem>>, vector<8x288xf32>
    tpu.vector_store %arg10[%c24, %c19_94], %93 {strides = array<i32>} : memref<40x326xf32, #tpu.memory_space<vmem>>, vector<8x288xf32>,
    %c24_95 = arith.constant 24 : index
    %c18_96 = arith.constant 18 : index
    %95 = vector.load %arg10[%c24_95, %c18_96] : memref<40x326xf32, #tpu.memory_space<vmem>>, vector<8x288xf32>
    %c24_97 = arith.constant 24 : index
    %c17_98 = arith.constant 17 : index
    %96 = vector.load %arg10[%c24_97, %c17_98] : memref<40x326xf32, #tpu.memory_space<vmem>>, vector<8x288xf32>
    %97 = arith.select %10, %96, %95 : vector<8x288xi1>, vector<8x288xf32>
    %98 = arith.select %8, %93, %97 : vector<8x288xi1>, vector<8x288xf32>
    %99 = vector.extract_strided_slice %98 {offsets = [0, 0], sizes = [8, 18], strides = [1, 1]} : vector<8x288xf32> to vector<8x18xf32>
    %c24_99 = arith.constant 24 : index
    %c0_100 = arith.constant 0 : index
    %100 = vector.load %arg10[%c24_99, %c0_100] : memref<40x326xf32, #tpu.memory_space<vmem>>, vector<8x18xf32>
    tpu.vector_store %arg10[%c24_99, %c0_100], %99 {strides = array<i32>} : memref<40x326xf32, #tpu.memory_space<vmem>>, vector<8x18xf32>,
    %c24_101 = arith.constant 24 : index
    %c18_102 = arith.constant 18 : index
    %101 = vector.load %arg10[%c24_101, %c18_102] : memref<40x326xf32, #tpu.memory_space<vmem>>, vector<8x288xf32>
    tpu.vector_store %arg10[%c24_101, %c18_102], %98 {strides = array<i32>} : memref<40x326xf32, #tpu.memory_space<vmem>>, vector<8x288xf32>,
    %102 = vector.extract_strided_slice %98 {offsets = [0, 270], sizes = [8, 18], strides = [1, 1]} : vector<8x288xf32> to vector<8x18xf32>
    %c24_103 = arith.constant 24 : index
    %c306_104 = arith.constant 306 : index
    %103 = vector.load %arg10[%c24_103, %c306_104] : memref<40x326xf32, #tpu.memory_space<vmem>>, vector<8x18xf32>
    tpu.vector_store %arg10[%c24_103, %c306_104], %102 {strides = array<i32>} : memref<40x326xf32, #tpu.memory_space<vmem>>, vector<8x18xf32>,
    %c0_105 = arith.constant 0 : index
    %c0_106 = arith.constant 0 : index
    %104 = vector.load %arg10[%c0_105, %c0_106] : memref<40x326xf32, #tpu.memory_space<vmem>>, vector<32x288xf32>
    %c0_107 = arith.constant 0 : index
    %c1_108 = arith.constant 1 : index
    %105 = vector.load %arg10[%c0_107, %c1_108] : memref<40x326xf32, #tpu.memory_space<vmem>>, vector<32x288xf32>
    %c0_109 = arith.constant 0 : index
    %c2_110 = arith.constant 2 : index
    %106 = vector.load %arg10[%c0_109, %c2_110] : memref<40x326xf32, #tpu.memory_space<vmem>>, vector<32x288xf32>
    %c0_111 = arith.constant 0 : index
    %c18_112 = arith.constant 18 : index
    %107 = vector.load %arg10[%c0_111, %c18_112] : memref<40x326xf32, #tpu.memory_space<vmem>>, vector<32x288xf32>
    %c0_113 = arith.constant 0 : index
    %c19_114 = arith.constant 19 : index
    %108 = vector.load %arg10[%c0_113, %c19_114] : memref<40x326xf32, #tpu.memory_space<vmem>>, vector<32x288xf32>
    %c0_115 = arith.constant 0 : index
    %c20_116 = arith.constant 20 : index
    %109 = vector.load %arg10[%c0_115, %c20_116] : memref<40x326xf32, #tpu.memory_space<vmem>>, vector<32x288xf32>
    %c0_117 = arith.constant 0 : index
    %c36_118 = arith.constant 36 : index
    %110 = vector.load %arg10[%c0_117, %c36_118] : memref<40x326xf32, #tpu.memory_space<vmem>>, vector<32x288xf32>
    %c0_119 = arith.constant 0 : index
    %c37_120 = arith.constant 37 : index
    %111 = vector.load %arg10[%c0_119, %c37_120] : memref<40x326xf32, #tpu.memory_space<vmem>>, vector<32x288xf32>
    %c0_121 = arith.constant 0 : index
    %c38_122 = arith.constant 38 : index
    %112 = vector.load %arg10[%c0_121, %c38_122] : memref<40x326xf32, #tpu.memory_space<vmem>>, vector<32x288xf32>
    %113 = tpu.concatenate %104, %105, %106, %107, %108, %109, %110, %111, %112 in 0 : vector<32x288xf32>, vector<32x288xf32>, vector<32x288xf32>, vector<32x288xf32>, vector<32x288xf32>, vector<32x288xf32>, vector<32x288xf32>, vector<32x288xf32>, vector<32x288xf32> -> vector<288x288xf32>
    %114 = arith.truncf %113 : vector<288x288xf32> to vector<288x288xbf16>
    %c0_123 = arith.constant 0 : index
    %c0_124 = arith.constant 0 : index
    %115 = vector.load %arg5[%c0_123, %c0_124] : memref<8x288xbf16, #tpu.memory_space<vmem>>, vector<8x288xbf16>
    %cst_125 = arith.constant dense<0.000000e+00> : vector<8x288xf32>
    %116 = tpu.matmul %115, %114, %cst_125 {dimension_numbers = #tpu.dot_dimension_numbers<[1], [0], [0], [1], [0, 0, 1, 1], [], []>} : vector<8x288xbf16>, vector<288x288xbf16>, vector<8x288xf32> -> vector<8x288xf32>
    %c0_126 = arith.constant 0 : index
    %c3 = arith.constant 3 : index
    %117 = vector.load %arg7[%c0_126, %c3] : memref<8x5xf32, #tpu.memory_space<vmem>>, vector<8x1xf32>
    %118 = vector.broadcast %117 : vector<8x1xf32> to vector<8x288xf32>
    %119 = arith.addf %116, %118 : vector<8x288xf32>
    %cst_127 = arith.constant 0.000000e+00 : f32
    %120 = vector.broadcast %cst_127 : f32 to vector<8x288xf32>
    %121 = arith.cmpf ogt, %119, %120 : vector<8x288xf32>
    %cst_128 = arith.constant 2.000000e-01 : f32
    %122 = vector.broadcast %cst_128 : f32 to vector<8x288xf32>
    %123 = arith.mulf %122, %119 : vector<8x288xf32>
    %124 = arith.select %121, %119, %123 : vector<8x288xi1>, vector<8x288xf32>
    %c32 = arith.constant 32 : index
    %c19_129 = arith.constant 19 : index
    %125 = vector.load %arg10[%c32, %c19_129] : memref<40x326xf32, #tpu.memory_space<vmem>>, vector<8x288xf32>
    tpu.vector_store %arg10[%c32, %c19_129], %124 {strides = array<i32>} : memref<40x326xf32, #tpu.memory_space<vmem>>, vector<8x288xf32>,
    %c32_130 = arith.constant 32 : index
    %c18_131 = arith.constant 18 : index
    %126 = vector.load %arg10[%c32_130, %c18_131] : memref<40x326xf32, #tpu.memory_space<vmem>>, vector<8x288xf32>
    %c32_132 = arith.constant 32 : index
    %c17_133 = arith.constant 17 : index
    %127 = vector.load %arg10[%c32_132, %c17_133] : memref<40x326xf32, #tpu.memory_space<vmem>>, vector<8x288xf32>
    %128 = arith.select %10, %127, %126 : vector<8x288xi1>, vector<8x288xf32>
    %129 = arith.select %8, %124, %128 : vector<8x288xi1>, vector<8x288xf32>
    %130 = vector.extract_strided_slice %129 {offsets = [0, 0], sizes = [8, 18], strides = [1, 1]} : vector<8x288xf32> to vector<8x18xf32>
    %c32_134 = arith.constant 32 : index
    %c0_135 = arith.constant 0 : index
    %131 = vector.load %arg10[%c32_134, %c0_135] : memref<40x326xf32, #tpu.memory_space<vmem>>, vector<8x18xf32>
    tpu.vector_store %arg10[%c32_134, %c0_135], %130 {strides = array<i32>} : memref<40x326xf32, #tpu.memory_space<vmem>>, vector<8x18xf32>,
    %c32_136 = arith.constant 32 : index
    %c18_137 = arith.constant 18 : index
    %132 = vector.load %arg10[%c32_136, %c18_137] : memref<40x326xf32, #tpu.memory_space<vmem>>, vector<8x288xf32>
    tpu.vector_store %arg10[%c32_136, %c18_137], %129 {strides = array<i32>} : memref<40x326xf32, #tpu.memory_space<vmem>>, vector<8x288xf32>,
    %133 = vector.extract_strided_slice %129 {offsets = [0, 270], sizes = [8, 18], strides = [1, 1]} : vector<8x288xf32> to vector<8x18xf32>
    %c32_138 = arith.constant 32 : index
    %c306_139 = arith.constant 306 : index
    %134 = vector.load %arg10[%c32_138, %c306_139] : memref<40x326xf32, #tpu.memory_space<vmem>>, vector<8x18xf32>
    tpu.vector_store %arg10[%c32_138, %c306_139], %133 {strides = array<i32>} : memref<40x326xf32, #tpu.memory_space<vmem>>, vector<8x18xf32>,
    %c0_140 = arith.constant 0 : index
    %c0_141 = arith.constant 0 : index
    %135 = vector.load %arg10[%c0_140, %c0_141] : memref<40x326xf32, #tpu.memory_space<vmem>>, vector<40x288xf32>
    %c0_142 = arith.constant 0 : index
    %c1_143 = arith.constant 1 : index
    %136 = vector.load %arg10[%c0_142, %c1_143] : memref<40x326xf32, #tpu.memory_space<vmem>>, vector<40x288xf32>
    %c0_144 = arith.constant 0 : index
    %c2_145 = arith.constant 2 : index
    %137 = vector.load %arg10[%c0_144, %c2_145] : memref<40x326xf32, #tpu.memory_space<vmem>>, vector<40x288xf32>
    %c0_146 = arith.constant 0 : index
    %c18_147 = arith.constant 18 : index
    %138 = vector.load %arg10[%c0_146, %c18_147] : memref<40x326xf32, #tpu.memory_space<vmem>>, vector<40x288xf32>
    %c0_148 = arith.constant 0 : index
    %c19_149 = arith.constant 19 : index
    %139 = vector.load %arg10[%c0_148, %c19_149] : memref<40x326xf32, #tpu.memory_space<vmem>>, vector<40x288xf32>
    %c0_150 = arith.constant 0 : index
    %c20_151 = arith.constant 20 : index
    %140 = vector.load %arg10[%c0_150, %c20_151] : memref<40x326xf32, #tpu.memory_space<vmem>>, vector<40x288xf32>
    %c0_152 = arith.constant 0 : index
    %c36_153 = arith.constant 36 : index
    %141 = vector.load %arg10[%c0_152, %c36_153] : memref<40x326xf32, #tpu.memory_space<vmem>>, vector<40x288xf32>
    %c0_154 = arith.constant 0 : index
    %c37_155 = arith.constant 37 : index
    %142 = vector.load %arg10[%c0_154, %c37_155] : memref<40x326xf32, #tpu.memory_space<vmem>>, vector<40x288xf32>
    %c0_156 = arith.constant 0 : index
    %c38_157 = arith.constant 38 : index
    %143 = vector.load %arg10[%c0_156, %c38_157] : memref<40x326xf32, #tpu.memory_space<vmem>>, vector<40x288xf32>
    %144 = tpu.concatenate %135, %136, %137, %138, %139, %140, %141, %142, %143 in 0 : vector<40x288xf32>, vector<40x288xf32>, vector<40x288xf32>, vector<40x288xf32>, vector<40x288xf32>, vector<40x288xf32>, vector<40x288xf32>, vector<40x288xf32>, vector<40x288xf32> -> vector<360x288xf32>
    %145 = arith.truncf %144 : vector<360x288xf32> to vector<360x288xbf16>
    %c0_158 = arith.constant 0 : index
    %c0_159 = arith.constant 0 : index
    %146 = vector.load %arg6[%c0_158, %c0_159] : memref<8x360xbf16, #tpu.memory_space<vmem>>, vector<8x360xbf16>
    %cst_160 = arith.constant dense<0.000000e+00> : vector<8x288xf32>
    %147 = tpu.matmul %146, %145, %cst_160 {dimension_numbers = #tpu.dot_dimension_numbers<[1], [0], [0], [1], [0, 0, 1, 1], [], []>} : vector<8x360xbf16>, vector<360x288xbf16>, vector<8x288xf32> -> vector<8x288xf32>
    %c0_161 = arith.constant 0 : index
    %c4 = arith.constant 4 : index
    %148 = vector.load %arg7[%c0_161, %c4] : memref<8x5xf32, #tpu.memory_space<vmem>>, vector<8x1xf32>
    %149 = vector.broadcast %148 : vector<8x1xf32> to vector<8x288xf32>
    %150 = arith.addf %147, %149 : vector<8x288xf32>
    %cst_162 = arith.constant 0.000000e+00 : f32
    %151 = vector.broadcast %cst_162 : f32 to vector<8x288xf32>
    %152 = arith.cmpf ogt, %150, %151 : vector<8x288xf32>
    %cst_163 = arith.constant 2.000000e-01 : f32
    %153 = vector.broadcast %cst_163 : f32 to vector<8x288xf32>
    %154 = arith.mulf %153, %150 : vector<8x288xf32>
    %155 = arith.select %152, %150, %154 : vector<8x288xi1>, vector<8x288xf32>
    %cst_164 = arith.constant 2.000000e-01 : f32
    %156 = vector.broadcast %cst_164 : f32 to vector<8x288xf32>
    %157 = arith.mulf %155, %156 : vector<8x288xf32>
    %158 = arith.addf %157, %5 : vector<8x288xf32>
    %159 = vector.shape_cast %158 : vector<8x288xf32> to vector<1x8x288xf32>
    %c0_165 = arith.constant 0 : index
    %c0_166 = arith.constant 0 : index
    %c0_167 = arith.constant 0 : index
    %160 = vector.load %arg9[%c0_165, %c0_166, %c0_167] : memref<1x8x288xf32, #tpu.memory_space<vmem>>, vector<1x8x288xf32>
    tpu.vector_store %arg9[%c0_165, %c0_166, %c0_167], %159 {strides = array<i32>} : memref<1x8x288xf32, #tpu.memory_space<vmem>>, vector<1x8x288xf32>,
    return
  }
  func.func @transform_0(%arg0: i32) -> (i32, i32, i32) {
    %c0_i32 = arith.constant 0 : i32
    %c0_i32_0 = arith.constant 0 : i32
    %c0_i32_1 = arith.constant 0 : i32
    return %arg0, %c0_i32, %c0_i32_0 : i32, i32, i32
  }
  func.func @transform_1(%arg0: i32) -> (i32, i32) {
    %c0_i32 = arith.constant 0 : i32
    %c0_i32_0 = arith.constant 0 : i32
    %c0_i32_1 = arith.constant 0 : i32
    return %c0_i32, %c0_i32_0 : i32, i32
  }
  func.func @transform_2(%arg0: i32) -> (i32, i32) {
    %c0_i32 = arith.constant 0 : i32
    %c0_i32_0 = arith.constant 0 : i32
    %c0_i32_1 = arith.constant 0 : i32
    return %c0_i32, %c0_i32_0 : i32, i32
  }
  func.func @transform_3(%arg0: i32) -> (i32, i32) {
    %c0_i32 = arith.constant 0 : i32
    %c0_i32_0 = arith.constant 0 : i32
    %c0_i32_1 = arith.constant 0 : i32
    return %c0_i32, %c0_i32_0 : i32, i32
  }
  func.func @transform_4(%arg0: i32) -> (i32, i32) {
    %c0_i32 = arith.constant 0 : i32
    %c0_i32_0 = arith.constant 0 : i32
    %c0_i32_1 = arith.constant 0 : i32
    return %c0_i32, %c0_i32_0 : i32, i32
  }
  func.func @transform_5(%arg0: i32) -> (i32, i32) {
    %c0_i32 = arith.constant 0 : i32
    %c0_i32_0 = arith.constant 0 : i32
    %c0_i32_1 = arith.constant 0 : i32
    return %c0_i32, %c0_i32_0 : i32, i32
  }
  func.func @transform_6(%arg0: i32) -> (i32, i32) {
    %c0_i32 = arith.constant 0 : i32
    %c0_i32_0 = arith.constant 0 : i32
    %c0_i32_1 = arith.constant 0 : i32
    return %c0_i32, %c0_i32_0 : i32, i32
  }
  func.func @transform_7(%arg0: i32) -> (i32, i32) {
    %c0_i32 = arith.constant 0 : i32
    %c0_i32_0 = arith.constant 0 : i32
    %c0_i32_1 = arith.constant 0 : i32
    return %c0_i32, %c0_i32_0 : i32, i32
  }
  func.func @transform_8(%arg0: i32) -> (i32, i32, i32) {
    %c0_i32 = arith.constant 0 : i32
    %c0_i32_0 = arith.constant 0 : i32
    %c0_i32_1 = arith.constant 0 : i32
    return %arg0, %c0_i32, %c0_i32_0 : i32, i32, i32
  }
}

</mosaic_0001>

<bundles_post_ra>
// kernel: tpu_custom_call.1
= control target key start
LH: loop header
LB: loop body
LE: loop exit
PB: predicated region body
PF: predicated region fallthrough
CT: control target
= control target key end

     0   :  { %s6979_s0 = inlined_call_operand.hbm [shape: f32[2,8,324], index: 0, kind: input, shape index: {}]   ;;  %s6980_s1 = inlined_call_operand.hbm [shape: bf16[8,72], index: 1, kind: input, shape index: {}]   ;;  %s6981_s2 = inlined_call_operand.hbm [shape: bf16[8,144], index: 2, kind: input, shape index: {}]   ;;  %s6982_s3 = inlined_call_operand.hbm [shape: bf16[8,216], index: 3, kind: input, shape index: {}]   ;;  %s6983_s4 = inlined_call_operand.hbm [shape: bf16[8,288], index: 4, kind: input, shape index: {}]   ;;  %s6984_s5 = inlined_call_operand.hbm [shape: bf16[8,360], index: 5, kind: input, shape index: {}]   ;;  %s6985_s6 = inlined_call_operand.hbm [shape: f32[8,5], index: 6, kind: input, shape index: {}]   ;;  %s6986_s7 = inlined_call_operand.hbm [shape: s32[8,288], index: 7, kind: input, shape index: {}]   ;;  %s6987_s8 = inlined_call_operand.hbm [shape: f32[2,8,288], index: 8, kind: output, shape index: {}]  }
   0x1   :  { %7090 = sst [smem:[#allocation45_spill]] %s6980_s1 }
   0x2   :  { %7091 = sst [smem:[#allocation46_spill]] %s6981_s2 }
   0x3   :  { %7092 = sst [smem:[#allocation47_spill]] %s6982_s3 }
   0x4   :  { %7093 = sst [smem:[#allocation48_spill]] %s6983_s4 }
   0x5   :  { %7094 = sst [smem:[#allocation49_spill]] %s6984_s5 }
   0x6   :  { %13 = vsyncpa [#allocation4], 0 }
   0x7   :  { %15 = vsyncpa [#allocation4 + $0x1], 0 }
   0x8   :  { %16 = vsyncpa [#allocation7], 0 }
   0x9   :  { %17 = vsyncpa [#allocation10], 0 }
   0xa   :  { %18 = vsyncpa [#allocation13], 0 }
   0xb   :  { %19 = vsyncpa [#allocation16], 0 }
   0xc   :  { %20 = vsyncpa [#allocation5], 0 }
   0xd   :  { %22 = vsyncpa [#allocation5 + $0x1], 0  ;;  %s4580_s27 = smov 0   ;;  %s4582_s28 = smov 0  }
   0xe   :  { %s4584_s29 = smov 0   ;;  %s4586_s30 = smov 0  }
   0xf LB: > { %s7095_s1 = sld [smem:[#allocation45_spill]]  ;;  %s4604_s12 = sadd.s32 4294967295, %s4508_s30   ;;  %s4508_s30 = sphi %s4586_s30, %s7366_s30   ;;  %s4504_s29 = sphi %s4584_s29, %s7365_s29   ;;  %s4500_s28 = sphi %s4582_s28, %s7364_s28   ;;  %s4496_s27 = sphi %s4580_s27, %s7363_s27  }
  0x10   : > { %p3143_p0 = scmp.ge.s32.totalorder %s4508_s30, 1  ;;  %p49_p1 = scmp.eq.s32.totalorder %s4604_s12, 0 }
  0x11   : > { %p232_p2 = scmp.lt.s32.totalorder %s4508_s30, 3  ;;  %s4510_s14 = smov [#allocation6]  }
  0x12   : > { %s246_s15 = sshll.u32 %s4510_s14, 4  ;;  %s7097_s3 = sld [smem:[#allocation47_spill]]  ;;  %s247_s15 = int_to_ptr.vmem [resolvable:$true] %s246_s15 }
  0x13   : > { %p4609_p3 = pnand %p3143_p0, %p232_p2  ;;  %s4511_s20 = smov [#allocation9]  }
  0x14   : > { %s270_s21 = sshll.u32 %s4511_s20, 4  ;;  %s7099_s5 = sld [smem:[#allocation49_spill]]  ;;  %s271_s21 = int_to_ptr.vmem [resolvable:$true] %s270_s21 }
  0x15   : > { %s244_s11 = sshll.u32 %s7095_s1, 4  ;;  %p3215_p5 = pneg %p4609_p3  ;;  %s245_s11 = int_to_ptr.hbm [resolvable:$true] %s244_s11 }
  0x16   : > { %s7100_s2 = sld [smem:[#allocation46_spill]]  ;;  %s4512_s10 = smov [#allocation12]  }
  0x17   : > { %p4621_p6 = pnand %p3215_p5, %p49_p1  ;;  %s294_s14 = sshll.u32 %s4512_s10, 4  ;;  %s295_s14 = int_to_ptr.vmem [resolvable:$true] %s294_s14 }
  0x18   : > { %s268_s18 = sshll.u32 %s7097_s3, 4  ;;  %s4513_s16 = smov [#allocation8]   ;;  %s269_s18 = int_to_ptr.hbm [resolvable:$true] %s268_s18 }
  0x19   : > { %3218 = dma.hbm_to_vmem [thread:$0]  (!%p4621_p6), %s245_s11, 64, %s247_s15, [#allocation7]  }
  0x1a   : > { %s292_s24 = sshll.u32 %s7099_s5, 4  ;;  %s258_s17 = sshll.u32 %s4513_s16, 4  ;;  %s293_s24 = int_to_ptr.hbm [resolvable:$true] %s292_s24  ;;  %s259_s17 = int_to_ptr.vmem [resolvable:$true] %s258_s17 }
  0x1b   : > { %3224 = dma.hbm_to_vmem [thread:$0]  (!%p4621_p6), %s269_s18, 128, %s271_s21, [#allocation10]  }
  0x1c   : > { %s256_s9 = sshll.u32 %s7100_s2, 4  ;;  %s7101_s4 = sld [smem:[#allocation48_spill]]  ;;  %s257_s9 = int_to_ptr.hbm [resolvable:$true] %s256_s9 }
  0x1d   : > { %3230 = dma.hbm_to_vmem [thread:$0]  (!%p4621_p6), %s293_s24, 192, %s295_s14, [#allocation13]  }
  0x1e   : > { %3221 = dma.hbm_to_vmem [thread:$0]  (!%p4621_p6), %s257_s9, 128, %s259_s17, [#allocation7]  }
  0x1f   : > { %s304_s21 = sshll.u32 %s6985_s6, 4  ;;  %s4514_s23 = smov [#allocation11]   ;;  %s305_s21 = int_to_ptr.hbm [resolvable:$true] %s304_s21 }
  0x20   : > { %s282_s24 = sshll.u32 %s4514_s23, 4  ;;  %s4515_s25 = smov [#allocation14]   ;;  %s283_s24 = int_to_ptr.vmem [resolvable:$true] %s282_s24 }
  0x21   : > { %s306_s26 = sshll.u32 %s4515_s25, 4  ;;  %s316_s14 = sshll.u32 %s6986_s7, 4  ;;  %s307_s26 = int_to_ptr.vmem [resolvable:$true] %s306_s26  ;;  %s317_s14 = int_to_ptr.hbm [resolvable:$true] %s316_s14 }
  0x22   : > { %s280_s11 = sshll.u32 %s7101_s4, 4  ;;  %s4516_s16 = smov [#allocation15]   ;;  %s281_s11 = int_to_ptr.hbm [resolvable:$true] %s280_s11 }
  0x23   : > { %3227 = dma.hbm_to_vmem [thread:$0]  (!%p4621_p6), %s281_s11, 192, %s283_s24, [#allocation10]  }
  0x24   : > { %3233 = dma.hbm_to_vmem [thread:$0]  (!%p4621_p6), %s305_s21, 128, %s307_s26, [#allocation13]  }
  0x25   : > { %s318_s17 = sshll.u32 %s4516_s16, 4  ;;  %s3142_s20 = sadd.s32 4294967294, %s4508_s30   ;;  %s319_s17 = int_to_ptr.vmem [resolvable:$true] %s318_s17 }
  0x26   : > { %3236 = dma.hbm_to_vmem [thread:$0]  (!%p4621_p6), %s317_s14, 384, %s319_s17, [#allocation16]  }
  0x27   : > { %s4656_s22 = sadd.s32 1, %s4508_s30   ;;  %s35_s11 = sadd.s32 1, %s4504_s29 }
  0x28   : > { %s32_s15 = ssub.s32 %s4508_s30, %s4656_s22  ;;  %p42_p7 = scmp.ne.s32.totalorder %s4504_s29, %s4500_s28 }
  0x29   : > { %p33_p8 = scmp.eq.s32.totalorder %s32_s15, 0  ;;  %p43_p9 = scmp.eq.s32.totalorder %s4508_s30, 0 }
  0x2a   : > { %p48_p10 = scmp.ne.s32.totalorder %s4500_s28, %s4496_s27  ;;  %p219_p11 = scmp.eq.s32.totalorder %s4604_s12, 1 }
  0x2b   : > { %s4668_s18 = scalar_select %p33_p8, %s4504_s29, %s35_s11  }
  0x2c   : > { %p44_p12 = por %p43_p9, %p42_p7  ;;  %p4672_p13 = por %p49_p1, %p48_p10 }
  0x2d   : > { %p4676_p0 = por %p219_p11, %p42_p7  ;;  %p225_p2 = scmp.eq.s32.totalorder %s3142_s20, 1 }
  0x2e   : > { %p3252_p5 = scmp.lt.s32.totalorder %s4508_s30, 2  ;;  %s329_s23 = sand.u32 1, %s4504_s29  }
  0x2f   : > { %p4682_p6 = por %p225_p2, %p48_p10  ;;  %s3179_s25 = smul.u32 24, %s329_s23 }
  0x30   : > { %p4686_p8 = pnand %p3252_p5, %p44_p12  ;;  %s3180_s9 = smul.u32 24, %s4508_s30 }
  0x31   : > { %s333_s17 = scalar_lea.vmem [#allocation3], %s3179_s25  ;;  %s330_s15 = scalar_lea.sflag [#allocation4], %s329_s23 }
  0x32   : > { %s338_s16 = scalar_lea.hbm %s6979_s0, %s3180_s9  ;;  %s342_s11 = sshll.u32 %s333_s17, 4  ;;  %s343_s11 = int_to_ptr.vmem [resolvable:$true] %s342_s11 }
  0x33   : > { %s340_s20 = sshll.u32 %s338_s16, 4  ;;  %p4400_p9 = pneg %p4686_p8  ;;  %s341_s20 = int_to_ptr.hbm [resolvable:$true] %s340_s20 }
  0x34   : > { %s4396_s1 = sshra.s32 %s341_s20, 4  ;;  %s4403_s5 = scalar_lea.hbm %s6979_s0, 48  ;;  %s4397_s1 = int_to_ptr.hbm [resolvable:$true] %s4396_s1 }
  0x35   : > { %s4398_s2 = scalar_lea.hbm %s4397_s1, 24  ;;  %p4404_p12 = scmp.lt.s32.totalorder %s4397_s1, %s6979_s0 }
  0x36   : > { %p4399_p7 = scmp.ne.s32.totalorder %s4397_s1, %s4398_s2  ;;  %p4405_p2 = scmp.lt.s32.totalorder %s4403_s5, %s4398_s2 }
  0x38   : > { %p4401_p10 = pnand %p4400_p9, %p4399_p7  ;;  %p4406_p5 = por %p4405_p2, %p4404_p12 }
  0x3a   : > { %p4402_p11 = pneg %p4401_p10 }
  0x3c   : > { %p4407_p4 = pnand %p4406_p5, %p4402_p11 }
  0x3e   : > { %4410 = shalt.err (!%p4407_p4)
}
  0x3f   : > { %3240 = dma.hbm_to_vmem [thread:$0]  (!%p4686_p8), %s341_s20, 384, %s343_s11, %s330_s15  }
  0x40   : > { %351 = sbr.rel (%p4609_p3) target bundleno = 3204 (0xc84), region = 52 }
  0x45   : > { %s4707_s23 = sand.u32 1, %s4500_s28  }
  0x46   : > { %s3181_s3 = smul.u32 24, %s4707_s23  ;;  %s354_s4 = scalar_lea.sflag [#allocation4], %s4707_s23 }
  0x48   : > { %s357_s1 = scalar_lea.vmem [#allocation3], %s3181_s3 }
  0x49   : > { %4471 = dma.done.wait (%p4672_p13), %s354_s4, 384  }
  0x4a   : > { %4473 = vsyncadd (%p4672_p13), %s354_s4, 4294966912 }
  0x4b   : > { %4475 = dma.done.wait (%p49_p1), [#allocation7], 192  }
  0x4c   : > { %4477 = vsyncadd (%p49_p1), [#allocation7], 4294967104 }
  0x4d   : > { %4479 = dma.done.wait (%p49_p1), [#allocation10], 320  }
  0x4e   : > { %4481 = vsyncadd (%p49_p1), [#allocation10], 4294966976 }
  0x4f   : > { %4483 = dma.done.wait (%p49_p1), [#allocation13], 320  }
  0x50   : > { %4485 = vsyncadd (%p49_p1), [#allocation13], 4294966976 }
  0x51   : > { %4487 = dma.done.wait (%p49_p1), [#allocation16], 384  }
  0x52   : > { %4489 = vsyncadd (%p49_p1), [#allocation16], 4294966912  ;;  %vm427_vm0 = vcmask 572960   ;;  %v4517_v0 = vmov 0.0   ;;  %vm438_vm1 = vcmask 556032   ;;  %v4733_v1 = vld [vmem:[%s357_s1] sm:$0xff] }
  0x53   : > { %428 = vst.msk [vmem:[#allocation2 + $0x10] sm:$0xff] %vm427_vm0, %v4517_v0  ;;  %v4735_v2 = vld [vmem:[%s357_s1 + $0x10] sm:$0xff]  ;;  %v4739_v3 = vld [vmem:[%s357_s1 + $0x8] sm:$0xff]  ;;  %s4518_s2 = smov 91   ;;  %s4519_s5 = smov 90   ;;  %vm6988_vm2 = vcmask 1043456  }
  0x54   : > { %429 = vst.msk [vmem:[#allocation2 + $0x28] sm:$0xff] %vm427_vm0, %v4517_v0  ;;  %s4520_s13 = smov 109   ;;  %s4521_s19 = smov 92   ;;  %vm7017_vm3 = vcmask 736256   ;;  %vm521_vm4 = vcmask 752640   ;;  %vm533_vm5 = vcmask 744448  }
  0x55   : > { %430 = vst.msk [vmem:[#allocation2 + $0x40] sm:$0xff] %vm427_vm0, %v4517_v0  ;;  %s4522_s25 = smov 108   ;;  %s4523_s26 = smov 126   ;;  %v4775_v30 = vld [vmem:[#allocation14] sm:$0xff]  ;;  %v4526_v34 = vmov 0   ;;  %vm509_vm6 = vcmask 883712  }
  0x56   : > { %431 = vst.msk [vmem:[#allocation2 + $0x58] sm:$0xff] %vm427_vm0, %v4517_v0  ;;  %s4524_s14 = smov 110   ;;  %s4525_s16 = smov 127   ;;  %3358 = vset.pattern.permute.xlu1 %v4526_v34  ;;  %vm497_vm7 = vcmask 891904   ;;  %vm485_vm8 = vcmask 900096   ;;  %vm6997_vm9 = vcmask 1031168  }
  0x57   : > { %432 = vst.msk [vmem:[#allocation2 + $0x70] sm:$0xff] %vm427_vm0, %v4517_v0  ;;  %vm573_vm10 = vcmask 588800   ;;  %vm6996_vm11 = vcmask 1039360   ;;  %s4527_s17 = smov 19   ;;  %vm6990_vm15 = vcmask 1047704   ;;  %s4528_s11 = smov 111  }
  0x58   : > { %7106 = vst [vmem:[#allocation24_spill] sm:$0xff] %v4735_v2  ;;  %vm644_vm0 = vcmask 154624   ;;  %s4529_s20 = smov 18   ;;  %s4530_s15 = smov 36  }
  0x59   : > { %436 = vst [vmem:[#allocation2] sm:$0xff] %v4733_v1  ;;  %s6938_s10 = scalar_lea.vmem [#allocation17], %s3181_s3  ;;  %s3182_s9 = smul.u32 24, %s4604_s12 }
  0x5a   : > { %439 = vst.msk [vmem:[#allocation2 + $0x10] sm:$0xff] %vm438_vm1, %v4735_v2  ;;  %vm6989_vm1 = vcmask 416768   ;;  %s2989_s12 = scalar_lea.sflag [#allocation5], %s4707_s23 }
  0x5b   : > { %437 = vst [vmem:[#allocation2 + $0x8] sm:$0xff] %v4739_v3  ;;  %s3000_s1 = scalar_lea.hbm %s6987_s8, %s3182_s9 }
  0x61   : > { %v4742_v4 = vld [vmem:[#allocation2 + $0x10] sm:$0xff] }
  0x62   : > { %v3328_v5 = vpack.i.bf16 %v4733_v1, %v4742_v4 }
  0x64   : > { %3329 = vrot.lane.b32.xlu1 %v3328_v5, %s4518_s2  ;;  %3319 = vrot.lane.b32.xlu0 %v3328_v5, %s4519_s5 }
  0x65   : > { %3334 = vrot.lane.b32.xlu2 %v3328_v5, %s4520_s13 }
  0x6c   : > { %541 = vrot.lane.b32.xlu1 %v4739_v3, %s4519_s5  ;;  %3324 = vrot.lane.b32.xlu0 %v3328_v5, %s4521_s19 }
  0x6d   : > { %3339 = vrot.lane.b32.xlu2 %v3328_v5, %s4522_s25 }
  0x74   : > { %529 = vrot.lane.b32.xlu1 %v4739_v3, %s4518_s2  ;;  %517 = vrot.lane.b32.xlu0 %v4739_v3, %s4521_s19 }
  0x75   : > { %3344 = vrot.lane.b32.xlu2 %v3328_v5, %s4523_s26 }
  0x7c   : > { %493 = vrot.lane.b32.xlu1 %v4739_v3, %s4520_s13  ;;  %3349 = vrot.lane.b32.xlu0 %v3328_v5, %s4524_s14 }
  0x7d   : > { %505 = vrot.lane.b32.xlu2 %v4739_v3, %s4522_s25 }
  0x84   : > { %469 = vrot.lane.b32.xlu1 %v4739_v3, %s4523_s26  ;;  %3354 = vrot.lane.b32.xlu0 %v3328_v5, %s4525_s16 }
  0x85   : > { %481 = vrot.lane.b32.xlu2 %v4739_v3, %s4524_s14 }
  0x8c   : > { %457 = vrot.lane.b32.xlu0 %v4739_v3, %s4525_s16  ;;  %570 = vperm.xlu1 %3358, %v4775_v30  }
  0xbf   : > { %v3335_v6 = vpop.permute.xlu2 %3334 }
  0xc0   : > { %v3336_v27 = vunpack.i.l.bf16 %v3335_v6  ;;  %v3337_v43 = vunpack.i.h.bf16 %v3335_v6 }
  0xc7   : > { %v3340_v9 = vpop.permute.xlu2 %3339 }
  0xc8   : > { %v3341_v26 = vunpack.i.l.bf16 %v3340_v9  ;;  %v3342_v41 = vunpack.i.h.bf16 %v3340_v9 }
  0xca   : > { %v559_v33 = vpack.c.bf16 %v3341_v26, %v3336_v27 }
  0xcf   : > { %v3345_v22 = vpop.permute.xlu2 %3344 }
  0xd0   : > { %v3346_v47 = vunpack.i.l.bf16 %v3345_v22  ;;  %v3347_v57 = vunpack.i.h.bf16 %v3345_v22 }
  0xd6   : > { %v3330_v7 = vpop.permute.xlu1 %3329  ;;  %v3320_v8 = vpop.permute.xlu0 %3319 }
  0xd7   : > { %v3321_v10 = vunpack.i.l.bf16 %v3320_v8  ;;  %v3322_v13 = vunpack.i.h.bf16 %v3320_v8  ;;  %v3331_v18 = vunpack.i.l.bf16 %v3330_v7  ;;  %v3332_v28 = vunpack.i.h.bf16 %v3330_v7  ;;  %v506_v42 = vpop.permute.xlu2 %505  ;;  %v566_v8 = vld [vmem:[#allocation6] sm:$0xf] }
  0xd8   : > { %v510_v46 = vsel %vm509_vm6, %v3342_v41, %v506_v42  ;;  %v511_v50 = vsel %vm509_vm6, %v506_v42, %v3341_v26  ;;  %v4808_v41 = vld [vmem:[#allocation15] sm:$0xff] }
  0xd9   : > { %v565_v11 = vpack.c.bf16 %v3321_v10, %v3321_v10  ;;  %7107 = vst [vmem:[#allocation25_spill] sm:$0xff] %v4808_v41 }
  0xdb   : > { %v585_v12 = vsel %vm6988_vm2, %v565_v11, 0 }
  0xdc   : > { %616 = vmatpush.bf16.msra.mxu2 %v585_v12 }
  0xde   : > { %v542_v14 = vpop.permute.xlu1 %541  ;;  %v3325_v15 = vpop.permute.xlu0 %3324 }
  0xdf   : > { %v546_v16 = vsel %vm7017_vm3, %v3322_v13, %v542_v14  ;;  %v547_v17 = vsel %vm7017_vm3, %v542_v14, %v3321_v10  ;;  %v3326_v19 = vunpack.i.l.bf16 %v3325_v15  ;;  %v3327_v29 = vunpack.i.h.bf16 %v3325_v15  ;;  %v482_v56 = vpop.permute.xlu2 %481 }
  0xe0   : > { %v563_v20 = vpack.c.bf16 %v546_v16, %v546_v16  ;;  %v564_v21 = vpack.c.bf16 %v547_v17, %v547_v17 }
  0xe1   : > { %v562_v23 = vpack.c.bf16 %v3331_v18, %v3326_v19 }
  0xe2   : > { %v579_v24 = vsel %vm6988_vm2, %v563_v20, 0  ;;  %v582_v25 = vsel %vm6988_vm2, %v564_v21, 0 }
  0xe3   : > { %590 = vmatpush.bf16.msra.mxu0 %v579_v24  ;;  %603 = vmatpush.bf16.msra.mxu1 %v582_v25 }
  0xe4   : > { %617 = vmatpush.bf16.msra.mxu2 %v562_v23 }
  0xe6   : > { %v530_v31 = vpop.permute.xlu1 %529  ;;  %v518_v32 = vpop.permute.xlu0 %517 }
  0xe7   : > { %v522_v35 = vsel %vm521_vm4, %v3327_v29, %v518_v32  ;;  %v534_v36 = vsel %vm533_vm5, %v3332_v28, %v530_v31  ;;  %v523_v37 = vsel %vm521_vm4, %v518_v32, %v3326_v19  ;;  %v535_v38 = vsel %vm533_vm5, %v530_v31, %v3331_v18 }
  0xe8   : > { %618 = vmatpush.bf16.msra.mxu2 %v559_v33  ;;  %v560_v39 = vpack.c.bf16 %v534_v36, %v522_v35  ;;  %v561_v40 = vpack.c.bf16 %v535_v38, %v523_v37 }
  0xea   : > { %591 = vmatpush.bf16.msra.mxu0 %v560_v39  ;;  %604 = vmatpush.bf16.msra.mxu1 %v561_v40 }
  0xee   : > { %v494_v44 = vpop.permute.xlu1 %493  ;;  %v3350_v45 = vpop.permute.xlu0 %3349 }
  0xef   : > { %v498_v48 = vsel %vm497_vm7, %v3337_v43, %v494_v44  ;;  %v499_v49 = vsel %vm497_vm7, %v494_v44, %v3336_v27  ;;  %v3351_v51 = vunpack.i.l.bf16 %v3350_v45  ;;  %v3352_v55 = vunpack.i.h.bf16 %v3350_v45 }
  0xf0   : > { %v557_v52 = vpack.c.bf16 %v510_v46, %v498_v48  ;;  %v558_v53 = vpack.c.bf16 %v511_v50, %v499_v49  ;;  %v4816_v48 = vld [vmem:[#allocation15 + $0x10] sm:$0xff]  ;;  %v4820_v50 = vld [vmem:[#allocation15 + $0x8] sm:$0xff] }
  0xf1   : > { %v556_v54 = vpack.c.bf16 %v3351_v51, %v3346_v47  ;;  %v486_v60 = vsel %vm485_vm8, %v3352_v55, %v482_v56  ;;  %v487_v63 = vsel %vm485_vm8, %v482_v56, %v3351_v51  ;;  %7108 = vst [vmem:[#allocation26_spill] sm:$0xff] %v4816_v48  ;;  %vm448_vm2 = vcmp.eq.s32.totalorder %v4816_v48, 17 }
  0xf2   : > { %592 = vmatpush.bf16.msra.mxu0 %v557_v52  ;;  %605 = vmatpush.bf16.msra.mxu1 %v558_v53  ;;  %7109 = vst [vmem:[#allocation27_spill] sm:$0xff] %v4820_v50 }
  0xf3   : > { %619 = vmatpush.bf16.msra.mxu2 %v556_v54 }
  0xf6   : > { %v470_v58 = vpop.permute.xlu1 %469  ;;  %v3355_v59 = vpop.permute.xlu0 %3354 }
  0xf7   : > { %v474_v61 = vsel %vm6997_vm9, %v3347_v57, %v470_v58  ;;  %v475_v62 = vsel %vm6997_vm9, %v470_v58, %v3346_v47  ;;  %v3356_v0 = vunpack.i.l.bf16 %v3355_v59  ;;  %v3357_v9 = vunpack.i.h.bf16 %v3355_v59 }
  0xf8   : > { %v554_v5 = vpack.c.bf16 %v486_v60, %v474_v61  ;;  %v555_v6 = vpack.c.bf16 %v487_v63, %v475_v62  ;;  %v3369_v58 = vpack.i.bf16 %v4739_v3, %v4733_v1 }
  0xf9   : > { %v553_v7 = vpack.c.bf16 %v3356_v0, %v4742_v4 }
  0xfa   : > { %593 = vmatpush.bf16.msra.mxu0 %v554_v5  ;;  %606 = vmatpush.bf16.msra.mxu1 %v555_v6 }
  0xfb   : > { %620 = vmatpush.bf16.msra.mxu2 %v553_v7 }
  0xfe   : > { %v458_v10 = vpop.permute.xlu0 %457  ;;  %3163 = vmatmul.msk.bf16.vlgmr.msra.gmra.mxu2 %vm573_vm10, %v566_v8  ;;  %v571_v15 = vpop.permute.xlu1 %570 }
  0xff   : > { %v462_v11 = vsel %vm6996_vm11, %v3357_v9, %v458_v10  ;;  %v463_v12 = vsel %vm6996_vm11, %v458_v10, %v3356_v0 }
 0x100   : > { %v551_v13 = vpack.c.bf16 %v462_v11, %v4733_v1  ;;  %v552_v14 = vpack.c.bf16 %v463_v12, %v4739_v3 }
 0x102   : > { %594 = vmatpush.bf16.msra.mxu0 %v551_v13  ;;  %607 = vmatpush.bf16.msra.mxu1 %v552_v14 }
 0x105   : > { %3161 = vmatmul.msk.bf16.vlgmr.msra.gmra.mxu0 %vm573_vm10, %v566_v8  ;;  %3162 = vmatmul.msk.bf16.vlgmr.msra.gmra.mxu1 %vm573_vm10, %v566_v8  ;;  %vm667_vm10 = vcmask 908288  }
 0x181   : > { %v622_v16 = vpop.f32.mrf.mxu2 }
 0x182   : > { %v623_v17 = vadd.f32 %v622_v16, %v571_v15  ;;  %v596_v18 = vpop.f32.mrf.mxu0  ;;  %v609_v19 = vpop.f32.mrf.mxu1 }
 0x183   : > { %v597_v20 = vadd.f32 %v596_v18, %v571_v15  ;;  %v610_v21 = vadd.f32 %v609_v19, %v571_v15 }
 0x184   : > { %v631_v22 = vmul.f32 0.2, %v623_v17  ;;  %vm628_vm12 = vcmp.gt.f32.partialorder %v623_v17, 0.0 }
 0x185   : > { %v629_v23 = vmul.f32 0.2, %v597_v20  ;;  %v630_v24 = vmul.f32 0.2, %v610_v21  ;;  %vm626_vm13 = vcmp.gt.f32.partialorder %v597_v20, 0.0  ;;  %vm627_vm14 = vcmp.gt.f32.partialorder %v610_v21, 0.0 }
 0x186   : > { %v634_v25 = vsel %vm628_vm12, %v623_v17, %v631_v22  ;;  %vm6991_vm12 = vcmp.eq.s32.totalorder %v4808_v41, 17 }
 0x187   : > { %642 = vrot.lane.b32.xlu1 %v634_v25, %s4527_s17  ;;  %v632_v26 = vsel %vm626_vm13, %v597_v20, %v629_v23  ;;  %v633_v27 = vsel %vm627_vm14, %v610_v21, %v630_v24  ;;  %vm443_vm13 = vcmp.eq.s32.totalorder %v4808_v41, 0  ;;  %vm690_vm14 = vcmask 146432  }
 0x188   : > { %638 = vrot.lane.b32.xlu2 %v632_v26, %s4527_s17  ;;  %640 = vrot.lane.b32.xlu0 %v633_v27, %s4527_s17 }
 0x189   : > { %v624_v28 = vpop.f32.mrf.mxu2 }
 0x18a   : > { %v611_v29 = vpop.f32.mrf.mxu1  ;;  %v598_v31 = vpop.f32.mrf.mxu0 }
 0x18b   : > { %v4925_v31 = vld [vmem:[#allocation8] sm:$0xff] }
 0x1e2   : > { %v639_v32 = vpop.permute.xlu2 %638 }
 0x1e3   : > { %651 = vst.msk [vmem:[#allocation2 + $0x18] sm:$0xff] %vm6990_vm15, %v639_v32  ;;  %vm6993_vm15 = vcmp.eq.s32.totalorder %v4820_v50, 17 }
 0x1ea   : > { %v655_v33 = vld [vmem:[#allocation2 + $0x18] sm:$0xff] }
 0x1eb   : > { %661 = vrot.lane.b32.xlu2 %v655_v33, %s4528_s11 }
 0x1f3   : > { %673 = vrot.lane.b32.xlu2 %v655_v33, %s4524_s14 }
 0x1f9   : > { %v643_v34 = vpop.permute.xlu1 %642 }
 0x1fa   : > { %v641_v35 = vpop.permute.xlu0 %640 }
 0x1fb   : > { %v645_v36 = vsel %vm644_vm0, %v639_v32, %v641_v35  ;;  %v646_v37 = vsel %vm644_vm0, %v641_v35, %v643_v34  ;;  %v940_v32 = vunpack.c.h.b16 %v4925_v31 }
 0x1fc   : > { %654 = vst.msk [vmem:[#allocation2 + $0x28] sm:$0xff] %vm6989_vm1, %v646_v37  ;;  %663 = vrot.lane.b32.xlu0 %v645_v36, %s4528_s11  ;;  %vm6994_vm1 = vcmp.eq.s32.totalorder %v4816_v48, 0 }
 0x203   : > { %v657_v38 = vld [vmem:[#allocation2 + $0x28] sm:$0xff] }
 0x204   : > { %665 = vrot.lane.b32.xlu1 %v657_v38, %s4528_s11  ;;  %675 = vrot.lane.b32.xlu0 %v645_v36, %s4524_s14 }
 0x20c   : > { %677 = vrot.lane.b32.xlu1 %v657_v38, %s4524_s14 }
 0x245   : > { %v662_v39 = vpop.permute.xlu2 %661 }
 0x24d   : > { %v674_v42 = vpop.permute.xlu2 %673 }
 0x26e   : > { %v664_v40 = vpop.permute.xlu0 %663 }
 0x26f   : > { %v668_v45 = vsel %vm667_vm10, %v662_v39, %v664_v40 }
 0x276   : > { %v666_v43 = vpop.permute.xlu1 %665  ;;  %v676_v44 = vpop.permute.xlu0 %675 }
 0x277   : > { %v679_v46 = vsel %vm485_vm8, %v674_v42, %v676_v44  ;;  %v669_v52 = vsel %vm667_vm10, %v664_v40, %v666_v43  ;;  %v4934_v42 = vpack.c.b16 %v940_v32, %v940_v32 }
 0x278   : > { %v684_v47 = vsel %vm6991_vm12, %v668_v45, %v679_v46  ;;  %vm6992_vm12 = vcmp.eq.s32.totalorder %v4820_v50, 0 }
 0x279   : > { %v687_v49 = vsel %vm443_vm13, %v632_v26, %v684_v47 }
 0x27a   : > { %695 = vrot.lane.b32.xlu2 %v687_v49, %s4529_s20  ;;  %691 = vst.msk [vmem:[#allocation2 + $0x18] sm:$0xff] %vm690_vm14, %v687_v49 }
 0x27e   : > { %v678_v51 = vpop.permute.xlu1 %677 }
 0x27f   : > { %v686_v53 = vsel %vm448_vm2, %v666_v43, %v678_v51  ;;  %v680_v54 = vsel %vm485_vm8, %v676_v44, %v678_v51 }
 0x280   : > { %v689_v55 = vsel %vm6994_vm1, %v634_v25, %v686_v53  ;;  %v685_v56 = vsel %vm6993_vm15, %v669_v52, %v680_v54  ;;  %vm7053_vm15 = vcmask 408576   ;;  %vm6995_vm1 = vcmask 556432  }
 0x281   : > { %699 = vrot.lane.b32.xlu1 %v689_v55, %s4529_s20  ;;  %v688_v57 = vsel %vm6992_vm12, %v633_v27, %v685_v56  ;;  %vm706_vm12 = vcmask 1047696  }
 0x282   : > { %697 = vrot.lane.b32.xlu0 %v688_v57, %s4529_s20  ;;  %711 = vrot.lane.b32.xlu2 %v689_v55, %s4530_s15 }
 0x289   : > { %3370 = vrot.lane.b32.xlu1 %v3369_v58, %s4522_s25 }
 0x28a   : > { %3365 = vrot.lane.b32.xlu2 %v3369_v58, %s4521_s19  ;;  %3360 = vrot.lane.b32.xlu0 %v3369_v58, %s4518_s2 }
 0x291   : > { %3390 = vrot.lane.b32.xlu1 %v3369_v58, %s4519_s5 }
 0x292   : > { %3380 = vrot.lane.b32.xlu2 %v3369_v58, %s4524_s14  ;;  %3375 = vrot.lane.b32.xlu0 %v3369_v58, %s4520_s13 }
 0x29a   : > { %3385 = vrot.lane.b32.xlu2 %v3369_v58, %s4523_s26 }
 0x2d4   : > { %v696_v59 = vpop.permute.xlu2 %695 }
 0x2d5   : > { %707 = vst.msk [vmem:[#allocation2 + $0x18] sm:$0xff] %vm706_vm12, %v696_v59 }
 0x2dc   : > { %v4855_v0 = vld [vmem:[#allocation2 + $0x18] sm:$0xff]  ;;  %v712_v6 = vpop.permute.xlu2 %711 }
 0x2dd   : > { %v1621_v8 = vld [vmem:[#allocation2 + $0x18] sm:$0xff] }
 0x2e4   : > { %v4897_v14 = vpop.permute.xlu2 %3365 }
 0x2e5   : > { %v3368_v43 = vunpack.i.h.bf16 %v4897_v14  ;;  %v3367_v44 = vunpack.i.l.bf16 %v4897_v14 }
 0x2e7   : > { %v850_v56 = vsel %vm521_vm4, %v3367_v44, %v3368_v43 }
 0x2ec   : > { %v4899_v15 = vpop.permute.xlu2 %3380 }
 0x2f3   : > { %v700_v60 = vpop.permute.xlu1 %699 }
 0x2f4   : > { %v698_v61 = vpop.permute.xlu0 %697  ;;  %v4901_v16 = vpop.permute.xlu2 %3385 }
 0x2f5   : > { %v4852_v62 = vsel %vm690_vm14, %v696_v59, %v698_v61  ;;  %v702_v63 = vsel %vm690_vm14, %v698_v61, %v700_v60 }
 0x2f6   : > { %708 = vst [vmem:[#allocation2 + $0x20] sm:$0xff] %v4852_v62  ;;  %v4860_v5 = vpack.i.bf16 %v4852_v62, %v4855_v0 }
 0x2f7   : > { %710 = vst.msk [vmem:[#allocation2 + $0x28] sm:$0xff] %vm7053_vm15, %v702_v63 }
 0x2f8   : > { %715 = vst.msk [vmem:[#allocation2 + $0x28] sm:$0xff] %vm6995_vm1, %v712_v6  ;;  %3405 = vrot.lane.b32.xlu2 %v4860_v5, %s4522_s25  ;;  %3400 = vrot.lane.b32.xlu0 %v4860_v5, %s4521_s19  ;;  %vm944_vm1 = vcmask 130048  }
 0x2f9   : > { %3395 = vrot.lane.b32.xlu1 %v4860_v5, %s4518_s2 }
 0x2fb   : > { %v4903_v17 = vpop.permute.xlu1 %3370 }
 0x2fc   : > { %v4909_v20 = vpop.permute.xlu0 %3360  ;;  %v3373_v47 = vunpack.i.h.bf16 %v4903_v17  ;;  %v3372_v51 = vunpack.i.l.bf16 %v4903_v17 }
 0x2fd   : > { %v1622_v7 = vld [vmem:[#allocation2 + $0x20] sm:$0xff]  ;;  %v3363_v33 = vunpack.i.h.bf16 %v4909_v20  ;;  %v3362_v34 = vunpack.i.l.bf16 %v4909_v20 }
 0x2fe   : > { %v4870_v9 = vpack.i.bf16 %v1622_v7, %v1621_v8  ;;  %v828_v61 = vsel %vm509_vm6, %v3372_v51, %v3373_v47 }
 0x2ff   : > { %v1623_v10 = vld [vmem:[#allocation2 + $0x28] sm:$0xff]  ;;  %v872_v45 = vsel %vm533_vm5, %v3362_v34, %v3363_v33 }
 0x300   : > { %3425 = vrot.lane.b32.xlu2 %v4860_v5, %s4519_s5  ;;  %3415 = vrot.lane.b32.xlu0 %v4860_v5, %s4524_s14  ;;  %v4878_v11 = vpack.i.bf16 %v1623_v10, %v1622_v7  ;;  %v4880_v12 = vld [vmem:[#allocation2 + $0x28] sm:$0xff] }
 0x301   : > { %3410 = vrot.lane.b32.xlu1 %v4860_v5, %s4520_s13  ;;  %v3429_v13 = vpack.i.bf16 %v4880_v12, %v4742_v4 }
 0x303   : > { %v4907_v19 = vpop.permute.xlu1 %3390 }
 0x304   : > { %v3393_v21 = vunpack.i.h.bf16 %v4907_v19  ;;  %v3392_v22 = vunpack.i.l.bf16 %v4907_v19  ;;  %v4923_v29 = vpop.permute.xlu0 %3375 }
 0x305   : > { %v3378_v6 = vunpack.i.h.bf16 %v4923_v29  ;;  %v3377_v7 = vunpack.i.l.bf16 %v4923_v29 }
 0x306   : > { %v894_v26 = vsel %vm7017_vm3, %v3392_v22, %v3393_v21  ;;  %v3383_v22 = vunpack.i.h.bf16 %v4899_v15 }
 0x308   : > { %3440 = vrot.lane.b32.xlu2 %v4860_v5, %s4525_s16  ;;  %3420 = vrot.lane.b32.xlu0 %v4860_v5, %s4523_s26 }
 0x309   : > { %3430 = vrot.lane.b32.xlu1 %v3429_v13, %s4518_s2 }
 0x310   : > { %3460 = vrot.lane.b32.xlu2 %v3429_v13, %s4524_s14  ;;  %3445 = vrot.lane.b32.xlu0 %v3429_v13, %s4521_s19 }
 0x311   : > { %3435 = vrot.lane.b32.xlu1 %v3369_v58, %s4525_s16 }
 0x318   : > { %3475 = vrot.lane.b32.xlu2 %v3429_v13, %s4525_s16  ;;  %3450 = vrot.lane.b32.xlu0 %v3429_v13, %s4522_s25 }
 0x319   : > { %3455 = vrot.lane.b32.xlu1 %v3429_v13, %s4520_s13 }
 0x320   : > { %3465 = vrot.lane.b32.xlu0 %v3429_v13, %s4519_s5 }
 0x321   : > { %3470 = vrot.lane.b32.xlu1 %v3429_v13, %s4523_s26 }
 0x352   : > { %v4905_v18 = vpop.permute.xlu2 %3405 }
 0x353   : > { %v3408_v52 = vunpack.i.h.bf16 %v4905_v18  ;;  %v3407_v53 = vunpack.i.l.bf16 %v4905_v18 }
 0x355   : > { %v830_v63 = vsel %vm509_vm6, %v3407_v53, %v3408_v52 }
 0x356   : > { %v919_v13 = vpack.c.bf16 %v830_v63, %v828_v61  ;;  %v4531_v61 = vmov 1  }
 0x357   : > { %3479 = vset.pattern.permute.xlu0 %v4531_v61 }
 0x358   : > { %935 = vperm.xlu0 %3479, %v4775_v30  }
 0x35a   : > { %v4913_v23 = vpop.permute.xlu2 %3425 }
 0x35b   : > { %v3428_v24 = vunpack.i.h.bf16 %v4913_v23  ;;  %v3427_v25 = vunpack.i.l.bf16 %v4913_v23 }
 0x35d   : > { %v896_v27 = vsel %vm7017_vm3, %v3427_v25, %v3428_v24  ;;  %v3382_v25 = vunpack.i.l.bf16 %v4899_v15 }
 0x35e   : > { %v928_v28 = vpack.c.bf16 %v896_v27, %v894_v26  ;;  %v806_v27 = vsel %vm497_vm7, %v3377_v7, %v3378_v6 }
 0x360   : > { %968 = vmatpush.bf16.msrb.mxu0 %v928_v28 }
 0x363   : > { %3164 = vmatmul.msk.bf16.vlgmr.msrb.gmra.mxu0 %vm944_vm1, %v4934_v42 }
 0x36a   : > { %v4930_v35 = vpop.permute.xlu0 %3400 }
 0x36b   : > { %v3403_v36 = vunpack.i.h.bf16 %v4930_v35  ;;  %v3402_v37 = vunpack.i.l.bf16 %v4930_v35  ;;  %v3396_v38 = vpop.permute.xlu1 %3395 }
 0x36c   : > { %v3398_v39 = vunpack.i.h.bf16 %v3396_v38  ;;  %v3397_v40 = vunpack.i.l.bf16 %v3396_v38 }
 0x36d   : > { %v852_v54 = vsel %vm521_vm4, %v3402_v37, %v3403_v36 }
 0x36e   : > { %v874_v46 = vsel %vm533_vm5, %v3397_v40, %v3398_v39  ;;  %v922_v58 = vpack.c.bf16 %v852_v54, %v850_v56  ;;  %v4990_v54 = vpop.permute.xlu2 %3440 }
 0x36f   : > { %v925_v49 = vpack.c.bf16 %v874_v46, %v872_v45  ;;  %v3388_v45 = vunpack.i.h.bf16 %v4901_v16  ;;  %v3387_v46 = vunpack.i.l.bf16 %v4901_v16  ;;  %v3443_v63 = vunpack.i.h.bf16 %v4990_v54 }
 0x370   : > { %v3442_v7 = vunpack.i.l.bf16 %v4990_v54 }
 0x371   : > { %948 = vmatpush.bf16.msra.mxu3 %v925_v49  ;;  %v784_v49 = vsel %vm485_vm8, %v3382_v25, %v3383_v22 }
 0x372   : > { %v4949_v55 = vpop.permute.xlu0 %3415 }
 0x373   : > { %v4954_v57 = vpop.permute.xlu1 %3410  ;;  %v3418_v8 = vunpack.i.h.bf16 %v4949_v55  ;;  %v3417_v10 = vunpack.i.l.bf16 %v4949_v55 }
 0x374   : > { %v3413_v59 = vunpack.i.h.bf16 %v4954_v57  ;;  %v3412_v60 = vunpack.i.l.bf16 %v4954_v57 }
 0x375   : > { %949 = vmatpush.bf16.msra.mxu3 %v922_v58  ;;  %v786_v34 = vsel %vm485_vm8, %v3417_v10, %v3418_v8 }
 0x376   : > { %v808_v20 = vsel %vm497_vm7, %v3412_v60, %v3413_v59  ;;  %v913_v56 = vpack.c.bf16 %v786_v34, %v784_v49 }
 0x377   : > { %v916_v32 = vpack.c.bf16 %v808_v20, %v806_v27 }
 0x379   : > { %950 = vmatpush.bf16.msra.mxu3 %v919_v13 }
 0x37a   : > { %v4973_v26 = vpop.permute.xlu0 %3420 }
 0x37b   : > { %v3431_v28 = vpop.permute.xlu1 %3430  ;;  %v3423_v37 = vunpack.i.h.bf16 %v4973_v26  ;;  %v3422_v38 = vunpack.i.l.bf16 %v4973_v26 }
 0x37c   : > { %v3433_v40 = vunpack.i.h.bf16 %v3431_v28  ;;  %v3432_v44 = vunpack.i.l.bf16 %v3431_v28 }
 0x37d   : > { %951 = vmatpush.bf16.msra.mxu3 %v916_v32  ;;  %v764_v60 = vsel %vm6997_vm9, %v3422_v38, %v3423_v37  ;;  %v742_v38 = vsel %vm6996_vm11, %v3442_v7, %v3443_v63 }
 0x37e   : > { %v873_v51 = vsel %vm533_vm5, %v3363_v33, %v3432_v44  ;;  %v875_v53 = vsel %vm533_vm5, %v3398_v39, %v3433_v40  ;;  %v762_v33 = vsel %vm6997_vm9, %v3387_v46, %v3388_v45  ;;  %v927_v61 = vpack.c.bf16 %v3433_v40, %v3432_v44 }
 0x37f   : > { %v926_v58 = vpack.c.bf16 %v875_v53, %v873_v51  ;;  %v910_v25 = vpack.c.bf16 %v764_v60, %v762_v33  ;;  %v939_v51 = vunpack.c.l.b16 %v4925_v31 }
 0x381   : > { %952 = vmatpush.bf16.msra.mxu3 %v913_v56  ;;  %974 = vmatpush.bf16.msrb.mxu1 %v926_v58  ;;  %v3461_v56 = vpop.permute.xlu2 %3460 }
 0x382   : > { %v3446_v10 = vpop.permute.xlu0 %3445  ;;  %v3463_v17 = vunpack.i.h.bf16 %v3461_v56 }
 0x383   : > { %v3448_v39 = vunpack.i.h.bf16 %v3446_v10  ;;  %v3447_v13 = vunpack.i.l.bf16 %v3446_v10  ;;  %v5001_v20 = vpop.permute.xlu1 %3435  ;;  %v941_v10 = vpack.c.b16 %v939_v51, %v939_v51 }
 0x384   : > { %v3438_v27 = vunpack.i.h.bf16 %v5001_v20  ;;  %v3437_v28 = vunpack.i.l.bf16 %v5001_v20  ;;  %v787_v29 = vsel %vm485_vm8, %v3418_v8, %v3463_v17 }
 0x385   : > { %953 = vmatpush.bf16.msra.mxu3 %v910_v25  ;;  %v851_v32 = vsel %vm521_vm4, %v3368_v43, %v3447_v13  ;;  %v853_v34 = vsel %vm521_vm4, %v3403_v36, %v3448_v39  ;;  %v904_v36 = vpack.c.bf16 %v4855_v0, %v4733_v1  ;;  %v924_v44 = vpack.c.bf16 %v3448_v39, %v3447_v13 }
 0x386   : > { %v740_v30 = vsel %vm6996_vm11, %v3437_v28, %v3438_v27  ;;  %v923_v46 = vpack.c.bf16 %v853_v34, %v851_v32  ;;  %v3462_v25 = vunpack.i.l.bf16 %v3461_v56 }
 0x387   : > { %v907_v49 = vpack.c.bf16 %v742_v38, %v740_v30 }
 0x388   : > { %975 = vmatpush.bf16.msrb.mxu1 %v923_v46  ;;  %v785_v13 = vsel %vm485_vm8, %v3383_v22, %v3462_v25  ;;  %v915_v22 = vpack.c.bf16 %v3463_v17, %v3462_v25 }
 0x389   : > { %954 = vmatpush.bf16.msra.mxu3 %v907_v49  ;;  %v3476_v30 = vpop.permute.xlu2 %3475  ;;  %v914_v55 = vpack.c.bf16 %v787_v29, %v785_v13  ;;  %v5060_v49 = vpack.c.bf16 %v4852_v62, %v4739_v3 }
 0x38a   : > { %v3451_v14 = vpop.permute.xlu0 %3450  ;;  %v3477_v15 = vunpack.i.l.bf16 %v3476_v30 }
 0x38b   : > { %v3453_v43 = vunpack.i.h.bf16 %v3451_v14  ;;  %v3452_v53 = vunpack.i.l.bf16 %v3451_v14  ;;  %v3456_v35 = vpop.permute.xlu1 %3455 }
 0x38c   : > { %v3458_v58 = vunpack.i.h.bf16 %v3456_v35  ;;  %v3457_v60 = vunpack.i.l.bf16 %v3456_v35  ;;  %v741_v16 = vsel %vm6996_vm11, %v3438_v27, %v3477_v15  ;;  %v906_v27 = vpack.c.bf16 %v4880_v12, %v4742_v4 }
 0x38d   : > { %955 = vmatpush.bf16.msra.mxu3 %v904_v36  ;;  %v829_v7 = vsel %vm509_vm6, %v3373_v47, %v3452_v53  ;;  %v831_v31 = vsel %vm509_vm6, %v3408_v52, %v3453_v43  ;;  %v921_v57 = vpack.c.bf16 %v3453_v43, %v3452_v53 }
 0x38e   : > { %v920_v33 = vpack.c.bf16 %v831_v31, %v829_v7  ;;  %v807_v1 = vsel %vm497_vm7, %v3378_v6, %v3457_v60  ;;  %v809_v40 = vsel %vm497_vm7, %v3413_v59, %v3458_v58  ;;  %v918_v19 = vpack.c.bf16 %v3458_v58, %v3457_v60 }
 0x38f   : > { %v917_v18 = vpack.c.bf16 %v809_v40, %v807_v1 }
 0x390   : > { %956 = vmatmul.bf16.vlgmr.msra.gmra.mxu3 %v941_v10  ;;  %976 = vmatpush.bf16.msrb.mxu1 %v920_v33 }
 0x391   : > { %1000 = vmatpush.bf16.msrb.mxu3 %v927_v61 }
 0x392   : > { %v3466_v47 = vpop.permute.xlu0 %3465 }
 0x393   : > { %v3468_v28 = vunpack.i.h.bf16 %v3466_v47  ;;  %v3467_v52 = vunpack.i.l.bf16 %v3466_v47  ;;  %v3471_v32 = vpop.permute.xlu1 %3470 }
 0x394   : > { %v3473_v6 = vunpack.i.h.bf16 %v3471_v32  ;;  %v3472_v34 = vunpack.i.l.bf16 %v3471_v32  ;;  %977 = vmatpush.bf16.msrb.mxu1 %v917_v18 }
 0x395   : > { %1001 = vmatpush.bf16.msrb.mxu3 %v924_v44  ;;  %v897_v59 = vsel %vm7017_vm3, %v3428_v24, %v3468_v28  ;;  %v895_v39 = vsel %vm7017_vm3, %v3393_v21, %v3467_v52  ;;  %v930_v38 = vpack.c.bf16 %v3468_v28, %v3467_v52  ;;  %v3478_v21 = vunpack.i.h.bf16 %v3476_v30 }
 0x396   : > { %v929_v8 = vpack.c.bf16 %v897_v59, %v895_v39  ;;  %v763_v46 = vsel %vm6997_vm9, %v3388_v45, %v3472_v34  ;;  %v765_v23 = vsel %vm6997_vm9, %v3423_v37, %v3473_v6  ;;  %v912_v45 = vpack.c.bf16 %v3473_v6, %v3472_v34  ;;  %v5078_v6 = vld [vmem:[#allocation2] sm:$0xff] }
 0x397   : > { %v911_v24 = vpack.c.bf16 %v765_v23, %v763_v46  ;;  %v743_v26 = vsel %vm6996_vm11, %v3443_v63, %v3478_v21  ;;  %v909_v20 = vpack.c.bf16 %v3478_v21, %v3477_v15  ;;  %v3485_v34 = vpack.i.bf16 %v4739_v3, %v5078_v6 }
 0x398   : > { %978 = vmatpush.bf16.msrb.mxu1 %v914_v55  ;;  %994 = vmatpush.bf16.msra.mxu0 %v929_v8  ;;  %v908_v37 = vpack.c.bf16 %v743_v26, %v741_v16 }
 0x399   : > { %1002 = vmatpush.bf16.msrb.mxu3 %v921_v57 }
 0x39b   : > { %3165 = vmatmul.msk.bf16.vlgmr.msra.gmra.mxu0 %vm944_vm1, %v4934_v42 }
 0x39c   : > { %1020 = vmatpush.bf16.msrb.mxu0 %v930_v38  ;;  %979 = vmatpush.bf16.msrb.mxu1 %v911_v24 }
 0x39d   : > { %1003 = vmatpush.bf16.msrb.mxu3 %v918_v19 }
 0x3a0   : > { %980 = vmatpush.bf16.msrb.mxu1 %v908_v37 }
 0x3a1   : > { %1004 = vmatpush.bf16.msrb.mxu3 %v915_v22 }
 0x3a4   : > { %981 = vmatpush.bf16.msrb.mxu1 %v5060_v49 }
 0x3a5   : > { %1005 = vmatpush.bf16.msrb.mxu3 %v912_v45  ;;  %v5113_v45 = vld [vmem:[#allocation2 + $0x10] sm:$0xff] }
 0x3a7   : > { %982 = vmatmul.bf16.vlgmr.msrb.gmra.mxu1 %v941_v10 }
 0x3a9   : > { %1006 = vmatpush.bf16.msrb.mxu3 %v909_v20  ;;  %v3515_v20 = vpack.i.bf16 %v4855_v0, %v5113_v45 }
 0x3ab   : > { %3166 = vmatmul.msk.bf16.vlgmr.msrb.gmra.mxu0 %vm944_vm1, %v4934_v42 }
 0x3ad   : > { %1007 = vmatpush.bf16.msrb.mxu3 %v906_v27 }
 0x3b0   : > { %1008 = vmatmul.bf16.vlgmr.msrb.gmra.mxu3 %v941_v10 }
 0x3ca   : > { %v936_v51 = vpop.permute.xlu0 %935 }
 0x3e0   : > { %v970_v54 = vpop.f32.mrf.mxu0 }
 0x3e8   : > { %v972_v63 = vpop.f32.mrf.mxu0 }
 0x413   : > { %v957_v14 = vpop.f32.mrf.mxu3 }
 0x414   : > { %v958_v43 = vadd.f32 %v957_v14, %v936_v51 }
 0x416   : > { %v971_v53 = vadd.f32 %v970_v54, %v958_v43 }
 0x418   : > { %v996_v35 = vpop.f32.mrf.mxu0  ;;  %vm1026_vm11 = vcmp.gt.f32.partialorder %v971_v53, 0.0  ;;  %v1029_v36 = vmul.f32 0.2, %v971_v53 }
 0x41a   : > { %v1032_v56 = vsel %vm1026_vm11, %v971_v53, %v1029_v36  ;;  %vm7110_vm11 = vcmask 1047704  }
 0x41b   : > { %1038 = vrot.lane.b32.xlu1 %v1032_v56, %s4527_s17  ;;  %v959_v58 = vpop.f32.mrf.mxu3 }
 0x420   : > { %v998_v60 = vpop.f32.mrf.mxu0 }
 0x424   : > { %v983_v4 = vpop.f32.mrf.mxu1 }
 0x425   : > { %v984_v61 = vadd.f32 %v983_v4, %v936_v51 }
 0x427   : > { %v997_v7 = vadd.f32 %v996_v35, %v984_v61 }
 0x428   : > { %v1022_v31 = vpop.f32.mrf.mxu0 }
 0x429   : > { %vm1027_vm1 = vcmp.gt.f32.partialorder %v997_v7, 0.0  ;;  %v1030_v42 = vmul.f32 0.2, %v997_v7 }
 0x42b   : > { %v1033_v10 = vsel %vm1027_vm1, %v997_v7, %v1030_v42  ;;  %vm7112_vm1 = vcmp.eq.s32.totalorder %v4808_v41, 17 }
 0x42c   : > { %1040 = vrot.lane.b32.xlu2 %v1033_v10, %s4527_s17  ;;  %v985_v33 = vpop.f32.mrf.mxu1 }
 0x430   : > { %v1024_v40 = vpop.f32.mrf.mxu0 }
 0x433   : > { %v1009_v1 = vpop.f32.mrf.mxu3 }
 0x434   : > { %v1010_v44 = vadd.f32 %v1009_v1, %v936_v51 }
 0x436   : > { %v1023_v17 = vadd.f32 %v1022_v31, %v1010_v44 }
 0x438   : > { %vm1028_vm9 = vcmp.gt.f32.partialorder %v1023_v17, 0.0  ;;  %v1031_v25 = vmul.f32 0.2, %v1023_v17 }
 0x43a   : > { %v1034_v47 = vsel %vm1028_vm9, %v1023_v17, %v1031_v25  ;;  %vm7111_vm9 = vcmask 416768  }
 0x43b   : > { %v1011_v18 = vpop.f32.mrf.mxu3  ;;  %1042 = vrot.lane.b32.xlu1 %v1034_v47, %s4527_s17 }
 0x486   : > { %v1041_v28 = vpop.permute.xlu2 %1040 }
 0x48d   : > { %v1039_v52 = vpop.permute.xlu1 %1038 }
 0x48e   : > { %v1044_v32 = vsel %vm644_vm0, %v1039_v52, %v1041_v28  ;;  %1049 = vst.msk [vmem:[#allocation2 + $0x30] sm:$0xff] %vm7110_vm11, %v1039_v52  ;;  %vm7113_vm11 = vcmp.eq.s32.totalorder %v4816_v48, 0 }
 0x48f   : > { %1060 = vrot.lane.b32.xlu0 %v1044_v32, %s4528_s11 }
 0x495   : > { %v1052_v29 = vld [vmem:[#allocation2 + $0x30] sm:$0xff] }
 0x496   : > { %1058 = vrot.lane.b32.xlu2 %v1052_v29, %s4528_s11 }
 0x497   : > { %1071 = vrot.lane.b32.xlu0 %v1044_v32, %s4524_s14 }
 0x49e   : > { %1069 = vrot.lane.b32.xlu2 %v1052_v29, %s4524_s14 }
 0x49f   : > { %3491 = vrot.lane.b32.xlu0 %v4860_v5, %s4520_s13 }
 0x4a6   : > { %3486 = vrot.lane.b32.xlu2 %v3485_v34, %s4520_s13 }
 0x4a7   : > { %3506 = vrot.lane.b32.xlu0 %v3485_v34, %s4523_s26 }
 0x4ad   : > { %v1043_v57 = vpop.permute.xlu1 %1042 }
 0x4ae   : > { %v1045_v59 = vsel %vm644_vm0, %v1041_v28, %v1043_v57 }
 0x4af   : > { %1051 = vst.msk [vmem:[#allocation2 + $0x40] sm:$0xff] %vm7111_vm9, %v1045_v59  ;;  %vm7114_vm9 = vcmp.eq.s32.totalorder %v4820_v50, 17 }
 0x4b6   : > { %v1054_v39 = vld [vmem:[#allocation2 + $0x40] sm:$0xff] }
 0x4b7   : > { %1062 = vrot.lane.b32.xlu1 %v1054_v39, %s4528_s11 }
 0x4bf   : > { %1073 = vrot.lane.b32.xlu1 %v1054_v39, %s4524_s14 }
 0x4c7   : > { %3481 = vrot.lane.b32.xlu1 %v3485_v34, %s4522_s25 }
 0x4cf   : > { %3496 = vrot.lane.b32.xlu1 %v4860_v5, %s4524_s14 }
 0x4d7   : > { %3501 = vrot.lane.b32.xlu1 %v3485_v34, %s4524_s14 }
 0x4f0   : > { %v1059_v3 = vpop.permute.xlu2 %1058 }
 0x4f8   : > { %v1070_v30 = vpop.permute.xlu2 %1069 }
 0x500   : > { %v5136_v27 = vpop.permute.xlu2 %3486 }
 0x501   : > { %v1061_v13 = vpop.permute.xlu0 %1060 }
 0x502   : > { %v1064_v8 = vsel %vm667_vm10, %v1059_v3, %v1061_v13 }
 0x509   : > { %v1072_v55 = vpop.permute.xlu0 %1071 }
 0x50a   : > { %v1075_v38 = vsel %vm485_vm8, %v1070_v30, %v1072_v55 }
 0x50b   : > { %v1080_v46 = vsel %vm7112_vm1, %v1064_v8, %v1075_v38  ;;  %vm7115_vm1 = vcmp.eq.s32.totalorder %v4820_v50, 0 }
 0x50c   : > { %v1083_v23 = vsel %vm443_vm13, %v1032_v56, %v1080_v46 }
 0x50d   : > { %1090 = vrot.lane.b32.xlu2 %v1083_v23, %s4529_s20  ;;  %1086 = vst.msk [vmem:[#allocation2 + $0x30] sm:$0xff] %vm690_vm14, %v1083_v23 }
 0x511   : > { %v5143_v14 = vpop.permute.xlu0 %3491 }
 0x519   : > { %v5147_v53 = vpop.permute.xlu0 %3506 }
 0x529   : > { %v1063_v19 = vpop.permute.xlu1 %1062 }
 0x52a   : > { %v1065_v15 = vsel %vm667_vm10, %v1061_v13, %v1063_v19 }
 0x531   : > { %v1074_v21 = vpop.permute.xlu1 %1073 }
 0x532   : > { %v1076_v24 = vsel %vm485_vm8, %v1072_v55, %v1074_v21  ;;  %v1082_v16 = vsel %vm448_vm2, %v1063_v19, %v1074_v21 }
 0x533   : > { %v1085_v22 = vsel %vm7113_vm11, %v1034_v47, %v1082_v16  ;;  %v1081_v26 = vsel %vm7114_vm9, %v1065_v15, %v1076_v24  ;;  %vm7116_vm11 = vcmask 556432   ;;  %vm7117_vm9 = vcmask 1043456  }
 0x534   : > { %1104 = vrot.lane.b32.xlu2 %v1085_v22, %s4530_s15  ;;  %1094 = vrot.lane.b32.xlu1 %v1085_v22, %s4529_s20  ;;  %v1084_v37 = vsel %vm7115_vm1, %v1033_v10, %v1081_v26  ;;  %v7003_v16 = vunpack.i.h.bf16 %v5136_v27  ;;  %v3488_v22 = vunpack.i.l.bf16 %v5136_v27  ;;  %v7002_v26 = vunpack.i.h.bf16 %v5143_v14 }
 0x535   : > { %1092 = vrot.lane.b32.xlu0 %v1084_v37, %s4529_s20  ;;  %v3493_v37 = vunpack.i.l.bf16 %v5143_v14  ;;  %vm7118_vm1 = vcmask 1031168  }
 0x539   : > { %v5139_v63 = vpop.permute.xlu1 %3481 }
 0x53a   : > { %v7006_v23 = vunpack.i.h.bf16 %v5139_v63  ;;  %v3483_v19 = vunpack.i.l.bf16 %v5139_v63 }
 0x53c   : > { %1235 = vrot.lane.b32.xlu2 %v4880_v12, %s4520_s13  ;;  %3511 = vrot.lane.b32.xlu1 %v4860_v5, %s4523_s26 }
 0x53d   : > { %3516 = vrot.lane.b32.xlu0 %v3515_v20, %s4522_s25 }
 0x541   : > { %v5141_v51 = vpop.permute.xlu1 %3496 }
 0x544   : > { %3521 = vrot.lane.b32.xlu1 %v4860_v5, %s4525_s16  ;;  %1196 = vrot.lane.b32.xlu2 %v5113_v45, %s4524_s14 }
 0x545   : > { %3526 = vrot.lane.b32.xlu0 %v3485_v34, %s4519_s5 }
 0x549   : > { %v5145_v43 = vpop.permute.xlu1 %3501 }
 0x54c   : > { %3531 = vrot.lane.b32.xlu1 %v4860_v5, %s4519_s5 }
 0x54d   : > { %3536 = vrot.lane.b32.xlu0 %v3485_v34, %s4525_s16 }
 0x554   : > { %3541 = vrot.lane.b32.xlu1 %v4860_v5, %s4518_s2 }
 0x555   : > { %3546 = vrot.lane.b32.xlu0 %v3485_v34, %s4518_s2 }
 0x55c   : > { %3551 = vrot.lane.b32.xlu1 %v3485_v34, %s4521_s19 }
 0x55d   : > { %1367 = vrot.lane.b32.xlu0 %v4880_v12, %s4519_s5 }
 0x567   : > { %v1091_v54 = vpop.permute.xlu2 %1090 }
 0x568   : > { %1101 = vst.msk [vmem:[#allocation2 + $0x30] sm:$0xff] %vm706_vm12, %v1091_v54 }
 0x56f   : > { %v5153_v60 = vld [vmem:[#allocation2 + $0x30] sm:$0xff] }
 0x570   : > { %v3600_v10 = vpack.i.bf16 %v5153_v60, %v4852_v62 }
 0x58e   : > { %v1105_v61 = vpop.permute.xlu2 %1104 }
 0x596   : > { %v5207_v1 = vpop.permute.xlu2 %1235 }
 0x59e   : > { %v5213_v17 = vpop.permute.xlu2 %1196 }
 0x5a6   : > { %v1095_v35 = vpop.permute.xlu1 %1094 }
 0x5a7   : > { %v1093_v36 = vpop.permute.xlu0 %1092 }
 0x5a8   : > { %v5150_v56 = vsel %vm690_vm14, %v1091_v54, %v1093_v36  ;;  %v1097_v58 = vsel %vm690_vm14, %v1093_v36, %v1095_v35 }
 0x5a9   : > { %1102 = vst [vmem:[#allocation2 + $0x38] sm:$0xff] %v5150_v56  ;;  %v5158_v4 = vpack.i.bf16 %v5150_v56, %v5153_v60 }
 0x5aa   : > { %1103 = vst.msk [vmem:[#allocation2 + $0x40] sm:$0xff] %vm7053_vm15, %v1097_v58 }
 0x5ab   : > { %1107 = vst.msk [vmem:[#allocation2 + $0x40] sm:$0xff] %vm7116_vm11, %v1105_v61  ;;  %3561 = vrot.lane.b32.xlu2 %v5158_v4, %s4524_s14  ;;  %3556 = vrot.lane.b32.xlu0 %v5158_v4, %s4520_s13  ;;  %vm7119_vm11 = vmmov %vm7118_vm1 }
 0x5ae   : > { %v5209_v40 = vpop.permute.xlu1 %3511 }
 0x5af   : > { %v5203_v33 = vpop.permute.xlu0 %3516 }
 0x5b2   : > { %v5166_v7 = vld [vmem:[#allocation2 + $0x40] sm:$0xff] }
 0x5b3   : > { %v3610_v31 = vpack.i.bf16 %v5113_v45, %v5166_v7  ;;  %3571 = vrot.lane.b32.xlu2 %v5158_v4, %s4519_s5  ;;  %3566 = vrot.lane.b32.xlu0 %v5158_v4, %s4523_s26  ;;  %v3620_v42 = vpack.i.bf16 %v5166_v7, %v4880_v12 }
 0x5b5   : > { %3611 = vrot.lane.b32.xlu1 %v3610_v31, %s4519_s5 }
 0x5b7   : > { %v5211_v44 = vpop.permute.xlu0 %3526 }
 0x5b8   : > { %v3529_v32 = vunpack.i.h.bf16 %v5211_v44  ;;  %v3528_v29 = vunpack.i.l.bf16 %v5211_v44 }
 0x5ba   : > { %v1375_v13 = vsel %vm7017_vm3, %v3528_v29, %v3529_v32 }
 0x5bb   : > { %3576 = vrot.lane.b32.xlu2 %v5158_v4, %s4525_s16  ;;  %1169 = vrot.lane.b32.xlu0 %v4880_v12, %s4523_s26 }
 0x5bd   : > { %3616 = vrot.lane.b32.xlu1 %v3610_v31, %s4523_s26 }
 0x5bf   : > { %v5217_v62 = vpop.permute.xlu0 %3536 }
 0x5c3   : > { %3581 = vrot.lane.b32.xlu2 %v5158_v4, %s4518_s2  ;;  %3606 = vrot.lane.b32.xlu0 %v3620_v42, %s4524_s14 }
 0x5c5   : > { %3621 = vrot.lane.b32.xlu1 %v3620_v42, %s4518_s2 }
 0x5c7   : > { %v5223_v18 = vpop.permute.xlu0 %3546 }
 0x5cb   : > { %3586 = vrot.lane.b32.xlu2 %v5158_v4, %s4521_s19  ;;  %1272 = vrot.lane.b32.xlu0 %v5150_v56, %s4522_s25 }
 0x5cd   : > { %3626 = vrot.lane.b32.xlu1 %v3620_v42, %s4525_s16 }
 0x5cf   : > { %v5245_v8 = vpop.permute.xlu0 %1367 }
 0x5d3   : > { %1328 = vrot.lane.b32.xlu0 %v5113_v45, %s4518_s2  ;;  %3591 = vrot.lane.b32.xlu2 %v3610_v31, %s4520_s13 }
 0x5d5   : > { %1130 = vrot.lane.b32.xlu1 %v5113_v45, %s4525_s16 }
 0x5db   : > { %3636 = vrot.lane.b32.xlu0 %v3620_v42, %s4522_s25  ;;  %3596 = vrot.lane.b32.xlu2 %v4860_v5, %s4521_s19  ;;  %v5215_v5 = vpop.permute.xlu1 %3521  ;;  %v3498_v42 = vunpack.i.l.bf16 %v5141_v51 }
 0x5e3   : > { %3601 = vrot.lane.b32.xlu2 %v3600_v10, %s4522_s25  ;;  %v5221_v47 = vpop.permute.xlu1 %3531 }
 0x5e4   : > { %v7005_v34 = vunpack.i.h.bf16 %v5221_v47  ;;  %v3533_v57 = vunpack.i.l.bf16 %v5221_v47 }
 0x5e6   : > { %v1377_v30 = vsel %vm7017_vm3, %v3533_v57, %v7005_v34 }
 0x5e7   : > { %v1426_v46 = vpack.c.bf16 %v1377_v30, %v1375_v13  ;;  %v1243_v30 = vsel %vm497_vm7, %v3488_v22, %v7003_v16 }
 0x5eb   : > { %3631 = vrot.lane.b32.xlu2 %v3610_v31, %s4521_s19  ;;  %v5243_v55 = vpop.permute.xlu1 %3541  ;;  %v7001_v31 = vunpack.i.h.bf16 %v5141_v51 }
 0x5ec   : > { %v6999_v21 = vunpack.i.h.bf16 %v5243_v55  ;;  %v3543_v15 = vunpack.i.l.bf16 %v5243_v55 }
 0x5ee   : > { %v1344_v29 = vsel %vm533_vm5, %v3543_v15, %v6999_v21  ;;  %v3548_v15 = vunpack.i.l.bf16 %v5223_v18 }
 0x5f3   : > { %1301 = vrot.lane.b32.xlu2 %v4880_v12, %s4521_s19  ;;  %v5253_v24 = vpop.permute.xlu1 %3551 }
 0x605   : > { %v5219_v25 = vpop.permute.xlu2 %3561 }
 0x60d   : > { %v5225_v28 = vpop.permute.xlu2 %3571 }
 0x60e   : > { %v3574_v12 = vunpack.i.h.bf16 %v5225_v28  ;;  %v3573_v52 = vunpack.i.l.bf16 %v5225_v28 }
 0x610   : > { %v1379_v59 = vsel %vm7017_vm3, %v3573_v52, %v3574_v12  ;;  %v1276_v52 = vsel %vm509_vm6, %v3483_v19, %v7006_v23  ;;  %v7008_v19 = vunpack.i.h.bf16 %v5223_v18 }
 0x611   : > { %v1429_v39 = vpack.c.bf16 %v1379_v59, %v1379_v59  ;;  %v7000_v59 = vunpack.i.h.bf16 %v5219_v25 }
 0x613   : > { %v1450_v3 = vsel %vm7117_vm9, %v1429_v39, 0  ;;  %v3563_v39 = vunpack.i.l.bf16 %v5219_v25 }
 0x614   : > { %1473 = vmatpush.bf16.msra.mxu0 %v1450_v3 }
 0x615   : > { %v5247_v38 = vpop.permute.xlu2 %3576  ;;  %v1214_v22 = vsel %vm485_vm8, %v3563_v39, %v7000_v59  ;;  %v3513_v39 = vunpack.i.l.bf16 %v5209_v40 }
 0x618   : > { %1474 = vmatpush.bf16.msra.mxu0 %v1426_v46  ;;  %v1245_v46 = vsel %vm497_vm7, %v3493_v37, %v7002_v26  ;;  %v3508_v26 = vunpack.i.l.bf16 %v5147_v53 }
 0x61d   : > { %v5259_v20 = vpop.permute.xlu2 %3581  ;;  %v5261_v54 = vpop.permute.xlu0 %3556 }
 0x61e   : > { %v6998_v35 = vunpack.i.h.bf16 %v5259_v20  ;;  %v3583_v36 = vunpack.i.l.bf16 %v5259_v20  ;;  %v7004_v58 = vunpack.i.h.bf16 %v5261_v54  ;;  %v3558_v61 = vunpack.i.l.bf16 %v5261_v54 }
 0x620   : > { %v1247_v10 = vsel %vm497_vm7, %v3558_v61, %v7004_v58  ;;  %v1346_v57 = vsel %vm533_vm5, %v3583_v36, %v6998_v35 }
 0x621   : > { %v1411_v3 = vpack.c.bf16 %v1276_v52, %v1247_v10  ;;  %v1423_v13 = vpack.c.bf16 %v1346_v57, %v1344_v29  ;;  %v1408_v10 = vpack.c.bf16 %v1245_v46, %v1243_v30  ;;  %v1212_v52 = vsel %vm485_vm8, %v3498_v42, %v7001_v31 }
 0x622   : > { %v3503_v30 = vunpack.i.l.bf16 %v5145_v43  ;;  %v3509_v46 = vunpack.i.h.bf16 %v5147_v53  ;;  %v7015_v42 = vunpack.i.h.bf16 %v5209_v40  ;;  %v1342_v31 = vsel %vm533_vm5, %v3548_v15, %v7008_v19 }
 0x623   : > { %1458 = vmatpush.bf16.msrb.mxu2 %v1411_v3  ;;  %1475 = vmatpush.bf16.msra.mxu0 %v1423_v13  ;;  %v3504_v13 = vunpack.i.h.bf16 %v5145_v43  ;;  %v1405_v58 = vpack.c.bf16 %v1214_v22, %v1212_v52  ;;  %v7010_v22 = vunpack.i.h.bf16 %v5247_v38 }
 0x624   : > { %v1177_v52 = vsel %vm7118_vm1, %v3508_v26, %v3509_v46 }
 0x625   : > { %v5291_v36 = vpop.permute.xlu2 %3586  ;;  %v5293_v61 = vpop.permute.xlu0 %3566  ;;  %v1210_v15 = vsel %vm485_vm8, %v3503_v30, %v3504_v13 }
 0x626   : > { %v7007_v37 = vunpack.i.h.bf16 %v5291_v36  ;;  %v3588_v29 = vunpack.i.l.bf16 %v5291_v36  ;;  %v3569_v57 = vunpack.i.h.bf16 %v5293_v61  ;;  %v3568_v3 = vunpack.i.l.bf16 %v5293_v61 }
 0x627   : > { %v5309_v35 = vpop.permute.xlu1 %3611  ;;  %1459 = vmatpush.bf16.msrb.mxu2 %v1408_v10 }
 0x628   : > { %v5313_v21 = vunpack.i.l.bf16 %v5309_v35  ;;  %v1313_v59 = vsel %vm521_vm4, %v3588_v29, %v7007_v37  ;;  %v7009_v16 = vunpack.i.h.bf16 %v5309_v35  ;;  %v1181_v23 = vsel %vm7118_vm1, %v3568_v3, %v3569_v57 }
 0x629   : > { %v1420_v34 = vpack.c.bf16 %v1342_v31, %v1313_v59  ;;  %v3518_v29 = vunpack.i.l.bf16 %v5203_v33  ;;  %v1179_v31 = vsel %vm7119_vm11, %v3513_v39, %v7015_v42  ;;  %v3578_v3 = vunpack.i.l.bf16 %v5247_v38 }
 0x62a   : > { %v1380_v10 = vsel %vm7017_vm3, %v3574_v12, %v5313_v21  ;;  %v1376_v12 = vsel %vm7017_vm3, %v3529_v32, %v7009_v16  ;;  %v7120_v32 = vunpack.i.h.bf16 %v5139_v63  ;;  %v7122_v63 = vunpack.i.h.bf16 %v5261_v54 }
 0x62b   : > { %v1430_v37 = vpack.c.bf16 %v1380_v10, %v1380_v10  ;;  %1460 = vmatpush.bf16.msrb.mxu2 %v1405_v58  ;;  %1476 = vmatpush.bf16.msra.mxu0 %v1420_v34  ;;  %v1402_v34 = vpack.c.bf16 %v1210_v15, %v1181_v23  ;;  %v7121_v23 = vunpack.i.h.bf16 %v5221_v47  ;;  %v1399_v10 = vpack.c.bf16 %v1179_v31, %v1177_v52  ;;  %v5382_v52 = vld [vmem:[#allocation14] sm:$0xff] }
 0x62c   : > { %v1277_v30 = vsel %vm509_vm6, %v7120_v32, %v3518_v29  ;;  %v7011_v15 = vunpack.i.h.bf16 %v5215_v5  ;;  %v7013_v16 = vunpack.i.h.bf16 %v5217_v62  ;;  %v3538_v47 = vunpack.i.l.bf16 %v5217_v62 }
 0x62d   : > { %v1453_v28 = vsel %vm7117_vm9, %v1430_v37, 0  ;;  %v5343_v59 = vpop.permute.xlu0 %1169  ;;  %v5345_v58 = vpop.permute.xlu2 %3591  ;;  %v1378_v26 = vsel %vm7017_vm3, %v7121_v23, %v5245_v8  ;;  %vm7123_vm11 = vcmask 1039360   ;;  %v7014_v54 = vunpack.i.h.bf16 %v5253_v24 }
 0x62e   : > { %1499 = vmatpush.bf16.msra.mxu3 %v1453_v28  ;;  %v7012_v37 = vunpack.i.h.bf16 %v5345_v58  ;;  %v3593_v44 = vunpack.i.l.bf16 %v5345_v58  ;;  %v3523_v28 = vunpack.i.l.bf16 %v5215_v5  ;;  %v1427_v19 = vpack.c.bf16 %v1378_v26, %v1376_v12  ;;  %vm7126_vm9 = vmmov %vm7123_vm11 }
 0x62f   : > { %v5363_v39 = vpop.permute.xlu1 %3616  ;;  %1461 = vmatpush.bf16.msrb.mxu2 %v1402_v34  ;;  %v1148_v31 = vsel %vm7123_vm11, %v3578_v3, %v7010_v22  ;;  %v7124_v12 = vunpack.i.h.bf16 %v5136_v27  ;;  %v3553_v26 = vunpack.i.l.bf16 %v5253_v24  ;;  %v4532_v27 = vmov 2   ;;  %vm7127_vm1 = vmmov %vm7126_vm9 }
 0x630   : > { %v1248_v32 = vsel %vm497_vm7, %v7122_v63, %v3593_v44  ;;  %v1146_v3 = vsel %vm7126_vm9, %v3523_v28, %v7011_v15  ;;  %3640 = vset.pattern.permute.xlu1 %v4532_v27  ;;  %v1432_v27 = vld [vmem:[#allocation9] sm:$0xff]  ;;  %v3618_v15 = vunpack.i.l.bf16 %v5363_v39  ;;  %vm7132_vm11 = vcmask 1031168  }
 0x631   : > { %v1412_v23 = vpack.c.bf16 %v1277_v30, %v1248_v32  ;;  %v1244_v34 = vsel %vm497_vm7, %v7124_v12, %v7012_v37  ;;  %v1396_v12 = vpack.c.bf16 %v1148_v31, %v1146_v3  ;;  %1436 = vperm.xlu1 %3640, %v5382_v52   ;;  %v7128_v3 = vunpack.i.h.bf16 %v5141_v51  ;;  %vm7133_vm9 = vmmov %vm7132_vm11 }
 0x632   : > { %1500 = vmatpush.bf16.msra.mxu3 %v1427_v19  ;;  %v7125_v19 = vunpack.i.h.bf16 %v5143_v14  ;;  %v1440_v42 = vunpack.c.l.b16 %v1432_v27  ;;  %v7131_v51 = vunpack.i.h.bf16 %v5259_v20  ;;  %v3519_v20 = vunpack.i.h.bf16 %v5203_v33 }
 0x633   : > { %1462 = vmatpush.bf16.msrb.mxu2 %v1399_v10  ;;  %1484 = vmatpush.bf16.msra.mxu1 %v1412_v23  ;;  %v1144_v10 = vsel %vm7127_vm1, %v3538_v47, %v7013_v16  ;;  %v1309_v47 = vsel %vm521_vm4, %v3553_v26, %v7014_v54  ;;  %v7129_v26 = vunpack.i.h.bf16 %v5219_v25  ;;  %v1182_v25 = vsel %vm7132_vm11, %v3569_v57, %v3618_v15  ;;  %vm7135_vm1 = vmmov %vm7133_vm9 }
 0x634   : > { %v1246_v30 = vsel %vm497_vm7, %v7125_v19, %v5207_v1  ;;  %v5454_v61 = vpack.c.b16 %v1440_v42, %v1440_v42  ;;  %v1431_v42 = vpack.c.bf16 %v5313_v21, %v5313_v21  ;;  %vm7138_vm11 = vcmask 1039360  }
 0x635   : > { %v5393_v63 = vpop.permute.xlu0 %3606  ;;  %v5395_v32 = vpop.permute.xlu2 %3596  ;;  %v1409_v22 = vpack.c.bf16 %v1246_v30, %v1244_v34  ;;  %vm7141_vm3 = vcmask 1043456  }
 0x636   : > { %v3609_v14 = vunpack.i.h.bf16 %v5393_v63  ;;  %v3608_v23 = vunpack.i.l.bf16 %v5393_v63  ;;  %v7016_v28 = vunpack.i.h.bf16 %v5395_v32  ;;  %v3598_v19 = vunpack.i.l.bf16 %v5395_v32 }
 0x637   : > { %v5406_v37 = vpop.permute.xlu1 %3621  ;;  %1463 = vmatpush.bf16.msrb.mxu2 %v1396_v12  ;;  %1485 = vmatpush.bf16.msra.mxu1 %v1409_v22  ;;  %v1393_v22 = vpack.c.bf16 %v1144_v10, %v5153_v60  ;;  %v7146_v63 = vunpack.i.h.bf16 %v5291_v36 }
 0x638   : > { %v3624_v31 = vunpack.i.h.bf16 %v5406_v37  ;;  %v3623_v34 = vunpack.i.l.bf16 %v5406_v37  ;;  %v1311_v30 = vsel %vm521_vm4, %v3598_v19, %v7016_v28  ;;  %v1213_v16 = vsel %vm485_vm8, %v7128_v3, %v3608_v23 }
 0x639   : > { %v1417_v12 = vpack.c.bf16 %v1311_v30, %v1309_v47  ;;  %v1215_v54 = vsel %vm485_vm8, %v7129_v26, %v3609_v14  ;;  %v7130_v19 = vunpack.i.h.bf16 %v5243_v55  ;;  %v3619_v47 = vunpack.i.h.bf16 %v5363_v39 }
 0x63a   : > { %v1347_v60 = vsel %vm533_vm5, %v7131_v51, %v3624_v31  ;;  %v1406_v10 = vpack.c.bf16 %v1215_v54, %v1213_v16  ;;  %v1390_v55 = vpack.c.bf16 %v4855_v0, %v5078_v6  ;;  %v1211_v16 = vsel %vm485_vm8, %v3504_v13, %v5213_v17 }
 0x63b   : > { %v1345_v28 = vsel %vm533_vm5, %v7130_v19, %v3623_v34  ;;  %1464 = vmatpush.bf16.msrb.mxu2 %v1393_v22  ;;  %1477 = vmatpush.bf16.msra.mxu0 %v1417_v12  ;;  %v1441_v3 = vunpack.c.h.b16 %v1432_v27  ;;  %v1413_v0 = vpack.c.bf16 %v3518_v29, %v3593_v44  ;;  %v1403_v43 = vpack.c.bf16 %v1211_v16, %v1182_v25 }
 0x63c   : > { %v1424_v30 = vpack.c.bf16 %v1347_v60, %v1345_v28  ;;  %1486 = vmatpush.bf16.msra.mxu1 %v1406_v10  ;;  %v1178_v13 = vsel %vm7133_vm9, %v3509_v46, %v3619_v47  ;;  %v7134_v26 = vunpack.i.h.bf16 %v5209_v40  ;;  %v7136_v51 = vunpack.i.h.bf16 %v5345_v58  ;;  %vm7140_vm9 = vmmov %vm7138_vm11 }
 0x63d   : > { %v5450_v54 = vpop.permute.xlu0 %1272  ;;  %v5452_v28 = vpop.permute.xlu2 %3601  ;;  %v5480_v19 = vpack.c.b16 %v1441_v3, %v1441_v3  ;;  %v7137_v10 = vunpack.i.h.bf16 %v5215_v5  ;;  %v7139_v25 = vunpack.i.h.bf16 %v5247_v38  ;;  %v7142_v38 = vunpack.i.h.bf16 %v5309_v35 }
 0x63e   : > { %1501 = vmatpush.bf16.msra.mxu3 %v1424_v30  ;;  %v3604_v57 = vunpack.i.h.bf16 %v5452_v28  ;;  %v3603_v22 = vunpack.i.l.bf16 %v5452_v28  ;;  %v1180_v53 = vsel %vm7135_vm1, %v7134_v26, %v5343_v59  ;;  %v1410_v60 = vpack.c.bf16 %v5207_v1, %v7136_v51 }
 0x63f   : > { %v5462_v12 = vpop.permute.xlu1 %3626  ;;  %1465 = vmatpush.bf16.msrb.mxu2 %v1390_v55  ;;  %v1400_v21 = vpack.c.bf16 %v1180_v53, %v1178_v13  ;;  %vm1445_vm1 = vcmask 719872   ;;  %v1456_v55 = vsel %vm7141_vm3, %v1431_v42, 0  ;;  %v1407_v1 = vpack.c.bf16 %v3609_v14, %v3608_v23  ;;  %vm7144_vm3 = vmmov %vm7140_vm9 }
 0x640   : > { %v3629_v33 = vunpack.i.h.bf16 %v5462_v12  ;;  %v3628_v29 = vunpack.i.l.bf16 %v5462_v12  ;;  %1487 = vmatpush.bf16.msra.mxu1 %v1403_v43  ;;  %v1278_v44 = vsel %vm509_vm6, %v3519_v20, %v3603_v22  ;;  %v1280_v27 = vsel %vm509_vm6, %v3604_v57, %v5450_v54 }
 0x641   : > { %v1414_v46 = vpack.c.bf16 %v1280_v27, %v1278_v44  ;;  %v1428_v3 = vpack.c.bf16 %v5245_v8, %v7142_v38  ;;  %v7145_v43 = vunpack.i.h.bf16 %v5223_v18  ;;  %v1425_v18 = vpack.c.bf16 %v3624_v31, %v3623_v34 }
 0x642   : > { %1466 = vmatmul.bf16.vlgmr.msrb.gmra.mxu2 %v5454_v61  ;;  %v1147_v30 = vsel %vm7138_vm11, %v7137_v10, %v3628_v29  ;;  %v1149_v40 = vsel %vm7140_vm9, %v7139_v25, %v3629_v33  ;;  %v1401_v8 = vpack.c.bf16 %v5343_v59, %v3619_v47  ;;  %v7147_v27 = vunpack.i.h.bf16 %v5253_v24 }
 0x643   : > { %1510 = vmatpush.bf16.msra.mxu2 %v1413_v0  ;;  %1478 = vmatpush.bf16.msra.mxu0 %v1414_v46  ;;  %v1397_v28 = vpack.c.bf16 %v1149_v40, %v1147_v30  ;;  %v7143_v0 = vunpack.i.h.bf16 %v5217_v62  ;;  %v1404_v62 = vpack.c.bf16 %v5213_v17, %v3618_v15  ;;  %v7148_v15 = vunpack.i.h.bf16 %v5395_v32 }
 0x644   : > { %1488 = vmatpush.bf16.msra.mxu1 %v1400_v21  ;;  %v1398_v47 = vpack.c.bf16 %v3629_v33, %v3628_v29 }
 0x645   : > { %v1329_v20 = vpop.permute.xlu0 %1328  ;;  %v3632_v16 = vpop.permute.xlu2 %3631 }
 0x646   : > { %v3633_v58 = vunpack.i.l.bf16 %v3632_v16  ;;  %3167 = vmatmul.msk.bf16.vlgmr.msra.gmra.mxu0 %vm1445_vm1, %v5480_v19  ;;  %v1343_v12 = vsel %vm533_vm5, %v7145_v43, %v1329_v20  ;;  %v3634_v13 = vunpack.i.h.bf16 %v3632_v16 }
 0x647   : > { %1511 = vmatpush.bf16.msra.mxu2 %v1410_v60  ;;  %1525 = vmatpush.bf16.msrb.mxu0 %v1456_v55  ;;  %v1131_v5 = vpop.permute.xlu1 %1130 }
 0x648   : > { %v1145_v57 = vsel %vm7144_vm3, %v7143_v0, %v1131_v5  ;;  %1489 = vmatpush.bf16.msra.mxu1 %v1397_v28  ;;  %v1314_v14 = vsel %vm521_vm4, %v7146_v63, %v3633_v58  ;;  %v1310_v17 = vsel %vm521_vm4, %v7147_v27, %v3634_v13  ;;  %v1422_v34 = vpack.c.bf16 %v1329_v20, %v3633_v58 }
 0x649   : > { %v1394_v23 = vpack.c.bf16 %v1145_v57, %v5150_v56  ;;  %v1421_v35 = vpack.c.bf16 %v1343_v12, %v1314_v14  ;;  %v1395_v32 = vpack.c.bf16 %v1131_v5, %v5166_v7  ;;  %vm7149_vm3 = vcmask 1047704   ;;  %v5546_v14 = vld [vmem:[#allocation2 + $0x20] sm:$0xff] }
 0x64b   : > { %1512 = vmatpush.bf16.msra.mxu2 %v1407_v1  ;;  %1526 = vmatpush.bf16.msrb.mxu0 %v1428_v3 }
 0x64c   : > { %1502 = vmatpush.bf16.msra.mxu3 %v1421_v35  ;;  %1490 = vmatpush.bf16.msra.mxu1 %v1394_v23  ;;  %v5548_v23 = vld [vmem:[#allocation2 + $0x28] sm:$0xff] }
 0x64d   : > { %v3637_v56 = vpop.permute.xlu0 %3636  ;;  %v1302_v36 = vpop.permute.xlu2 %1301  ;;  %v3651_v35 = vpack.i.bf16 %v5548_v23, %v5546_v14 }
 0x64e   : > { %v3639_v42 = vunpack.i.h.bf16 %v3637_v56  ;;  %v3638_v44 = vunpack.i.l.bf16 %v3637_v56  ;;  %v1312_v37 = vsel %vm521_vm4, %v7148_v15, %v1302_v36  ;;  %v1419_v24 = vpack.c.bf16 %v1302_v36, %v3634_v13  ;;  %v5559_v56 = vld [vmem:[#allocation2 + $0x8] sm:$0xff] }
 0x64f   : > { %1513 = vmatpush.bf16.msra.mxu2 %v1404_v62  ;;  %1527 = vmatpush.bf16.msrb.mxu0 %v1425_v18  ;;  %v1418_v31 = vpack.c.bf16 %v1312_v37, %v1310_v17  ;;  %v5563_v36 = vpack.i.bf16 %v5559_v56, %v5078_v6 }
 0x650   : > { %1491 = vmatpush.bf16.msra.mxu1 %v5060_v49  ;;  %v1279_v59 = vsel %vm509_vm6, %v3603_v22, %v3638_v44  ;;  %v1281_v39 = vsel %vm509_vm6, %v5450_v54, %v3639_v42  ;;  %v1416_v53 = vpack.c.bf16 %v3639_v42, %v3638_v44  ;;  %v4164_v49 = vld [vmem:[#allocation2 + $0x28] sm:$0xff]  ;;  %v5571_v44 = vld [vmem:[#allocation2 + $0x18] sm:$0xff] }
 0x651   : > { %1503 = vmatpush.bf16.msra.mxu3 %v1418_v31  ;;  %v1415_v26 = vpack.c.bf16 %v1281_v39, %v1279_v59  ;;  %v1392_v54 = vpack.c.bf16 %v4164_v49, %v5113_v45  ;;  %v5575_v27 = vpack.i.bf16 %v5571_v44, %v5113_v45 }
 0x653   : > { %1514 = vmatpush.bf16.msra.mxu2 %v1401_v8  ;;  %1528 = vmatpush.bf16.msrb.mxu0 %v1422_v34 }
 0x654   : > { %1492 = vmatmul.bf16.vlgmr.msra.gmra.mxu1 %v5454_v61 }
 0x655   : > { %1504 = vmatpush.bf16.msra.mxu3 %v1415_v26 }
 0x657   : > { %1515 = vmatpush.bf16.msra.mxu2 %v1398_v47  ;;  %1529 = vmatpush.bf16.msrb.mxu0 %v1419_v24 }
 0x658   : > { %3168 = vmatmul.msk.bf16.vlgmr.msra.gmra.mxu3 %vm1445_vm1, %v5480_v19 }
 0x65b   : > { %1516 = vmatpush.bf16.msra.mxu2 %v1395_v32  ;;  %1530 = vmatpush.bf16.msrb.mxu0 %v1416_v53 }
 0x65e   : > { %3169 = vmatmul.msk.bf16.vlgmr.msrb.gmra.mxu0 %vm1445_vm1, %v5480_v19 }
 0x65f   : > { %1517 = vmatpush.bf16.msra.mxu2 %v1392_v54 }
 0x662   : > { %1518 = vmatmul.bf16.vlgmr.msra.gmra.mxu2 %v5454_v61 }
 0x6a3   : > { %v1437_v22 = vpop.permute.xlu1 %1436 }
 0x6c3   : > { %v1480_v33 = vpop.f32.mrf.mxu0 }
 0x6c5   : > { %v1467_v29 = vpop.f32.mrf.mxu2 }
 0x6c6   : > { %v1468_v46 = vadd.f32 %v1467_v29, %v1437_v22 }
 0x6c8   : > { %v1481_v21 = vadd.f32 %v1480_v33, %v1468_v46 }
 0x6ca   : > { %v1539_v51 = vmul.f32 0.2, %v1481_v21  ;;  %vm1536_vm11 = vcmp.gt.f32.partialorder %v1481_v21, 0.0 }
 0x6cb   : > { %v1482_v60 = vpop.f32.mrf.mxu0 }
 0x6cc   : > { %v1542_v10 = vsel %vm1536_vm11, %v1481_v21, %v1539_v51  ;;  %vm7150_vm11 = vcmask 416768  }
 0x6cd   : > { %1548 = vrot.lane.b32.xlu2 %v1542_v10, %s4527_s17  ;;  %v1469_v30 = vpop.f32.mrf.mxu2 }
 0x6d1   : > { %v1493_v25 = vpop.f32.mrf.mxu1 }
 0x6d2   : > { %v1494_v40 = vadd.f32 %v1493_v25, %v1437_v22 }
 0x6d9   : > { %v1495_v55 = vpop.f32.mrf.mxu1 }
 0x6db   : > { %v1532_v20 = vpop.f32.mrf.mxu0  ;;  %v1506_v16 = vpop.f32.mrf.mxu3 }
 0x6dc   : > { %v1507_v19 = vadd.f32 %v1506_v16, %v1494_v40 }
 0x6de   : > { %v1540_v58 = vmul.f32 0.2, %v1507_v19  ;;  %vm1537_vm9 = vcmp.gt.f32.partialorder %v1507_v19, 0.0 }
 0x6e0   : > { %v1543_v61 = vsel %vm1537_vm9, %v1507_v19, %v1540_v58  ;;  %vm7151_vm9 = vcmp.eq.s32.totalorder %v4808_v41, 17 }
 0x6e1   : > { %1550 = vrot.lane.b32.xlu0 %v1543_v61, %s4527_s17 }
 0x6e3   : > { %v1534_v28 = vpop.f32.mrf.mxu0  ;;  %v1508_v38 = vpop.f32.mrf.mxu3 }
 0x6e5   : > { %v1519_v1 = vpop.f32.mrf.mxu2 }
 0x6e6   : > { %v1520_v5 = vadd.f32 %v1519_v1, %v1437_v22 }
 0x6e8   : > { %v1533_v3 = vadd.f32 %v1532_v20, %v1520_v5 }
 0x6ea   : > { %vm1538_vm1 = vcmp.gt.f32.partialorder %v1533_v3, 0.0  ;;  %v1541_v0 = vmul.f32 0.2, %v1533_v3 }
 0x6ec   : > { %v1544_v57 = vsel %vm1538_vm1, %v1533_v3, %v1541_v0  ;;  %vm7152_vm1 = vcmp.eq.s32.totalorder %v4816_v48, 0 }
 0x6ed   : > { %v1521_v43 = vpop.f32.mrf.mxu2  ;;  %1552 = vrot.lane.b32.xlu1 %v1544_v57, %s4527_s17 }
 0x727   : > { %v1549_v12 = vpop.permute.xlu2 %1548 }
 0x728   : > { %1559 = vst.msk [vmem:[#allocation2 + $0x48] sm:$0xff] %vm7149_vm3, %v1549_v12  ;;  %vm7153_vm3 = vcmp.eq.s32.totalorder %v4820_v50, 17 }
 0x72f   : > { %v1562_v63 = vld [vmem:[#allocation2 + $0x48] sm:$0xff] }
 0x730   : > { %1568 = vrot.lane.b32.xlu2 %v1562_v63, %s4528_s11 }
 0x738   : > { %1579 = vrot.lane.b32.xlu2 %v1562_v63, %s4524_s14 }
 0x740   : > { %3652 = vrot.lane.b32.xlu2 %v3651_v35, %s4525_s16 }
 0x748   : > { %3672 = vrot.lane.b32.xlu2 %v3651_v35, %s4523_s26 }
 0x753   : > { %v1551_v13 = vpop.permute.xlu0 %1550 }
 0x754   : > { %v1554_v62 = vsel %vm644_vm0, %v1549_v12, %v1551_v13 }
 0x755   : > { %1570 = vrot.lane.b32.xlu0 %v1554_v62, %s4528_s11 }
 0x75d   : > { %1581 = vrot.lane.b32.xlu0 %v1554_v62, %s4524_s14 }
 0x75f   : > { %v1553_v18 = vpop.permute.xlu1 %1552 }
 0x760   : > { %v1555_v8 = vsel %vm644_vm0, %v1551_v13, %v1553_v18 }
 0x761   : > { %1561 = vst.msk [vmem:[#allocation2 + $0x58] sm:$0xff] %vm7150_vm11, %v1555_v8  ;;  %vm7154_vm11 = vcmp.eq.s32.totalorder %v4820_v50, 0 }
 0x765   : > { %3642 = vrot.lane.b32.xlu0 %v5563_v36, %s4525_s16 }
 0x768   : > { %v1564_v42 = vld [vmem:[#allocation2 + $0x58] sm:$0xff] }
 0x769   : > { %1572 = vrot.lane.b32.xlu1 %v1564_v42, %s4528_s11 }
 0x76d   : > { %3657 = vrot.lane.b32.xlu0 %v5158_v4, %s4525_s16 }
 0x771   : > { %1583 = vrot.lane.b32.xlu1 %v1564_v42, %s4524_s14 }
 0x775   : > { %3662 = vrot.lane.b32.xlu0 %v5563_v36, %s4523_s26 }
 0x779   : > { %3647 = vrot.lane.b32.xlu1 %v5575_v27, %s4525_s16 }
 0x781   : > { %3667 = vrot.lane.b32.xlu1 %v5575_v27, %s4523_s26 }
 0x78a   : > { %v1569_v6 = vpop.permute.xlu2 %1568 }
 0x792   : > { %v1580_v15 = vpop.permute.xlu2 %1579 }
 0x79a   : > { %v3653_v22 = vpop.permute.xlu2 %3652 }
 0x79b   : > { %v3655_v51 = vunpack.i.h.bf16 %v3653_v22  ;;  %v3654_v60 = vunpack.i.l.bf16 %v3653_v22 }
 0x7a2   : > { %v5652_v28 = vpop.permute.xlu2 %3672 }
 0x7c7   : > { %v1571_v17 = vpop.permute.xlu0 %1570 }
 0x7c8   : > { %v1574_v31 = vsel %vm667_vm10, %v1569_v6, %v1571_v17 }
 0x7cf   : > { %v1582_v37 = vpop.permute.xlu0 %1581 }
 0x7d0   : > { %v1585_v34 = vsel %vm485_vm8, %v1580_v15, %v1582_v37 }
 0x7d1   : > { %v1590_v59 = vsel %vm7151_vm9, %v1574_v31, %v1585_v34  ;;  %vm7155_vm9 = vcmask 1039360  }
 0x7d2   : > { %v1593_v39 = vsel %vm443_vm13, %v1542_v10, %v1590_v59 }
 0x7d3   : > { %1600 = vrot.lane.b32.xlu2 %v1593_v39, %s4529_s20  ;;  %1596 = vst.msk [vmem:[#allocation2 + $0x48] sm:$0xff] %vm690_vm14, %v1593_v39 }
 0x7d7   : > { %v3643_v29 = vpop.permute.xlu0 %3642 }
 0x7d8   : > { %v3645_v46 = vunpack.i.h.bf16 %v3643_v29  ;;  %v3644_v21 = vunpack.i.l.bf16 %v3643_v29 }
 0x7da   : > { %v5605_v40 = vsel %vm7155_vm9, %v3644_v21, %v3645_v46  ;;  %v5788_v21 = vld [vmem:[#allocation2 + $0x40] sm:$0xff] }
 0x7db   : > { %v1573_v47 = vpop.permute.xlu1 %1572  ;;  %7166 = vst [vmem:[#allocation34_spill] sm:$0xff] %v5788_v21 }
 0x7dc   : > { %v1575_v26 = vsel %vm667_vm10, %v1571_v17, %v1573_v47 }
 0x7df   : > { %v5661_v3 = vpop.permute.xlu0 %3657 }
 0x7e3   : > { %v1584_v24 = vpop.permute.xlu1 %1583 }
 0x7e4   : > { %v1586_v32 = vsel %vm485_vm8, %v1582_v37, %v1584_v24  ;;  %v1592_v53 = vsel %vm448_vm2, %v1573_v47, %v1584_v24 }
 0x7e5   : > { %v1595_v49 = vsel %vm7152_vm1, %v1544_v57, %v1592_v53  ;;  %v1591_v54 = vsel %vm7153_vm3, %v1575_v26, %v1586_v32  ;;  %vm7156_vm1 = vmmov %vm7155_vm9  ;;  %vm7160_vm9 = vcmask 556432   ;;  %v3811_v53 = vpack.i.bf16 %v5548_v23, %v5113_v45  ;;  %v5754_v45 = vld [vmem:[#allocation2] sm:$0xff] }
 0x7e6   : > { %1604 = vrot.lane.b32.xlu1 %v1595_v49, %s4529_s20  ;;  %1614 = vrot.lane.b32.xlu2 %v1595_v49, %s4530_s15  ;;  %v1594_v33 = vsel %vm7154_vm11, %v1543_v61, %v1591_v54  ;;  %v5608_v55 = vsel %vm7156_vm1, %v3654_v60, %v3655_v51  ;;  %vm7157_vm3 = vmmov %vm7156_vm1  ;;  %7161 = vst [vmem:[#allocation29_spill] sm:$0xff] %v5754_v45  ;;  %v5774_v54 = vld [vmem:[#allocation2 + $0x10] sm:$0xff] }
 0x7e7   : > { %1602 = vrot.lane.b32.xlu0 %v1594_v33, %s4529_s20  ;;  %vm7158_vm11 = vmmov %vm7156_vm1  ;;  %v5665_v57 = vpop.permute.xlu0 %3662  ;;  %7165 = vst [vmem:[#allocation33_spill] sm:$0xff] %v5774_v54  ;;  %v5780_v33 = vpack.i.bf16 %v5571_v44, %v5774_v54  ;;  %vm7175_vm1 = vcmask 1031168  }
 0x7eb   : > { %v3648_v10 = vpop.permute.xlu1 %3647 }
 0x7ec   : > { %v3650_v30 = vunpack.i.h.bf16 %v3648_v10  ;;  %v3649_v25 = vunpack.i.l.bf16 %v3648_v10 }
 0x7ee   : > { %v5610_v20 = vpack.c.bf16 %v3655_v51, %v3649_v25  ;;  %3687 = vrot.lane.b32.xlu1 %v5575_v27, %s4524_s14  ;;  %3692 = vrot.lane.b32.xlu2 %v4878_v11, %s4524_s14  ;;  %v5617_v16 = vsel %vm7157_vm3, %v3650_v30, %v3654_v60  ;;  %v5620_v19 = vsel %vm7158_vm11, %v3645_v46, %v3649_v25  ;;  %vm7178_vm3 = vmmov %vm7175_vm1 }
 0x7ef   : > { %3677 = vrot.lane.b32.xlu0 %v5158_v4, %s4523_s26  ;;  %vm7181_vm11 = vmmov %vm7175_vm1 }
 0x7f3   : > { %v5663_v0 = vpop.permute.xlu1 %3667 }
 0x7f6   : > { %3717 = vrot.lane.b32.xlu1 %v5158_v4, %s4521_s19  ;;  %3702 = vrot.lane.b32.xlu2 %v5158_v4, %s4518_s2 }
 0x7f7   : > { %3682 = vrot.lane.b32.xlu0 %v5563_v36, %s4524_s14 }
 0x7fe   : > { %3727 = vrot.lane.b32.xlu1 %v4870_v9, %s4521_s19  ;;  %3707 = vrot.lane.b32.xlu2 %v5563_v36, %s4518_s2 }
 0x7ff   : > { %3697 = vrot.lane.b32.xlu0 %v5158_v4, %s4524_s14 }
 0x806   : > { %3737 = vrot.lane.b32.xlu1 %v5563_v36, %s4522_s25  ;;  %3732 = vrot.lane.b32.xlu2 %v5158_v4, %s4522_s25 }
 0x807   : > { %3712 = vrot.lane.b32.xlu0 %v4870_v9, %s4518_s2 }
 0x80e   : > { %3742 = vrot.lane.b32.xlu2 %v4870_v9, %s4522_s25 }
 0x80f   : > { %3722 = vrot.lane.b32.xlu0 %v5563_v36, %s4521_s19 }
 0x817   : > { %3747 = vrot.lane.b32.xlu0 %v5158_v4, %s4520_s13 }
 0x82d   : > { %v1601_v1 = vpop.permute.xlu2 %1600 }
 0x82e   : > { %1611 = vst.msk [vmem:[#allocation2 + $0x48] sm:$0xff] %vm706_vm12, %v1601_v1 }
 0x835   : > { %v5655_v5 = vld [vmem:[#allocation2 + $0x48] sm:$0xff] }
 0x836   : > { %v3751_v38 = vpack.i.bf16 %v5655_v5, %v5166_v7  ;;  %v5794_v60 = vpack.i.bf16 %v5655_v5, %v5788_v21 }
 0x838   : > { %3752 = vrot.lane.b32.xlu1 %v3751_v38, %s4525_s16  ;;  %7167 = vst [vmem:[#allocation35_spill] sm:$0xff] %v5794_v60 }
 0x840   : > { %3757 = vrot.lane.b32.xlu1 %v3751_v38, %s4523_s26  ;;  %v1615_v43 = vpop.permute.xlu2 %1614 }
 0x848   : > { %v5682_v18 = vpop.permute.xlu2 %3692 }
 0x849   : > { %v3695_v42 = vunpack.i.h.bf16 %v5682_v18  ;;  %v7018_v34 = vunpack.i.l.bf16 %v5682_v18 }
 0x84b   : > { %v5720_v26 = vsel %vm485_vm8, %v7018_v34, %v3695_v42 }
 0x858   : > { %v1605_v12 = vpop.permute.xlu1 %1604 }
 0x859   : > { %v1603_v63 = vpop.permute.xlu0 %1602 }
 0x85a   : > { %v5668_v35 = vsel %vm690_vm14, %v1601_v1, %v1603_v63  ;;  %v1607_v13 = vsel %vm690_vm14, %v1603_v63, %v1605_v12 }
 0x85b   : > { %1612 = vst [vmem:[#allocation2 + $0x50] sm:$0xff] %v5668_v35  ;;  %v5674_v62 = vpack.i.bf16 %v5668_v35, %v5655_v5 }
 0x85c   : > { %1613 = vst.msk [vmem:[#allocation2 + $0x58] sm:$0xff] %vm7053_vm15, %v1607_v13  ;;  %vm7210_vm15 = vcmask 1039360  }
 0x85d   : > { %7159 = vst [vmem:[#allocation28_spill] sm:$0xff] %v5674_v62  ;;  %3777 = vrot.lane.b32.xlu2 %v5674_v62, %s4521_s19  ;;  %3767 = vrot.lane.b32.xlu0 %v5674_v62, %s4518_s2 }
 0x85e   : > { %1617 = vst.msk [vmem:[#allocation2 + $0x58] sm:$0xff] %vm7160_vm9, %v1615_v43  ;;  %3762 = vrot.lane.b32.xlu1 %v5674_v62, %s4524_s14  ;;  %vm7182_vm9 = vmmov %vm7175_vm1 }
 0x860   : > { %v5686_v8 = vpop.permute.xlu1 %3687 }
 0x861   : > { %v3689_v6 = vunpack.i.l.bf16 %v5686_v8  ;;  %v5690_v17 = vpop.permute.xlu0 %3677  ;;  %v3690_v50 = vunpack.i.h.bf16 %v5686_v8 }
 0x863   : > { %v5692_v15 = vpack.c.bf16 %v3695_v42, %v3689_v6 }
 0x865   : > { %v5694_v37 = vld [vmem:[#allocation2 + $0x58] sm:$0xff]  ;;  %3772 = vrot.lane.b32.xlu0 %v5563_v36, %s4520_s13 }
 0x866   : > { %v5698_v31 = vpack.i.bf16 %v5694_v37, %v5668_v35  ;;  %3787 = vrot.lane.b32.xlu1 %v5674_v62, %s4520_s13  ;;  %v3801_v47 = vpack.i.bf16 %v5694_v37, %v5166_v7  ;;  %v4533_v7 = vmov 3  }
 0x867   : > { %3881 = vset.pattern.permute.xlu0 %v4533_v7 }
 0x868   : > { %3792 = vrot.lane.b32.xlu2 %v5698_v31, %s4525_s16 }
 0x869   : > { %v5707_v59 = vpop.permute.xlu0 %3682 }
 0x86a   : > { %v7019_v39 = vunpack.i.h.bf16 %v5707_v59 }
 0x86c   : > { %v5715_v24 = vsel %vm485_vm8, %v7019_v39, %v3689_v6  ;;  %v3684_v6 = vunpack.i.l.bf16 %v5707_v59 }
 0x86d   : > { %3782 = vrot.lane.b32.xlu0 %v5674_v62, %s4522_s25 }
 0x86e   : > { %3802 = vrot.lane.b32.xlu1 %v3801_v47, %s4524_s14 }
 0x870   : > { %3797 = vrot.lane.b32.xlu2 %v5698_v31, %s4523_s26 }
 0x871   : > { %v5776_v22 = vpop.permute.xlu0 %3697 }
 0x872   : > { %v7170_v13 = vunpack.i.h.bf16 %v5776_v22 }
 0x875   : > { %3842 = vrot.lane.b32.xlu0 %v3801_v47, %s4521_s19 }
 0x876   : > { %3807 = vrot.lane.b32.xlu1 %v4870_v9, %s4520_s13  ;;  %v5752_v9 = vpop.permute.xlu2 %3702 }
 0x877   : > { %v3704_v42 = vunpack.i.l.bf16 %v5752_v9  ;;  %v7168_v2 = vunpack.i.h.bf16 %v5752_v9 }
 0x878   : > { %3812 = vrot.lane.b32.xlu2 %v3811_v53, %s4518_s2 }
 0x879   : > { %v5790_v51 = vpop.permute.xlu0 %3712  ;;  %v1934_v54 = vsel %vm533_vm5, %v3704_v42, %v7168_v2 }
 0x87a   : > { %v3714_v32 = vunpack.i.l.bf16 %v5790_v51 }
 0x87d   : > { %3847 = vrot.lane.b32.xlu0 %v5698_v31, %s4519_s5 }
 0x87e   : > { %3817 = vrot.lane.b32.xlu1 %v5158_v4, %s4519_s5  ;;  %v5758_v4 = vpack.i.bf16 %v5559_v56, %v5754_v45 }
 0x880   : > { %3822 = vrot.lane.b32.xlu2 %v3751_v38, %s4519_s5  ;;  %7162 = vst [vmem:[#allocation30_spill] sm:$0xff] %v5758_v4 }
 0x881   : > { %v5802_v25 = vpop.permute.xlu0 %3722 }
 0x885   : > { %3852 = vrot.lane.b32.xlu0 %v5575_v27, %s4519_s5  ;;  %v2275_v27 = vld [vmem:[#allocation2 + $0x30] sm:$0xff] }
 0x886   : > { %3827 = vrot.lane.b32.xlu1 %v3811_v53, %s4521_s19 }
 0x888   : > { %3832 = vrot.lane.b32.xlu2 %v3801_v47, %s4518_s2 }
 0x889   : > { %v5808_v43 = vpop.permute.xlu0 %3747 }
 0x88d   : > { %3867 = vrot.lane.b32.xlu0 %v3811_v53, %s4522_s25 }
 0x88e   : > { %3857 = vrot.lane.b32.xlu1 %v4878_v11, %s4519_s5  ;;  %v5763_v11 = vld [vmem:[#allocation2 + $0x38] sm:$0xff] }
 0x88f   : > { %7163 = vst [vmem:[#allocation31_spill] sm:$0xff] %v5763_v11  ;;  %v5770_v49 = vpack.i.bf16 %v5763_v11, %v2275_v27 }
 0x890   : > { %3837 = vrot.lane.b32.xlu2 %v5563_v36, %s4519_s5  ;;  %v5767_v36 = vpop.permute.xlu1 %3717 }
 0x891   : > { %7164 = vst [vmem:[#allocation32_spill] sm:$0xff] %v5770_v49 }
 0x895   : > { %2053 = vperm.xlu0 %3881, %v5382_v52   ;;  %v5765_v52 = vpop.permute.xlu2 %3707 }
 0x896   : > { %3872 = vrot.lane.b32.xlu1 %v3801_v47, %s4520_s13  ;;  %v7169_v45 = vunpack.i.h.bf16 %v5765_v52 }
 0x898   : > { %3862 = vrot.lane.b32.xlu2 %v3801_v47, %s4522_s25  ;;  %v5784_v46 = vpop.permute.xlu1 %3727  ;;  %v3709_v47 = vunpack.i.l.bf16 %v5765_v52 }
 0x89a   : > { %v1930_v11 = vsel %vm533_vm5, %v3709_v47, %v7169_v45  ;;  %v7173_v47 = vunpack.i.h.bf16 %v5707_v59 }
 0x89d   : > { %3883 = vrot.lane.b32.xlu0 %v5758_v4, %s4525_s16  ;;  %v5782_v29 = vpop.permute.xlu2 %3732 }
 0x8a0   : > { %3877 = vrot.lane.b32.xlu2 %v3811_v53, %s4520_s13  ;;  %v5800_v30 = vpop.permute.xlu1 %3737  ;;  %v3699_v53 = vunpack.i.l.bf16 %v5776_v22 }
 0x8a2   : > { %v1758_v48 = vsel %vm485_vm8, %v3699_v53, %v7170_v13  ;;  %v1754_v13 = vsel %vm485_vm8, %v3684_v6, %v7173_v47  ;;  %v3670_v53 = vunpack.i.h.bf16 %v5663_v0 }
 0x8a5   : > { %3898 = vrot.lane.b32.xlu0 %v5770_v49, %s4525_s16  ;;  %v5798_v10 = vpop.permute.xlu2 %3742 }
 0x8aa   : > { %v5804_v1 = vpop.permute.xlu1 %3752 }
 0x8ad   : > { %3918 = vrot.lane.b32.xlu0 %v5780_v33, %s4523_s26 }
 0x8b2   : > { %v5810_v12 = vpop.permute.xlu1 %3757 }
 0x8b5   : > { %3933 = vrot.lane.b32.xlu0 %v5794_v60, %s4523_s26 }
 0x8b7   : > { %v5806_v38 = vpop.permute.xlu2 %3777 }
 0x8b8   : > { %v7037_v62 = vunpack.i.h.bf16 %v5806_v38  ;;  %v3779_v49 = vunpack.i.l.bf16 %v5806_v38 }
 0x8c2   : > { %v5812_v63 = vpop.permute.xlu2 %3792 }
 0x8ca   : > { %v5834_v21 = vpop.permute.xlu2 %3797 }
 0x8cb   : > { %v7038_v8 = vunpack.i.l.bf16 %v5834_v21 }
 0x8cf   : > { %v5820_v27 = vpop.permute.xlu0 %3767 }
 0x8d0   : > { %v5824_v58 = vpop.permute.xlu1 %3762  ;;  %v7036_v34 = vunpack.i.h.bf16 %v5820_v27  ;;  %v3769_v39 = vunpack.i.l.bf16 %v5820_v27 }
 0x8d1   : > { %v3764_v7 = vunpack.i.l.bf16 %v5824_v58  ;;  %v7171_v41 = vunpack.i.h.bf16 %v5824_v58 }
 0x8d2   : > { %v1936_v61 = vsel %vm533_vm5, %v3769_v39, %v7036_v34  ;;  %v7172_v34 = vunpack.i.h.bf16 %v5790_v51  ;;  %v5896_v4 = vpop.permute.xlu2 %3812 }
 0x8d3   : > { %v1760_v2 = vsel %vm485_vm8, %v3764_v7, %v7171_v41  ;;  %v2039_v42 = vpack.c.bf16 %v1936_v61, %v1934_v54  ;;  %v3719_v61 = vunpack.i.l.bf16 %v5767_v36  ;;  %v3760_v54 = vunpack.i.h.bf16 %v5810_v12 }
 0x8d4   : > { %v2015_v39 = vpack.c.bf16 %v1760_v2, %v1758_v48  ;;  %v1932_v45 = vsel %vm533_vm5, %v3714_v32, %v7172_v34  ;;  %v3679_v48 = vunpack.i.l.bf16 %v5690_v17  ;;  %v7174_v34 = vunpack.i.l.bf16 %v5682_v18 }
 0x8d5   : > { %2083 = vmatpush.bf16.msrb.mxu3 %v2039_v42  ;;  %v2036_v59 = vpack.c.bf16 %v1932_v45, %v1930_v11  ;;  %v3724_v2 = vunpack.i.l.bf16 %v5802_v25  ;;  %v3664_v18 = vunpack.i.l.bf16 %v5665_v57  ;;  %v3729_v45 = vunpack.i.l.bf16 %v5784_v46 }
 0x8d6   : > { %2070 = vmatpush.bf16.msrb.mxu1 %v2015_v39  ;;  %v1756_v32 = vsel %vm485_vm8, %v3690_v50, %v7174_v34  ;;  %v1892_v39 = vsel %vm521_vm4, %v3779_v49, %v7037_v62  ;;  %v1716_v50 = vsel %vm7175_vm1, %v3760_v54, %v7038_v8  ;;  %v7041_v34 = vunpack.i.l.bf16 %v5652_v28 }
 0x8d7   : > { %v5863_v7 = vpop.permute.xlu0 %3772  ;;  %v2012_v47 = vpack.c.bf16 %v1756_v32, %v1754_v13  ;;  %v7176_v13 = vunpack.i.h.bf16 %v5767_v36  ;;  %v7177_v32 = vunpack.i.h.bf16 %v5690_v17  ;;  %v7042_v41 = vunpack.i.h.bf16 %v5661_v3 }
 0x8d8   : > { %v5870_v42 = vpop.permute.xlu1 %3787  ;;  %v7179_v54 = vunpack.i.h.bf16 %v5802_v25  ;;  %v7043_v11 = vunpack.i.l.bf16 %v5812_v63  ;;  %vm7184_vm1 = vcmask 1039360  }
 0x8d9   : > { %2084 = vmatpush.bf16.msrb.mxu3 %v2036_v59  ;;  %v1890_v49 = vsel %vm521_vm4, %v3719_v61, %v7176_v13  ;;  %v1714_v62 = vsel %vm7178_vm3, %v3679_v48, %v7177_v32  ;;  %v7180_v61 = vunpack.i.h.bf16 %v5665_v57  ;;  %v1712_v48 = vsel %vm7182_vm9, %v3670_v53, %v7041_v34  ;;  %vm7185_vm3 = vmmov %vm7184_vm1 }
 0x8da   : > { %2071 = vmatpush.bf16.msrb.mxu1 %v2012_v47  ;;  %v2033_v59 = vpack.c.bf16 %v1892_v39, %v1890_v49  ;;  %v2009_v6 = vpack.c.bf16 %v1716_v50, %v1714_v62  ;;  %v1886_v8 = vsel %vm521_vm4, %v3724_v2, %v7179_v54  ;;  %v3659_v47 = vunpack.i.l.bf16 %v5661_v3 }
 0x8db   : > { %v1710_v13 = vsel %vm7181_vm11, %v3664_v18, %v7180_v61  ;;  %v3734_v39 = vunpack.i.l.bf16 %v5782_v29  ;;  %v7183_v2 = vunpack.i.h.bf16 %v5784_v46  ;;  %v3739_v32 = vunpack.i.l.bf16 %v5800_v30  ;;  %vm7192_vm11 = vmmov %vm7182_vm9 }
 0x8dc   : > { %v3744_v49 = vunpack.i.l.bf16 %v5798_v10 }
 0x8dd   : > { %2085 = vmatpush.bf16.msrb.mxu3 %v2033_v59  ;;  %v1888_v50 = vsel %vm521_vm4, %v3729_v45, %v7183_v2  ;;  %v3755_v59 = vunpack.i.h.bf16 %v5804_v1  ;;  %v1670_v2 = vsel %vm7184_vm1, %v3659_v47, %v7042_v41  ;;  %v7187_v47 = vunpack.i.h.bf16 %v5776_v22  ;;  %vm7197_vm1 = vmmov %vm7182_vm9 }
 0x8de   : > { %2072 = vmatpush.bf16.msrb.mxu1 %v2009_v6  ;;  %v2030_v54 = vpack.c.bf16 %v1888_v50, %v1886_v8  ;;  %v2006_v6 = vpack.c.bf16 %v1712_v48, %v1710_v13  ;;  %v7186_v13 = vunpack.i.h.bf16 %v5782_v29  ;;  %v7189_v50 = vunpack.i.h.bf16 %v5800_v30 }
 0x8df   : > { %v5912_v18 = vpop.permute.xlu0 %3782  ;;  %v1672_v8 = vsel %vm7185_vm3, %v3755_v59, %v7043_v11  ;;  %v7188_v59 = vunpack.i.h.bf16 %v5824_v58  ;;  %v7050_v22 = vunpack.i.h.bf16 %v5834_v21  ;;  %v3749_v58 = vunpack.i.l.bf16 %v5808_v43  ;;  %vm7199_vm3 = vmmov %vm7197_vm1 }
 0x8e0   : > { %v5914_v61 = vpop.permute.xlu1 %3802  ;;  %v7044_v53 = vunpack.i.h.bf16 %v5912_v18  ;;  %v3784_v34 = vunpack.i.l.bf16 %v5912_v18  ;;  %v1846_v48 = vsel %vm509_vm6, %v3734_v39, %v7186_v13  ;;  %v1842_v39 = vsel %vm509_vm6, %v3739_v32, %v7189_v50 }
 0x8e1   : > { %v7048_v62 = vunpack.i.h.bf16 %v5914_v61  ;;  %v7049_v45 = vunpack.i.l.bf16 %v5914_v61  ;;  %2086 = vmatpush.bf16.msrb.mxu3 %v2030_v54  ;;  %v7047_v13 = vunpack.i.h.bf16 %v5870_v42  ;;  %v2003_v60 = vpack.c.bf16 %v1672_v8, %v1670_v2 }
 0x8e2   : > { %2073 = vmatpush.bf16.msrb.mxu1 %v2006_v6  ;;  %v1848_v54 = vsel %vm509_vm6, %v3784_v34, %v7044_v53  ;;  %v3789_v34 = vunpack.i.l.bf16 %v5870_v42  ;;  %v3669_v32 = vunpack.i.l.bf16 %v5663_v0  ;;  %v3759_v50 = vunpack.i.l.bf16 %v5810_v12  ;;  %v2049_v12 = vld [vmem:[#allocation11 + $0x8] sm:$0xf] }
 0x8e3   : > { %v1759_v41 = vsel %vm485_vm8, %v7187_v47, %v7049_v45  ;;  %v1761_v6 = vsel %vm485_vm8, %v7188_v59, %v7048_v62  ;;  %v2027_v11 = vpack.c.bf16 %v1848_v54, %v1846_v48  ;;  %v7052_v47 = vunpack.i.h.bf16 %v5808_v43  ;;  %v5957_v59 = vpop.permute.xlu2 %3822  ;;  %v2048_v62 = vld [vmem:[#allocation11] sm:$0xff] }
 0x8e4   : > { %v2016_v53 = vpack.c.bf16 %v1761_v6, %v1759_v41  ;;  %v7190_v48 = vunpack.i.h.bf16 %v5798_v10  ;;  %v7191_v6 = vunpack.i.l.bf16 %v5834_v21  ;;  %v3795_v45 = vunpack.i.h.bf16 %v5812_v63 }
 0x8e5   : > { %2087 = vmatpush.bf16.msrb.mxu3 %v2027_v11  ;;  %v3815_v0 = vunpack.i.h.bf16 %v5896_v4 }
 0x8e6   : > { %2074 = vmatpush.bf16.msrb.mxu1 %v2003_v60  ;;  %2109 = vmatpush.bf16.msrb.mxu2 %v2016_v53  ;;  %v1844_v54 = vsel %vm509_vm6, %v3744_v49, %v7190_v48  ;;  %v1804_v60 = vsel %vm497_vm7, %v3789_v34, %v7047_v13  ;;  %v3675_v53 = vunpack.i.h.bf16 %v5652_v28  ;;  %v1717_v48 = vsel %vm7192_vm11, %v7191_v6, %v7050_v22 }
 0x8e7   : > { %v5959_v41 = vpop.permute.xlu0 %3842  ;;  %v2024_v2 = vpack.c.bf16 %v1844_v54, %v1842_v39  ;;  %v3774_v54 = vunpack.i.l.bf16 %v5863_v7  ;;  %v7193_v34 = vpack.c.bf16 %v5617_v16, %v5605_v40  ;;  %v7194_v13 = vpack.c.bf16 %v5720_v26, %v5715_v24  ;;  %v4168_v24 = vld [vmem:[#allocation2 + $0x30] sm:$0xff] }
 0x8e8   : > { %v5961_v11 = vpop.permute.xlu1 %3807  ;;  %v7195_v22 = vunpack.i.h.bf16 %v5690_v17  ;;  %v7196_v40 = vunpack.i.h.bf16 %v5665_v57  ;;  %v1997_v26 = vpack.c.bf16 %v5655_v5, %v4168_v24  ;;  %v7198_v17 = vunpack.i.l.bf16 %v5652_v28  ;;  %v4169_v57 = vld [vmem:[#allocation2] sm:$0xff] }
 0x8e9   : > { %v7051_v8 = vunpack.i.h.bf16 %v5961_v11  ;;  %v3809_v49 = vunpack.i.l.bf16 %v5961_v11  ;;  %2088 = vmatpush.bf16.msrb.mxu3 %v2024_v2  ;;  %v1802_v2 = vsel %vm497_vm7, %v3749_v58, %v7052_v47  ;;  %v7200_v5 = vunpack.i.h.bf16 %v5863_v7 }
 0x8ea   : > { %2075 = vmatpush.bf16.msrb.mxu1 %v7193_v34  ;;  %2110 = vmatpush.bf16.msrb.mxu2 %v7194_v13  ;;  %v2021_v6 = vpack.c.bf16 %v1804_v60, %v1802_v2  ;;  %v1715_v39 = vsel %vm7182_vm9, %v7195_v22, %v3759_v50  ;;  %v1711_v16 = vsel %vm7197_vm1, %v7196_v40, %v3669_v32  ;;  %v2059_v60 = vunpack.c.h.b16 %v2048_v62 }
 0x8eb   : > { %v2010_v13 = vpack.c.bf16 %v1717_v48, %v1715_v39  ;;  %v1800_v58 = vsel %vm497_vm7, %v3809_v49, %v7051_v8  ;;  %v1713_v22 = vsel %vm7199_vm3, %v7198_v17, %v3675_v53  ;;  %v2058_v34 = vunpack.c.l.b16 %v2048_v62 }
 0x8ec   : > { %v1994_v2 = vpack.c.bf16 %v5571_v44, %v4169_v57  ;;  %v1798_v48 = vsel %vm497_vm7, %v3774_v54, %v7200_v5  ;;  %v2007_v39 = vpack.c.bf16 %v1713_v22, %v1711_v16  ;;  %v3754_v49 = vunpack.i.l.bf16 %v5804_v1  ;;  %v6019_v54 = vpop.permute.xlu2 %3832 }
 0x8ed   : > { %2089 = vmatpush.bf16.msrb.mxu3 %v2021_v6  ;;  %v3825_v6 = vunpack.i.h.bf16 %v5957_v59  ;;  %v2018_v24 = vpack.c.bf16 %v1800_v58, %v1798_v48  ;;  %v7201_v62 = vunpack.i.l.bf16 %v5812_v63  ;;  %vm7202_vm11 = vcmask 1039360  }
 0x8ee   : > { %2076 = vmatpush.bf16.msrb.mxu1 %v1997_v26  ;;  %2111 = vmatpush.bf16.msrb.mxu2 %v2010_v13  ;;  %v3824_v13 = vunpack.i.l.bf16 %v5957_v59  ;;  %v6017_v8 = vpack.c.b16 %v2059_v60, %v2059_v60  ;;  %v7203_v1 = vunpack.i.l.bf16 %v5914_v61  ;;  %v7204_v16 = vunpack.i.h.bf16 %v5914_v61 }
 0x8ef   : > { %v3848_v40 = vpop.permute.xlu0 %3847  ;;  %v1673_v26 = vsel %vm7202_vm11, %v7201_v62, %v3795_v45  ;;  %v6025_v48 = vpack.c.b16 %v2058_v34, %v2058_v34  ;;  %vm7205_vm9 = vcmask 736256   ;;  %v7209_v47 = vunpack.i.h.bf16 %v5661_v3 }
 0x8f0   : > { %v3818_v44 = vpop.permute.xlu1 %3817  ;;  %v3850_v17 = vunpack.i.h.bf16 %v3848_v40  ;;  %v3849_v57 = vunpack.i.l.bf16 %v3848_v40  ;;  %v2017_v58 = vpack.c.bf16 %v7204_v16, %v7203_v1  ;;  %vm7206_vm1 = vmmov %vm7205_vm9  ;;  %v7211_v3 = vunpack.i.h.bf16 %v5834_v21 }
 0x8f1   : > { %v3820_v22 = vunpack.i.h.bf16 %v3818_v44  ;;  %v3819_v5 = vunpack.i.l.bf16 %v3818_v44  ;;  %2090 = vmatpush.bf16.msrb.mxu3 %v2018_v24  ;;  %vm7207_vm3 = vmmov %vm7206_vm1  ;;  %v1671_v61 = vsel %vm7210_vm15, %v7209_v47, %v3754_v49  ;;  %v7212_v47 = vpack.c.bf16 %v5608_v55, %v5620_v19 }
 0x8f2   : > { %v1980_v62 = vsel %vm7205_vm9, %v3825_v6, %v3849_v57  ;;  %2077 = vmatpush.bf16.msrb.mxu1 %v1994_v2  ;;  %2112 = vmatpush.bf16.msrb.mxu2 %v2007_v39  ;;  %vm7208_vm11 = vmmov %vm7206_vm1  ;;  %v2004_v24 = vpack.c.bf16 %v1673_v26, %v1671_v61  ;;  %v2011_v2 = vpack.c.bf16 %v7211_v3, %v3759_v50  ;;  %v3835_v21 = vunpack.i.h.bf16 %v6019_v54 }
 0x8f3   : > { %v1979_v59 = vsel %vm7206_vm1, %v3820_v22, %v3824_v13  ;;  %v1978_v60 = vsel %vm7207_vm3, %v3819_v5, %v3820_v22  ;;  %v1981_v40 = vsel %vm7208_vm11, %v3849_v57, %v3850_v17  ;;  %v4170_v57 = vld [vmem:[#allocation2 + $0x38] sm:$0xff]  ;;  %v3834_v50 = vunpack.i.l.bf16 %v6019_v54  ;;  %vm7213_vm15 = vmmov %vm7206_vm1 }
 0x8f4   : > { %v2045_v1 = vpack.c.bf16 %v1980_v62, %v1978_v60  ;;  %v2046_v44 = vpack.c.bf16 %v1981_v40, %v1979_v59  ;;  %2091 = vmatmul.bf16.vlgmr.msrb.gmra.mxu3 %v6017_v8  ;;  %v3838_v39 = vpop.permute.xlu2 %3837  ;;  %v1998_v16 = vpack.c.bf16 %v5668_v35, %v4170_v57  ;;  %v2005_v55 = vpack.c.bf16 %v3795_v45, %v3754_v49  ;;  %vm7216_vm9 = vmmov %vm7206_vm1 }
 0x8f5   : > { %2148 = vmatpush.bf16.msra.mxu3 %v2017_v58  ;;  %2078 = vmatmul.bf16.vlgmr.msrb.gmra.mxu1 %v6025_v48  ;;  %v3839_v6 = vunpack.i.l.bf16 %v3838_v39  ;;  %v3840_v58 = vunpack.i.h.bf16 %v3838_v39  ;;  %v1995_v35 = vpack.c.bf16 %v5546_v14, %v5559_v56  ;;  %v3814_v28 = vunpack.i.l.bf16 %v5896_v4  ;;  %vm7217_vm3 = vmmov %vm7206_vm1 }
 0x8f6   : > { %2102 = vmatpush.bf16.msra.mxu0 %v2045_v1  ;;  %2113 = vmatpush.bf16.msrb.mxu2 %v2004_v24  ;;  %v2060_v22 = vunpack.c.l.b16 %v2049_v12  ;;  %v2047_v5 = vpack.c.bf16 %v3850_v17, %v3824_v13  ;;  %v7214_v63 = vunpack.i.h.bf16 %v5752_v9  ;;  %v7215_v49 = vunpack.i.h.bf16 %v5820_v27 }
 0x8f7   : > { %2141 = vmatpush.bf16.msra.mxu1 %v2046_v44  ;;  %v3853_v26 = vpop.permute.xlu0 %3852  ;;  %v7218_v40 = vunpack.i.h.bf16 %v5765_v52  ;;  %v2041_v1 = vpack.c.bf16 %v3835_v21, %v3834_v50  ;;  %v7219_v44 = vunpack.i.h.bf16 %v5790_v51  ;;  %v3845_v3 = vunpack.i.h.bf16 %v5959_v41  ;;  %v4171_v51 = vld [vmem:[#allocation2 + $0x40] sm:$0xff] }
 0x8f8   : > { %v6037_v34 = vpop.permute.xlu1 %3827  ;;  %v3854_v19 = vunpack.i.l.bf16 %v3853_v26  ;;  %v3855_v54 = vunpack.i.h.bf16 %v3853_v26  ;;  %v1935_v45 = vsel %vm533_vm5, %v7214_v63, %v3834_v50  ;;  %v1937_v14 = vsel %vm533_vm5, %v7215_v49, %v3835_v21  ;;  %v4172_v50 = vld [vmem:[#allocation2 + $0x10] sm:$0xff] }
 0x8f9   : > { %2149 = vmatpush.bf16.msra.mxu3 %v5692_v15  ;;  %v2008_v15 = vpack.c.bf16 %v3675_v53, %v3669_v32  ;;  %v1974_v53 = vsel %vm7213_vm15, %v3839_v6, %v3840_v58  ;;  %v1931_v9 = vsel %vm533_vm5, %v7218_v40, %v3814_v28  ;;  %v2040_v61 = vpack.c.bf16 %v1937_v14, %v1935_v45 }
 0x8fa   : > { %2114 = vmatpush.bf16.msrb.mxu2 %v7212_v47  ;;  %v1975_v4 = vsel %vm7206_vm1, %v3840_v58, %v3854_v19  ;;  %v2063_v27 = vpack.c.b16 %v2060_v22, %v2060_v22  ;;  %v1933_v24 = vsel %vm533_vm5, %v7219_v44, %v3815_v0  ;;  %vm2066_vm11 = vcmask 261120  }
 0x8fb   : > { %v2038_v52 = vpack.c.bf16 %v3815_v0, %v3814_v28  ;;  %v2037_v39 = vpack.c.bf16 %v1933_v24, %v1931_v9  ;;  %v1999_v6 = vpack.c.bf16 %v5694_v37, %v4171_v51  ;;  %v3829_v57 = vunpack.i.l.bf16 %v6037_v34 }
 0x8fc   : > { %v3863_v26 = vpop.permute.xlu2 %3862  ;;  %v1996_v58 = vpack.c.bf16 %v5548_v23, %v4172_v50  ;;  %v7226_v49 = vunpack.i.h.bf16 %v5800_v30  ;;  %v7229_v9 = vunpack.i.h.bf16 %v5870_v42  ;;  %v7231_v44 = vunpack.i.h.bf16 %v5961_v11 }
 0x8fd   : > { %2150 = vmatpush.bf16.msra.mxu3 %v2011_v2  ;;  %v3844_v2 = vunpack.i.l.bf16 %v5959_v41  ;;  %v3830_v41 = vunpack.i.h.bf16 %v6037_v34  ;;  %v3864_v21 = vunpack.i.l.bf16 %v3863_v26  ;;  %v7222_v34 = vunpack.i.h.bf16 %v5802_v25 }
 0x8fe   : > { %2115 = vmatpush.bf16.msrb.mxu2 %v1998_v16  ;;  %v7220_v16 = vunpack.i.h.bf16 %v5767_v36  ;;  %v7225_v25 = vunpack.i.h.bf16 %v5912_v18 }
 0x8ff   : > { %v1887_v36 = vsel %vm521_vm4, %v7222_v34, %v3829_v57  ;;  %v3868_v0 = vpop.permute.xlu0 %3867  ;;  %v2032_v23 = vpack.c.bf16 %v3830_v41, %v3829_v57 }
 0x900   : > { %v3858_v32 = vpop.permute.xlu1 %3857  ;;  %v3870_v22 = vunpack.i.h.bf16 %v3868_v0 }
 0x901   : > { %2151 = vmatpush.bf16.msra.mxu3 %v2008_v15  ;;  %v3860_v62 = vunpack.i.h.bf16 %v3858_v32  ;;  %v3859_v59 = vunpack.i.l.bf16 %v3858_v32  ;;  %v7221_v15 = vunpack.i.h.bf16 %v5806_v38  ;;  %v7224_v32 = vunpack.i.h.bf16 %v5782_v29 }
 0x902   : > { %2116 = vmatpush.bf16.msrb.mxu2 %v1995_v35  ;;  %v7223_v35 = vunpack.i.h.bf16 %v5784_v46 }
 0x903   : > { %v1976_v56 = vsel %vm7216_vm9, %v3855_v54, %v3859_v59  ;;  %v1977_v13 = vsel %vm7217_vm3, %v3859_v59, %v3860_v62  ;;  %v2044_v47 = vpack.c.bf16 %v3860_v62, %v3854_v19  ;;  %v1893_v12 = vsel %vm521_vm4, %v7221_v15, %v3845_v3 }
 0x904   : > { %v2042_v17 = vpack.c.bf16 %v1976_v56, %v1974_v53  ;;  %v2043_v60 = vpack.c.bf16 %v1977_v13, %v1975_v4  ;;  %v3865_v19 = vunpack.i.h.bf16 %v3863_v26  ;;  %v1889_v38 = vsel %vm521_vm4, %v7223_v35, %v3830_v41  ;;  %v3878_v63 = vpop.permute.xlu2 %3877 }
 0x905   : > { %2152 = vmatpush.bf16.msra.mxu3 %v2005_v55  ;;  %2117 = vmatmul.bf16.vlgmr.msrb.gmra.mxu2 %v6025_v48  ;;  %v2035_v55 = vpack.c.bf16 %v3845_v3, %v3844_v2  ;;  %v2031_v28 = vpack.c.bf16 %v1889_v38, %v1887_v36  ;;  %v1847_v53 = vsel %vm509_vm6, %v7224_v32, %v3864_v21  ;;  %v3880_v56 = vunpack.i.h.bf16 %v3878_v63 }
 0x906   : > { %2180 = vmatpush.bf16.msra.mxu2 %v2047_v5  ;;  %2103 = vmatpush.bf16.msra.mxu0 %v2042_v17  ;;  %v3869_v5 = vunpack.i.l.bf16 %v3868_v0  ;;  %v1849_v46 = vsel %vm509_vm6, %v7225_v25, %v3865_v19  ;;  %v2029_v62 = vpack.c.bf16 %v3865_v19, %v3864_v21  ;;  %v3879_v13 = vunpack.i.l.bf16 %v3878_v63  ;;  %v6137_v25 = vld [vmem:[#allocation2 + $0x20] sm:$0xff] }
 0x907   : > { %2142 = vmatpush.bf16.msra.mxu1 %v2043_v60  ;;  %v2028_v59 = vpack.c.bf16 %v1849_v46, %v1847_v53  ;;  %v7228_v60 = vunpack.i.h.bf16 %v5808_v43  ;;  %v1801_v24 = vsel %vm497_vm7, %v7231_v44, %v3880_v56  ;;  %v6139_v46 = vld [vmem:[#allocation2 + $0x28] sm:$0xff]  ;;  %vm7235_vm3 = vcmask 1047704  }
 0x908   : > { %v3873_v54 = vpop.permute.xlu1 %3872  ;;  %v1843_v14 = vsel %vm509_vm6, %v7226_v49, %v3869_v5  ;;  %v2026_v17 = vpack.c.bf16 %v3870_v22, %v3869_v5  ;;  %v2020_v3 = vpack.c.bf16 %v3880_v56, %v3879_v13  ;;  %v7234_v63 = vld [vmem:[#allocation32_spill] sm:$0xff] }
 0x909   : > { %2153 = vmatpush.bf16.msra.mxu3 %v5610_v20  ;;  %3170 = vmatmul.msk.bf16.vlgmr.msra.gmra.mxu0 %vm2066_vm11, %v2063_v27  ;;  %v1891_v20 = vsel %vm521_vm4, %v7220_v16, %v3844_v2  ;;  %v3875_v29 = vunpack.i.h.bf16 %v3873_v54  ;;  %v3874_v45 = vunpack.i.l.bf16 %v3873_v54  ;;  %v3892_v54 = vpack.i.bf16 %v6139_v46, %v6137_v25 }
 0x90a   : > { %2122 = vmatpush.bf16.msrb.mxu0 %v2040_v61  ;;  %2181 = vmatpush.bf16.msra.mxu2 %v2044_v47  ;;  %v2034_v37 = vpack.c.bf16 %v1893_v12, %v1891_v20 }
 0x90b   : > { %2161 = vmatpush.bf16.msrb.mxu1 %v2041_v1  ;;  %v1803_v40 = vsel %vm497_vm7, %v7228_v60, %v3874_v45  ;;  %v1805_v30 = vsel %vm497_vm7, %v7229_v9, %v3875_v29  ;;  %v7230_v1 = vunpack.i.h.bf16 %v5863_v7  ;;  %v2054_v7 = vpop.permute.xlu0 %2053 }
 0x90c   : > { %3171 = vmatmul.msk.bf16.vlgmr.msra.gmra.mxu1 %vm2066_vm11, %v2063_v27  ;;  %v2022_v61 = vpack.c.bf16 %v1805_v30, %v1803_v40 }
 0x90d   : > { %2154 = vmatpush.bf16.msra.mxu3 %v1999_v6 }
 0x90e   : > { %2123 = vmatpush.bf16.msrb.mxu0 %v2037_v39 }
 0x90f   : > { %2162 = vmatpush.bf16.msrb.mxu1 %v2038_v52 }
 0x911   : > { %2155 = vmatpush.bf16.msra.mxu3 %v1996_v58 }
 0x912   : > { %2124 = vmatpush.bf16.msrb.mxu0 %v2034_v37 }
 0x913   : > { %2163 = vmatpush.bf16.msrb.mxu1 %v2035_v55 }
 0x914   : > { %2156 = vmatmul.bf16.vlgmr.msra.gmra.mxu3 %v6025_v48  ;;  %v7227_v48 = vunpack.i.h.bf16 %v5798_v10  ;;  %v2023_v10 = vpack.c.bf16 %v3875_v29, %v3874_v45 }
 0x915   : > { %3172 = vmatmul.msk.bf16.vlgmr.msra.gmra.mxu2 %vm2066_vm11, %v2063_v27  ;;  %v1799_v27 = vsel %vm497_vm7, %v7230_v1, %v3879_v13 }
 0x916   : > { %2125 = vmatpush.bf16.msrb.mxu0 %v2031_v28  ;;  %v1845_v18 = vsel %vm509_vm6, %v7227_v48, %v3870_v22  ;;  %v2019_v43 = vpack.c.bf16 %v1801_v24, %v1799_v27  ;;  %v6159_v48 = vpop.permute.xlu0 %3883  ;;  %v6180_v27 = vld [vmem:[#allocation2 + $0x18] sm:$0xff] }
 0x917   : > { %2164 = vmatpush.bf16.msrb.mxu1 %v2032_v23  ;;  %v2025_v4 = vpack.c.bf16 %v1845_v18, %v1843_v14  ;;  %v6184_v44 = vpack.i.bf16 %v6137_v25, %v6180_v27 }
 0x91a   : > { %2126 = vmatpush.bf16.msrb.mxu0 %v2028_v59  ;;  %v7233_v59 = vld [vmem:[#allocation30_spill] sm:$0xff] }
 0x91b   : > { %2165 = vmatpush.bf16.msrb.mxu1 %v2029_v62  ;;  %v7232_v62 = vld [vmem:[#allocation35_spill] sm:$0xff] }
 0x91e   : > { %2127 = vmatpush.bf16.msrb.mxu0 %v2025_v4  ;;  %v3899_v56 = vpop.permute.xlu0 %3898 }
 0x91f   : > { %2166 = vmatpush.bf16.msrb.mxu1 %v2026_v17  ;;  %v3900_v1 = vunpack.i.l.bf16 %v3899_v56 }
 0x922   : > { %2128 = vmatpush.bf16.msrb.mxu0 %v2022_v61 }
 0x923   : > { %2167 = vmatpush.bf16.msrb.mxu1 %v2023_v10  ;;  %v3901_v10 = vunpack.i.h.bf16 %v3899_v56 }
 0x926   : > { %2129 = vmatpush.bf16.msrb.mxu0 %v2019_v43  ;;  %v3919_v13 = vpop.permute.xlu0 %3918 }
 0x927   : > { %2168 = vmatpush.bf16.msrb.mxu1 %v2020_v3  ;;  %v3920_v60 = vunpack.i.l.bf16 %v3919_v13 }
 0x929   : > { %2130 = vmatmul.bf16.vlgmr.msrb.gmra.mxu0 %v6017_v8 }
 0x92a   : > { %2169 = vmatmul.bf16.vlgmr.msrb.gmra.mxu1 %v6017_v8 }
 0x972   : > { %v2079_v42 = vpop.f32.mrf.mxu1 }
 0x973   : > { %v2080_v52 = vadd.f32 %v2079_v42, %v2054_v7 }
 0x977   : > { %v2092_v2 = vpop.f32.mrf.mxu3 }
 0x978   : > { %v2093_v51 = vadd.f32 %v2092_v2, %v2080_v52 }
 0x97a   : > { %v2081_v47 = vpop.f32.mrf.mxu1 }
 0x97f   : > { %v2094_v39 = vpop.f32.mrf.mxu3 }
 0x986   : > { %v2105_v11 = vpop.f32.mrf.mxu0 }
 0x987   : > { %v2106_v26 = vadd.f32 %v2105_v11, %v2093_v51 }
 0x988   : > { %v2118_v41 = vpop.f32.mrf.mxu2 }
 0x989   : > { %v2144_v6 = vpop.f32.mrf.mxu1  ;;  %vm2187_vm15 = vcmp.gt.f32.partialorder %v2106_v26, 0.0  ;;  %v2190_v57 = vmul.f32 0.2, %v2106_v26  ;;  %v2119_v58 = vadd.f32 %v2118_v41, %v2054_v7 }
 0x98b   : > { %v6125_v16 = vsel %vm2187_vm15, %v2106_v26, %v2190_v57  ;;  %vm7236_vm15 = vcmask 416768  }
 0x98c   : > { %2199 = vrot.lane.b32.xlu1 %v6125_v16, %s4527_s17 }
 0x98e   : > { %v2107_v8 = vpop.f32.mrf.mxu0 }
 0x990   : > { %v2120_v15 = vpop.f32.mrf.mxu2 }
 0x991   : > { %v2146_v20 = vpop.f32.mrf.mxu1 }
 0x997   : > { %v2157_v12 = vpop.f32.mrf.mxu3 }
 0x998   : > { %v2183_v21 = vpop.f32.mrf.mxu2  ;;  %v2158_v55 = vadd.f32 %v2157_v12, %v2054_v7 }
 0x99f   : > { %v2159_v37 = vpop.f32.mrf.mxu3 }
 0x9a0   : > { %v2185_v50 = vpop.f32.mrf.mxu2  ;;  %v3921_v37 = vunpack.i.h.bf16 %v3919_v13 }
 0x9a6   : > { %v2131_v19 = vpop.f32.mrf.mxu0 }
 0x9a7   : > { %v2132_v34 = vadd.f32 %v2131_v19, %v2119_v58  ;;  %v2170_v36 = vpop.f32.mrf.mxu1 }
 0x9a8   : > { %v2171_v35 = vadd.f32 %v2170_v36, %v2158_v55 }
 0x9a9   : > { %v2145_v38 = vadd.f32 %v2144_v6, %v2132_v34 }
 0x9aa   : > { %v2184_v0 = vadd.f32 %v2183_v21, %v2171_v35 }
 0x9ab   : > { %v2191_v28 = vmul.f32 0.2, %v2145_v38  ;;  %vm2188_vm9 = vcmp.gt.f32.partialorder %v2145_v38, 0.0 }
 0x9ac   : > { %v2192_v32 = vmul.f32 0.2, %v2184_v0  ;;  %vm2189_vm1 = vcmp.gt.f32.partialorder %v2184_v0, 0.0 }
 0x9ad   : > { %v6129_v53 = vsel %vm2188_vm9, %v2145_v38, %v2191_v28  ;;  %vm7237_vm9 = vcmask 1031168  }
 0x9ae   : > { %2201 = vrot.lane.b32.xlu2 %v6129_v53, %s4527_s17  ;;  %v6133_v23 = vsel %vm2189_vm1, %v2184_v0, %v2192_v32  ;;  %v2133_v22 = vpop.f32.mrf.mxu0  ;;  %v7248_v0 = vld [vmem:[#allocation28_spill] sm:$0xff] }
 0x9af   : > { %v2172_v5 = vpop.f32.mrf.mxu1  ;;  %2203 = vrot.lane.b32.xlu1 %v6133_v23, %s4527_s17  ;;  %v6258_v22 = vpop.permute.xlu0 %3933 }
 0x9b6   : > { %3893 = vrot.lane.b32.xlu2 %v3892_v54, %s4525_s16 }
 0x9b7   : > { %3888 = vrot.lane.b32.xlu1 %v5780_v33, %s4525_s16 }
 0x9be   : > { %3908 = vrot.lane.b32.xlu2 %v5698_v31, %s4525_s16 }
 0x9bf   : > { %3903 = vrot.lane.b32.xlu1 %v7232_v62, %s4525_s16 }
 0x9c6   : > { %3913 = vrot.lane.b32.xlu2 %v7233_v59, %s4523_s26 }
 0x9c7   : > { %3923 = vrot.lane.b32.xlu1 %v3892_v54, %s4523_s26 }
 0x9ce   : > { %3928 = vrot.lane.b32.xlu2 %v7234_v63, %s4523_s26 }
 0x9cf   : > { %3938 = vrot.lane.b32.xlu1 %v5698_v31, %s4523_s26 }
 0x9fe   : > { %v2200_v29 = vpop.permute.xlu1 %2199 }
 0x9ff   : > { %2210 = vst.msk [vmem:[#allocation2 + $0x60] sm:$0xff] %vm7235_vm3, %v2200_v29 }
 0xa06   : > { %v2213_v14 = vld [vmem:[#allocation2 + $0x60] sm:$0xff] }
 0xa07   : > { %2219 = vrot.lane.b32.xlu2 %v2213_v14, %s4528_s11 }
 0xa08   : > { %v2202_v45 = vpop.permute.xlu2 %2201 }
 0xa09   : > { %v2205_v49 = vsel %vm644_vm0, %v2200_v29, %v2202_v45 }
 0xa0a   : > { %2221 = vrot.lane.b32.xlu0 %v2205_v49, %s4528_s11 }
 0xa0f   : > { %2230 = vrot.lane.b32.xlu2 %v2213_v14, %s4524_s14  ;;  %v7250_v14 = vld [vmem:[#allocation25_spill] sm:$0xff] }
 0xa10   : > { %v3894_v18 = vpop.permute.xlu2 %3893 }
 0xa11   : > { %v3895_v43 = vunpack.i.l.bf16 %v3894_v18  ;;  %v3896_v39 = vunpack.i.h.bf16 %v3894_v18 }
 0xa12   : > { %2232 = vrot.lane.b32.xlu0 %v2205_v49, %s4524_s14 }
 0xa17   : > { %3948 = vrot.lane.b32.xlu2 %v5780_v33, %s4524_s14  ;;  %v3886_v33 = vunpack.i.h.bf16 %v6159_v48 }
 0xa18   : > { %v6165_v4 = vpop.permute.xlu2 %3908 }
 0xa19   : > { %v7056_v11 = vunpack.i.l.bf16 %v6165_v4 }
 0xa1a   : > { %3953 = vrot.lane.b32.xlu0 %v3892_v54, %s4524_s14 }
 0xa1f   : > { %3963 = vrot.lane.b32.xlu2 %v7232_v62, %s4524_s14 }
 0xa20   : > { %v3914_v17 = vpop.permute.xlu2 %3913 }
 0xa21   : > { %v3916_v40 = vunpack.i.h.bf16 %v3914_v17  ;;  %v2204_v9 = vpop.permute.xlu1 %2203  ;;  %v3915_v12 = vunpack.i.l.bf16 %v3914_v17 }
 0xa22   : > { %v2206_v30 = vsel %vm644_vm0, %v2202_v45, %v2204_v9  ;;  %3968 = vrot.lane.b32.xlu0 %v5698_v31, %s4524_s14  ;;  %vm7238_vm0 = vcmask 1039360  }
 0xa23   : > { %2212 = vst.msk [vmem:[#allocation2 + $0x70] sm:$0xff] %vm7236_vm15, %v2206_v30  ;;  %v6177_v61 = vsel %vm7237_vm9, %v3916_v40, %v3920_v60  ;;  %vm7239_vm1 = vmmov %vm7238_vm0 }
 0xa24   : > { %v6199_v47 = vsel %vm7239_vm1, %v3900_v1, %v3901_v10  ;;  %vm7240_vm3 = vmmov %vm7238_vm0  ;;  %vm7244_vm1 = vcmask 1031168  }
 0xa25   : > { %vm7242_vm15 = vmmov %vm7238_vm0  ;;  %v6234_v55 = vsel %vm7244_vm1, %v3915_v12, %v3916_v40 }
 0xa26   : > { %vm7243_vm9 = vmmov %vm7238_vm0 }
 0xa27   : > { %3973 = vrot.lane.b32.xlu2 %v7233_v59, %s4521_s19  ;;  %v6224_v20 = vsel %vm7243_vm9, %v3895_v43, %v3896_v39  ;;  %vm7251_vm9 = vcmp.eq.s32.totalorder %v7250_v14, 17 }
 0xa28   : > { %v6256_v28 = vpop.permute.xlu2 %3928 }
 0xa29   : > { %v6186_v24 = vpop.permute.xlu1 %3888 }
 0xa2a   : > { %v3891_v31 = vunpack.i.h.bf16 %v6186_v24  ;;  %v3890_v3 = vunpack.i.l.bf16 %v6186_v24  ;;  %v2215_v42 = vld [vmem:[#allocation2 + $0x70] sm:$0xff]  ;;  %3978 = vrot.lane.b32.xlu0 %v6184_v44, %s4521_s19 }
 0xa2b   : > { %2223 = vrot.lane.b32.xlu1 %v2215_v42, %s4528_s11 }
 0xa2c   : > { %v6196_v2 = vsel %vm7238_vm0, %v3891_v31, %v3895_v43  ;;  %v6206_v7 = vsel %vm7240_vm3, %v3886_v33, %v3890_v3  ;;  %vm7246_vm3 = vmmov %vm7244_vm1 }
 0xa2f   : > { %4003 = vrot.lane.b32.xlu2 %v7234_v63, %s4520_s13 }
 0xa31   : > { %v3904_v51 = vpop.permute.xlu1 %3903 }
 0xa32   : > { %v3906_v6 = vunpack.i.h.bf16 %v3904_v51  ;;  %v3905_v26 = vunpack.i.l.bf16 %v3904_v51  ;;  %3988 = vrot.lane.b32.xlu0 %v6184_v44, %s4522_s25 }
 0xa33   : > { %2234 = vrot.lane.b32.xlu1 %v2215_v42, %s4524_s14 }
 0xa34   : > { %v6216_v41 = vpack.c.bf16 %v3905_v26, %v3896_v39  ;;  %v6221_v57 = vsel %vm7242_vm15, %v3906_v6, %v7056_v11  ;;  %v6227_v8 = vsel %vm7238_vm0, %v3901_v10, %v3905_v26  ;;  %vm7247_vm15 = vmmov %vm7244_vm1 }
 0xa36   : > { %7241 = vst [vmem:[#allocation35_spill] sm:$0xff] %v6216_v41 }
 0xa39   : > { %v3924_v21 = vpop.permute.xlu1 %3923 }
 0xa3a   : > { %v3926_v50 = vunpack.i.h.bf16 %v3924_v21  ;;  %v3925_v58 = vunpack.i.l.bf16 %v3924_v21  ;;  %3998 = vrot.lane.b32.xlu0 %v7233_v59, %s4522_s25 }
 0xa3b   : > { %3943 = vrot.lane.b32.xlu1 %v7233_v59, %s4524_s14 }
 0xa3c   : > { %v6238_v19 = vpack.c.bf16 %v3926_v50, %v3920_v60  ;;  %v6241_v34 = vsel %vm7246_vm3, %v3921_v37, %v3925_v58  ;;  %v6244_v36 = vsel %vm7247_vm15, %v3925_v58, %v3926_v50  ;;  %vm7273_vm3 = vcmask 556432  }
 0xa3e   : > { %7245 = vst [vmem:[#allocation30_spill] sm:$0xff] %v6238_v19  ;;  %v6486_v19 = vld [vmem:[#allocation2 + $0x30] sm:$0xff] }
 0xa41   : > { %v6282_v31 = vpop.permute.xlu1 %3938 }
 0xa43   : > { %3958 = vrot.lane.b32.xlu1 %v7234_v63, %s4524_s14 }
 0xa4b   : > { %3983 = vrot.lane.b32.xlu1 %v7248_v0, %s4522_s25 }
 0xa53   : > { %3993 = vrot.lane.b32.xlu1 %v7234_v63, %s4522_s25 }
 0xa61   : > { %v2220_v32 = vpop.permute.xlu2 %2219 }
 0xa69   : > { %v2231_v5 = vpop.permute.xlu2 %2230 }
 0xa71   : > { %v6260_v62 = vpop.permute.xlu2 %3948 }
 0xa72   : > { %7249 = vst [vmem:[#allocation32_spill] sm:$0xff] %v6260_v62  ;;  %v3951_v60 = vunpack.i.h.bf16 %v6260_v62 }
 0xa79   : > { %v3964_v13 = vpop.permute.xlu2 %3963 }
 0xa7a   : > { %v3965_v40 = vunpack.i.l.bf16 %v3964_v13  ;;  %v3966_v42 = vunpack.i.h.bf16 %v3964_v13 }
 0xa7c   : > { %v2222_v54 = vpop.permute.xlu0 %2221 }
 0xa7d   : > { %v2225_v45 = vsel %vm667_vm10, %v2220_v32, %v2222_v54 }
 0xa81   : > { %v6294_v12 = vpop.permute.xlu2 %3973 }
 0xa82   : > { %v7057_v21 = vunpack.i.h.bf16 %v6294_v12  ;;  %v3975_v37 = vunpack.i.l.bf16 %v6294_v12 }
 0xa84   : > { %v2233_v29 = vpop.permute.xlu0 %2232  ;;  %v2604_v58 = vsel %vm521_vm4, %v3975_v37, %v7057_v21 }
 0xa85   : > { %v2236_v49 = vsel %vm485_vm8, %v2231_v5, %v2233_v29 }
 0xa86   : > { %v2241_v18 = vsel %vm7251_vm9, %v2225_v45, %v2236_v49 }
 0xa87   : > { %v2244_v56 = vsel %vm443_vm13, %v6125_v16, %v2241_v18 }
 0xa88   : > { %2251 = vrot.lane.b32.xlu2 %v2244_v56, %s4529_s20  ;;  %2247 = vst.msk [vmem:[#allocation2 + $0x60] sm:$0xff] %vm690_vm14, %v2244_v56 }
 0xa8c   : > { %v3954_v17 = vpop.permute.xlu0 %3953 }
 0xa8d   : > { %v3956_v9 = vunpack.i.h.bf16 %v3954_v17  ;;  %v3955_v30 = vunpack.i.l.bf16 %v3954_v17  ;;  %v7256_v17 = vld [vmem:[#allocation26_spill] sm:$0xff] }
 0xa8e   : > { %vm7259_vm0 = vcmp.eq.s32.totalorder %v7256_v17, 0 }
 0xa8f   : > { %v6272_v10 = vpack.c.bf16 %v3965_v40, %v3956_v9  ;;  %v6275_v1 = vsel %vm485_vm8, %v3951_v60, %v3955_v30  ;;  %v6278_v43 = vsel %vm485_vm8, %v3955_v30, %v3956_v9  ;;  %v7257_v9 = vld [vmem:[#allocation27_spill] sm:$0xff] }
 0xa90   : > { %7253 = vst [vmem:[#allocation25_spill] sm:$0xff] %v6278_v43  ;;  %vm7258_vm13 = vcmp.eq.s32.totalorder %v7257_v9, 17  ;;  %vm7260_vm1 = vcmp.eq.s32.totalorder %v7257_v9, 0 }
 0xa91   : > { %7252 = vst [vmem:[#allocation28_spill] sm:$0xff] %v6272_v10 }
 0xa94   : > { %v6280_v16 = vpop.permute.xlu0 %3968 }
 0xa95   : > { %7254 = vst [vmem:[#allocation36_spill] sm:$0xff] %v6280_v16  ;;  %v7054_v39 = vunpack.i.h.bf16 %v6280_v16  ;;  %v3970_v51 = vunpack.i.l.bf16 %v6280_v16 }
 0xa97   : > { %v6287_v6 = vsel %vm485_vm8, %v3966_v42, %v3970_v51  ;;  %v6292_v26 = vsel %vm485_vm8, %v3970_v51, %v7054_v39  ;;  %v7055_v51 = vunpack.i.l.bf16 %v6260_v62 }
 0xa98   : > { %7255 = vst [vmem:[#allocation37_spill] sm:$0xff] %v6292_v26 }
 0xa9c   : > { %v6298_v50 = vpop.permute.xlu0 %3978 }
 0xa9d   : > { %v2224_v32 = vpop.permute.xlu1 %2223  ;;  %v7058_v5 = vunpack.i.h.bf16 %v6298_v50  ;;  %v3980_v45 = vunpack.i.l.bf16 %v6298_v50 }
 0xa9e   : > { %v2226_v56 = vsel %vm667_vm10, %v2222_v54, %v2224_v32  ;;  %vm7271_vm10 = vcmask 736256  }
 0xa9f   : > { %v2606_v49 = vsel %vm521_vm4, %v3980_v45, %v7058_v5  ;;  %vm7280_vm15 = vmmov %vm7271_vm10 }
 0xaa0   : > { %v2784_v14 = vpack.c.bf16 %v2606_v49, %v2604_v58  ;;  %v6327_v58 = vld [vmem:[#allocation2 + $0x48] sm:$0xff]  ;;  %vm7281_vm9 = vmmov %vm7271_vm10 }
 0xaa2   : > { %2852 = vmatpush.bf16.msrb.mxu2 %v2784_v14 }
 0xaa5   : > { %v2235_v18 = vpop.permute.xlu1 %2234 }
 0xaa6   : > { %v2237_v13 = vsel %vm485_vm8, %v2233_v29, %v2235_v18  ;;  %v2243_v60 = vsel %vm448_vm2, %v2224_v32, %v2235_v18  ;;  %v7261_v32 = vld [vmem:[#allocation31_spill] sm:$0xff]  ;;  %v6343_v18 = vld [vmem:[#allocation2 + $0x50] sm:$0xff]  ;;  %vm7268_vm2 = vcmask 1039360  }
 0xaa7   : > { %v2242_v30 = vsel %vm7258_vm13, %v2226_v56, %v2237_v13  ;;  %v2246_v42 = vsel %vm7259_vm0, %v6133_v23, %v2243_v60  ;;  %v4022_v23 = vpack.i.bf16 %v6327_v58, %v7261_v32  ;;  %v7262_v56 = vld [vmem:[#allocation29_spill] sm:$0xff]  ;;  %v7263_v13 = vld [vmem:[#allocation34_spill] sm:$0xff]  ;;  %vm7285_vm13 = vcmask 1031168  }
 0xaa8   : > { %2265 = vrot.lane.b32.xlu2 %v2246_v42, %s4530_s15  ;;  %2255 = vrot.lane.b32.xlu1 %v2246_v42, %s4529_s20  ;;  %v2245_v54 = vsel %vm7260_vm1, %v6129_v53, %v2242_v30  ;;  %v4037_v17 = vpack.i.bf16 %v7263_v13, %v6137_v25  ;;  %v7266_v32 = vld [vmem:[#allocation33_spill] sm:$0xff]  ;;  %vm7286_vm0 = vmmov %vm7285_vm13 }
 0xaa9   : > { %2253 = vrot.lane.b32.xlu0 %v2245_v54, %s4529_s20  ;;  %v6363_v54 = vld [vmem:[#allocation2 + $0x58] sm:$0xff]  ;;  %vm7288_vm1 = vmmov %vm7286_vm0 }
 0xaaa   : > { %7265 = vst [vmem:[#allocation27_spill] sm:$0xff] %v6363_v54 }
 0xaad   : > { %v6323_v29 = vpop.permute.xlu1 %3943 }
 0xaae   : > { %v7061_v37 = vunpack.i.h.bf16 %v6323_v29 }
 0xab0   : > { %4013 = vrot.lane.b32.xlu2 %v7233_v59, %s4520_s13  ;;  %4023 = vrot.lane.b32.xlu1 %v4022_v23, %s4519_s5  ;;  %v6339_v53 = vsel %vm485_vm8, %v7061_v37, %v7055_v51  ;;  %v4027_v59 = vpack.i.bf16 %v7262_v56, %v6343_v18  ;;  %v6367_v23 = vpack.i.bf16 %v7266_v32, %v6363_v54 }
 0xab1   : > { %4008 = vrot.lane.b32.xlu0 %v7248_v0, %s4520_s13 }
 0xab5   : > { %v3959_v45 = vpop.permute.xlu1 %3958 }
 0xab6   : > { %v3961_v49 = vunpack.i.h.bf16 %v3959_v45  ;;  %v3960_v14 = vunpack.i.l.bf16 %v3959_v45  ;;  %v6369_v45 = vld [vmem:[#allocation2 + $0x8] sm:$0xff] }
 0xab8   : > { %4028 = vrot.lane.b32.xlu2 %v4027_v59, %s4519_s5  ;;  %4038 = vrot.lane.b32.xlu1 %v4037_v17, %s4519_s5  ;;  %v6352_v60 = vsel %vm485_vm8, %v3960_v14, %v3961_v49  ;;  %v6355_v9 = vsel %vm485_vm8, %v3961_v49, %v3965_v40  ;;  %v4032_v40 = vpack.i.bf16 %v6180_v27, %v6369_v45  ;;  %v6387_v14 = vpop.permute.xlu2 %4003 }
 0xab9   : > { %7264 = vst [vmem:[#allocation26_spill] sm:$0xff] %v6355_v9  ;;  %4018 = vrot.lane.b32.xlu0 %v6184_v44, %s4520_s13  ;;  %v4062_v49 = vpack.i.bf16 %v6139_v46, %v7266_v32 }
 0xaba   : > { %7267 = vst [vmem:[#allocation31_spill] sm:$0xff] %v6387_v14 }
 0xabd   : > { %v6400_v32 = vpop.permute.xlu1 %3983 }
 0xabe   : > { %7269 = vst [vmem:[#allocation29_spill] sm:$0xff] %v6400_v32  ;;  %v7076_v62 = vunpack.i.h.bf16 %v6400_v32 }
 0xac0   : > { %4043 = vrot.lane.b32.xlu2 %v6367_v23, %s4519_s5  ;;  %4058 = vrot.lane.b32.xlu1 %v7234_v63, %s4518_s2  ;;  %v3885_v63 = vunpack.i.l.bf16 %v6159_v48 }
 0xac1   : > { %4033 = vrot.lane.b32.xlu0 %v4032_v40, %s4519_s5  ;;  %v6402_v40 = vpop.permute.xlu0 %3988 }
 0xac2   : > { %v6396_v13 = vsel %vm7268_vm2, %v3885_v63, %v3886_v33 }
 0xac5   : > { %v6408_v39 = vpop.permute.xlu1 %3993 }
 0xac8   : > { %2694 = vrot.lane.b32.xlu2 %v6139_v46, %s4519_s5 }
 0xac9   : > { %4048 = vrot.lane.b32.xlu0 %v7248_v0, %s4518_s2  ;;  %v6406_v42 = vpop.permute.xlu0 %3998 }
 0xad1   : > { %4053 = vrot.lane.b32.xlu0 %v6184_v44, %s4518_s2 }
 0xad9   : > { %4063 = vrot.lane.b32.xlu0 %v4062_v49, %s4521_s19 }
 0xae2   : > { %v2252_v56 = vpop.permute.xlu2 %2251 }
 0xae3   : > { %2262 = vst.msk [vmem:[#allocation2 + $0x60] sm:$0xff] %vm706_vm12, %v2252_v56  ;;  %vm7272_vm12 = vcmask 408576  }
 0xaea   : > { %v6391_v59 = vld [vmem:[#allocation2 + $0x60] sm:$0xff] }
 0xb02   : > { %v2266_v17 = vpop.permute.xlu2 %2265 }
 0xb0a   : > { %v6404_v49 = vpop.permute.xlu2 %4013 }
 0xb12   : > { %v6410_v51 = vpop.permute.xlu2 %4028 }
 0xb13   : > { %v7060_v63 = vunpack.i.l.bf16 %v6410_v51  ;;  %v4031_v52 = vunpack.i.h.bf16 %v6410_v51 }
 0xb1a   : > { %v6412_v48 = vpop.permute.xlu2 %4043  ;;  %v2256_v33 = vpop.permute.xlu1 %2255 }
 0xb1b   : > { %7270 = vst [vmem:[#allocation34_spill] sm:$0xff] %v6412_v48  ;;  %v7059_v15 = vunpack.i.l.bf16 %v6412_v48  ;;  %v2254_v11 = vpop.permute.xlu0 %2253  ;;  %v7065_v37 = vunpack.i.h.bf16 %v6412_v48 }
 0xb1c   : > { %v6417_v38 = vsel %vm690_vm14, %v2252_v56, %v2254_v11  ;;  %v2258_v21 = vsel %vm690_vm14, %v2254_v11, %v2256_v33  ;;  %vm7278_vm14 = vmmov %vm7271_vm10 }
 0xb1d   : > { %v4077_v5 = vpack.i.bf16 %v6417_v38, %v6391_v59  ;;  %v6429_v30 = vsel %vm7271_vm10, %v7060_v63, %v7059_v15  ;;  %2264 = vst.msk [vmem:[#allocation2 + $0x70] sm:$0xff] %vm7272_vm12, %v2258_v21  ;;  %v6449_v15 = vld [vmem:[#allocation2 + $0x40] sm:$0xff]  ;;  %vm7296_vm10 = vmmov %vm7286_vm0 }
 0xb1e   : > { %2268 = vst.msk [vmem:[#allocation2 + $0x70] sm:$0xff] %vm7273_vm3, %v2266_v17  ;;  %v4117_v44 = vpack.i.bf16 %v6449_v15, %v6139_v46  ;;  %vm7298_vm12 = vmmov %vm7281_vm9 }
 0xb1f   : > { %4078 = vrot.lane.b32.xlu1 %v4077_v5, %s4524_s14  ;;  %4073 = vrot.lane.b32.xlu2 %v4077_v5, %s4523_s26  ;;  %7277 = vst [vmem:[#allocation40_spill] sm:$0xff] %v6449_v15  ;;  %vm7300_vm3 = vmmov %vm7286_vm0 }
 0xb20   : > { %4068 = vrot.lane.b32.xlu0 %v4077_v5, %s4525_s16 }
 0xb22   : > { %v6438_v33 = vpop.permute.xlu1 %4023 }
 0xb23   : > { %v6436_v11 = vpop.permute.xlu0 %4008 }
 0xb24   : > { %7274 = vst [vmem:[#allocation33_spill] sm:$0xff] %v6436_v11 }
 0xb25   : > { %v2283_v56 = vld [vmem:[#allocation2 + $0x70] sm:$0xff] }
 0xb26   : > { %v6445_v21 = vpack.c.bf16 %v3890_v3, %v2283_v56  ;;  %v6459_v3 = vld [vmem:[#allocation2] sm:$0xff] }
 0xb27   : > { %4093 = vrot.lane.b32.xlu1 %v4077_v5, %s4519_s5  ;;  %4083 = vrot.lane.b32.xlu2 %v4077_v5, %s4522_s25  ;;  %v4112_v35 = vpack.i.bf16 %v6369_v45, %v6459_v3 }
 0xb28   : > { %2382 = vrot.lane.b32.xlu0 %v2283_v56, %s4523_s26  ;;  %7275 = vst [vmem:[#allocation38_spill] sm:$0xff] %v6445_v21 }
 0xb2a   : > { %v6456_v63 = vpop.permute.xlu1 %4038 }
 0xb2b   : > { %v6447_v17 = vpop.permute.xlu0 %4018  ;;  %v7066_v43 = vunpack.i.l.bf16 %v6456_v63 }
 0xb2c   : > { %7276 = vst [vmem:[#allocation39_spill] sm:$0xff] %v6447_v17 }
 0xb2f   : > { %4098 = vrot.lane.b32.xlu1 %v4077_v5, %s4518_s2  ;;  %4088 = vrot.lane.b32.xlu2 %v4077_v5, %s4520_s13 }
 0xb30   : > { %4118 = vrot.lane.b32.xlu0 %v4117_v44, %s4518_s2 }
 0xb33   : > { %v4034_v24 = vpop.permute.xlu0 %4033 }
 0xb34   : > { %v4036_v9 = vunpack.i.h.bf16 %v4034_v24  ;;  %v4035_v10 = vunpack.i.l.bf16 %v4034_v24  ;;  %v3936_v24 = vunpack.i.h.bf16 %v6258_v22 }
 0xb36   : > { %v6466_v16 = vsel %vm7278_vm14, %v4031_v52, %v4035_v10  ;;  %v6471_v21 = vsel %vm7280_vm15, %v4036_v9, %v7066_v43  ;;  %v6476_v41 = vsel %vm7281_vm9, %v4035_v10, %v7065_v37  ;;  %v6484_v52 = vld [vmem:[#allocation2 + $0x38] sm:$0xff]  ;;  %v4102_v10 = vpack.i.bf16 %v6486_v19, %v2283_v56  ;;  %vm7304_vm15 = vmmov %vm7286_vm0 }
 0xb37   : > { %7279 = vst [vmem:[#allocation41_spill] sm:$0xff] %v6466_v16  ;;  %4113 = vrot.lane.b32.xlu2 %v4112_v35, %s4518_s2  ;;  %2327 = vrot.lane.b32.xlu1 %v2283_v56, %s4525_s16  ;;  %v4122_v9 = vpack.i.bf16 %v6484_v52, %v6486_v19  ;;  %v4132_v35 = vpack.i.bf16 %v2283_v56, %v6363_v54  ;;  %v7284_v43 = vunpack.i.h.bf16 %v6323_v29  ;;  %vm7302_vm14 = vcmask 1043456   ;;  %vm7310_vm9 = vmmov %vm7268_vm2 }
 0xb38   : > { %7282 = vst [vmem:[#allocation42_spill] sm:$0xff] %v6476_v41  ;;  %4128 = vrot.lane.b32.xlu0 %v7248_v0, %s4521_s19  ;;  %v6497_v0 = vld [vmem:[#allocation2 + $0x10] sm:$0xff] }
 0xb39   : > { %7283 = vst [vmem:[#allocation43_spill] sm:$0xff] %v6497_v0 }
 0xb3f   : > { %4123 = vrot.lane.b32.xlu2 %v4122_v9, %s4521_s19  ;;  %4103 = vrot.lane.b32.xlu1 %v4102_v10, %s4519_s5  ;;  %v4183_v9 = vld [vmem:[#allocation2 + $0x8] sm:$0xff]  ;;  %v6518_v10 = vpop.permute.xlu0 %4048  ;;  %s3004_s5 = sshll.u32 %s3000_s1, 4  ;;  %s3005_s5 = int_to_ptr.hbm [resolvable:$true] %s3004_s5 }
 0xb40   : > { %4138 = vrot.lane.b32.xlu0 %v4117_v44, %s4522_s25  ;;  %v4157_v44 = vpack.i.bf16 %v6449_v15, %v2283_v56 }
 0xb47   : > { %4133 = vrot.lane.b32.xlu2 %v4132_v35, %s4518_s2  ;;  %4108 = vrot.lane.b32.xlu1 %v4077_v5, %s4521_s19  ;;  %v4184_v5 = vld [vmem:[#allocation2] sm:$0xff]  ;;  %v6540_v26 = vpop.permute.xlu0 %4053 }
 0xb48   : > { %2523 = vrot.lane.b32.xlu0 %v6497_v0, %s4522_s25 }
 0xb4f   : > { %2633 = vrot.lane.b32.xlu2 %v6497_v0, %s4518_s2  ;;  %4143 = vrot.lane.b32.xlu1 %v4132_v35, %s4522_s25  ;;  %v3945_v35 = vunpack.i.l.bf16 %v6323_v29  ;;  %v7287_v29 = vunpack.i.h.bf16 %v6256_v28  ;;  %s3002_s2 = sshll.u32 %s6938_s10, 4  ;;  %s3003_s2 = int_to_ptr.vmem [resolvable:$true] %s3002_s2 }
 0xb50   : > { %2437 = vrot.lane.b32.xlu0 %v2283_v56, %s4524_s14  ;;  %v6516_v56 = vpop.permute.xlu2 %2694  ;;  %s4446_s14 = scalar_lea.hbm %s6987_s8, 48 }
 0xb51   : > { %v2439_v0 = vsel %vm485_vm8, %v3945_v35, %v7284_v43 }
 0xb57   : > { %4158 = vrot.lane.b32.xlu2 %v4157_v44, %s4520_s13  ;;  %4148 = vrot.lane.b32.xlu1 %v4157_v44, %s4521_s19 }
 0xb58   : > { %2973 = vrot.lane.b32.xlu0 %v4183_v9, %s4520_s13  ;;  %v7074_v9 = vunpack.i.l.bf16 %v6282_v31 }
 0xb5a   : > { %v2390_v48 = vsel %vm7286_vm0, %v3936_v24, %v7074_v9  ;;  %v3990_v9 = vunpack.i.l.bf16 %v6402_v40  ;;  %vm7313_vm0 = vmmov %vm7298_vm12 }
 0xb5f   : > { %2474 = vrot.lane.b32.xlu2 %v6139_v46, %s4520_s13  ;;  %2596 = vrot.lane.b32.xlu1 %v6363_v54, %s4521_s19 }
 0xb67   : > { %4153 = vrot.lane.b32.xlu1 %v6367_v23, %s4520_s13  ;;  %2971 = vrot.lane.b32.xlu2 %v4184_v5, %s4520_s13  ;;  %v3930_v5 = vunpack.i.l.bf16 %v6256_v28  ;;  %v3985_v23 = vunpack.i.l.bf16 %v6400_v32 }
 0xb69   : > { %v2388_v43 = vsel %vm7288_vm1, %v3930_v5, %v7287_v29  ;;  %v2555_v5 = vsel %vm509_vm6, %v3985_v23, %v7076_v62  ;;  %v7291_v23 = vunpack.i.h.bf16 %v6402_v40  ;;  %vm7315_vm1 = vmmov %vm7313_vm0 }
 0xb6a   : > { %v2757_v41 = vpack.c.bf16 %v2390_v48, %v2388_v43 }
 0xb6b   : > { %v2551_v62 = vsel %vm509_vm6, %v3990_v9, %v7291_v23  ;;  %v4005_v9 = vunpack.i.l.bf16 %v6387_v14 }
 0xb79   : > { %v6521_v44 = vpop.permute.xlu2 %4073 }
 0xb7a   : > { %v7075_v46 = vunpack.i.h.bf16 %v6521_v44  ;;  %v4075_v37 = vunpack.i.l.bf16 %v6521_v44 }
 0xb7c   : > { %v2392_v54 = vsel %vm7285_vm13, %v4075_v37, %v7075_v46  ;;  %v7079_v37 = vunpack.i.h.bf16 %v6408_v39  ;;  %v7083_v46 = vunpack.i.h.bf16 %v6406_v42  ;;  %vm7311_vm13 = vmmov %vm7268_vm2 }
 0xb7d   : > { %v2760_v15 = vpack.c.bf16 %v2439_v0, %v2392_v54  ;;  %v3995_v54 = vunpack.i.l.bf16 %v6408_v39  ;;  %v4000_v0 = vunpack.i.l.bf16 %v6406_v42 }
 0xb7f   : > { %2839 = vmatpush.bf16.msra.mxu0 %v2760_v15  ;;  %v2553_v43 = vsel %vm509_vm6, %v3995_v54, %v7079_v37  ;;  %v4015_v37 = vunpack.i.l.bf16 %v6404_v49 }
 0xb81   : > { %v6545_v35 = vpop.permute.xlu2 %4083 }
 0xb82   : > { %7289 = vst [vmem:[#allocation44_spill] sm:$0xff] %v6545_v35  ;;  %v7078_v24 = vunpack.i.h.bf16 %v6545_v35  ;;  %v4085_v15 = vunpack.i.l.bf16 %v6545_v35  ;;  %v6570_v35 = vpop.permute.xlu1 %4058 }
 0xb83   : > { %2840 = vmatpush.bf16.msra.mxu0 %v2757_v41  ;;  %v7290_v41 = vpack.c.bf16 %v6241_v34, %v6234_v55  ;;  %v6576_v55 = vpop.permute.xlu0 %4063 }
 0xb84   : > { %v2557_v48 = vsel %vm509_vm6, %v4085_v15, %v7078_v24 }
 0xb85   : > { %v2781_v29 = vpack.c.bf16 %v2557_v48, %v2555_v5  ;;  %v2778_v5 = vpack.c.bf16 %v2553_v43, %v2551_v62  ;;  %v4010_v48 = vunpack.i.l.bf16 %v6436_v11  ;;  %v2549_v62 = vsel %vm509_vm6, %v4000_v0, %v7083_v46 }
 0xb86   : > { %v7086_v43 = vunpack.i.h.bf16 %v6404_v49 }
 0xb87   : > { %2841 = vmatpush.bf16.msra.mxu0 %v7290_v41  ;;  %2853 = vmatpush.bf16.msrb.mxu2 %v2781_v29  ;;  %v7292_v41 = vunpack.i.h.bf16 %v6436_v11 }
 0xb88   : > { %v2494_v11 = vsel %vm497_vm7, %v4015_v37, %v7086_v43  ;;  %v3941_v37 = vunpack.i.h.bf16 %v6282_v31 }
 0xb89   : > { %v6572_v15 = vpop.permute.xlu2 %4088  ;;  %v2500_v32 = vsel %vm497_vm7, %v4010_v48, %v7292_v41 }
 0xb8a   : > { %v7081_v34 = vunpack.i.h.bf16 %v6572_v15  ;;  %v4090_v29 = vunpack.i.l.bf16 %v6572_v15 }
 0xb8b   : > { %2854 = vmatpush.bf16.msrb.mxu2 %v2778_v5  ;;  %v4020_v5 = vunpack.i.l.bf16 %v6447_v17 }
 0xb8c   : > { %v2502_v23 = vsel %vm497_vm7, %v4090_v29, %v7081_v34  ;;  %v7293_v29 = vunpack.i.h.bf16 %v6387_v14 }
 0xb8d   : > { %v2775_v24 = vpack.c.bf16 %v2549_v62, %v2502_v23 }
 0xb8e   : > { %v2498_v34 = vsel %vm497_vm7, %v4005_v9, %v7293_v29 }
 0xb8f   : > { %2855 = vmatpush.bf16.msrb.mxu2 %v2775_v24  ;;  %v2772_v23 = vpack.c.bf16 %v2500_v32, %v2498_v34  ;;  %v7294_v24 = vunpack.i.h.bf16 %v6447_v17 }
 0xb91   : > { %v6598_v16 = vpop.permute.xlu2 %4113  ;;  %v6600_v0 = vpop.permute.xlu1 %4078  ;;  %v2496_v48 = vsel %vm497_vm7, %v4020_v5, %v7294_v24  ;;  %v7297_v24 = vpack.c.bf16 %v6199_v47, %v6196_v2  ;;  %v7303_v2 = vunpack.i.h.bf16 %v6256_v28  ;;  %v2742_v28 = vpack.c.bf16 %v6327_v58, %v6486_v19  ;;  %v2808_v58 = vld [vmem:[#allocation12] sm:$0xff] }
 0xb92   : > { %v4069_v62 = vpop.permute.xlu0 %4068  ;;  %v4081_v46 = vunpack.i.h.bf16 %v6600_v0  ;;  %v4080_v54 = vunpack.i.l.bf16 %v6600_v0  ;;  %v2769_v14 = vpack.c.bf16 %v2496_v48, %v2494_v11  ;;  %v3935_v48 = vunpack.i.l.bf16 %v6258_v22 }
 0xb93   : > { %v4071_v41 = vunpack.i.h.bf16 %v4069_v62  ;;  %v4070_v9 = vunpack.i.l.bf16 %v4069_v62  ;;  %2856 = vmatpush.bf16.msrb.mxu2 %v2772_v23  ;;  %v7295_v62 = vunpack.i.h.bf16 %v6521_v44  ;;  %v2739_v19 = vpack.c.bf16 %v6180_v27, %v6459_v3 }
 0xb94   : > { %v2447_v34 = vsel %vm485_vm8, %v4080_v54, %v4081_v46  ;;  %v2389_v47 = vsel %vm7304_vm15, %v7303_v2, %v3935_v48 }
 0xb95   : > { %v2337_v29 = vsel %vm7268_vm2, %v4070_v9, %v4071_v41  ;;  %v2766_v5 = vpack.c.bf16 %v2447_v34, %v6287_v6  ;;  %v4065_v34 = vunpack.i.l.bf16 %v6576_v55  ;;  %vm7316_vm2 = vmmov %vm7313_vm0 }
 0xb96   : > { %v2751_v32 = vpack.c.bf16 %v2337_v29, %v6221_v57  ;;  %v7301_v29 = vpack.c.bf16 %v6352_v60, %v6275_v1 }
 0xb97   : > { %2857 = vmatpush.bf16.msrb.mxu2 %v2769_v14 }
 0xb98   : > { %2842 = vmatpush.bf16.msra.mxu0 %v2751_v32  ;;  %v4066_v32 = vunpack.i.h.bf16 %v6576_v55 }
 0xb99   : > { %v6616_v43 = vpop.permute.xlu2 %4123  ;;  %v6618_v17 = vpop.permute.xlu1 %4093 }
 0xb9a   : > { %v6621_v23 = vpop.permute.xlu0 %2382  ;;  %v4096_v11 = vunpack.i.h.bf16 %v6618_v17  ;;  %v4095_v57 = vunpack.i.l.bf16 %v6618_v17  ;;  %v7299_v17 = vunpack.i.l.bf16 %v6282_v31 }
 0xb9b   : > { %v2393_v14 = vsel %vm7296_vm10, %v7295_v62, %v6621_v23  ;;  %2858 = vmatpush.bf16.msrb.mxu2 %v2766_v5  ;;  %v7305_v5 = vpack.c.bf16 %v6396_v13, %v6391_v59  ;;  %v7307_v59 = vunpack.i.h.bf16 %v6294_v12  ;;  %vm7319_vm10 = vmmov %vm7313_vm0 }
 0xb9c   : > { %v2761_v54 = vpack.c.bf16 %v6339_v53, %v2393_v14  ;;  %2843 = vmatpush.bf16.msra.mxu0 %v7297_v24  ;;  %v2722_v6 = vsel %vm7298_vm12, %v4095_v57, %v4096_v11  ;;  %v2391_v44 = vsel %vm7300_vm3, %v7299_v17, %v3941_v37  ;;  %v7306_v14 = vunpack.i.h.bf16 %v6298_v50  ;;  %vm7321_vm12 = vmmov %vm7302_vm14 }
 0xb9d   : > { %v2805_v9 = vpack.c.bf16 %v2722_v6, %v2722_v6  ;;  %v2758_v57 = vpack.c.bf16 %v2391_v44, %v2389_v47  ;;  %v2605_v13 = vsel %vm521_vm4, %v7307_v59, %v4065_v34  ;;  %v3911_v24 = vunpack.i.h.bf16 %v6165_v4  ;;  %vm7323_vm3 = vmmov %vm7313_vm0 }
 0xb9e   : > { %2878 = vmatpush.bf16.msra.mxu1 %v2761_v54  ;;  %v2607_v54 = vsel %vm521_vm4, %v7306_v14, %v4066_v32  ;;  %v7308_v6 = vpack.c.bf16 %v6244_v36, %v6177_v61  ;;  %v7309_v61 = vunpack.i.l.bf16 %v6165_v4  ;;  %v7312_v47 = vpack.c.bf16 %v6227_v8, %v6224_v20 }
 0xb9f   : > { %2859 = vmatpush.bf16.msrb.mxu2 %v7301_v29  ;;  %v2831_v53 = vsel %vm7302_vm14, %v2805_v9, 0  ;;  %v2785_v50 = vpack.c.bf16 %v2607_v54, %v2605_v13  ;;  %v2819_v9 = vunpack.c.h.b16 %v2808_v58  ;;  %v7314_v8 = vunpack.i.l.bf16 %v6410_v51 }
 0xba0   : > { %2844 = vmatpush.bf16.msra.mxu0 %v7305_v5  ;;  %2866 = vmatpush.bf16.msrb.mxu3 %v2831_v53  ;;  %v2336_v36 = vsel %vm7310_vm9, %v7309_v61, %v3911_v24  ;;  %v4026_v53 = vunpack.i.h.bf16 %v6438_v33  ;;  %v2818_v5 = vunpack.c.l.b16 %v2808_v58 }
 0xba1   : > { %v6654_v1 = vpop.permute.xlu2 %4133  ;;  %v6656_v60 = vpop.permute.xlu1 %4098  ;;  %v6680_v12 = vpack.c.b16 %v2819_v9, %v2819_v9 }
 0xba2   : > { %v6658_v62 = vpop.permute.xlu0 %4118  ;;  %2879 = vmatpush.bf16.msra.mxu1 %v2758_v57  ;;  %v4025_v57 = vunpack.i.l.bf16 %v6438_v33  ;;  %v2720_v33 = vsel %vm7315_vm1, %v4026_v53, %v7314_v8  ;;  %v4101_v51 = vunpack.i.h.bf16 %v6656_v60 }
 0xba3   : > { %2860 = vmatmul.bf16.vlgmr.msrb.gmra.mxu2 %v6680_v12 }
 0xba4   : > { %2845 = vmatpush.bf16.msra.mxu0 %v2742_v28  ;;  %v4041_v28 = vunpack.i.h.bf16 %v6456_v63 }
 0xba6   : > { %2880 = vmatpush.bf16.msra.mxu1 %v7308_v6  ;;  %v6706_v6 = vpack.c.b16 %v2818_v5, %v2818_v5  ;;  %v2740_v5 = vpack.c.bf16 %v6137_v25, %v6369_v45  ;;  %v4135_v25 = vunpack.i.l.bf16 %v6654_v1 }
 0xba8   : > { %2846 = vmatpush.bf16.msra.mxu0 %v2739_v19 }
 0xba9   : > { %v6678_v17 = vpop.permute.xlu1 %2327  ;;  %v6682_v44 = vpop.permute.xlu2 %2633 }
 0xbaa   : > { %v6684_v29 = vpop.permute.xlu0 %4128  ;;  %v2338_v27 = vsel %vm7311_vm13, %v4071_v41, %v6678_v17 }
 0xbab   : > { %v2752_v3 = vpack.c.bf16 %v2338_v27, %v2336_v36  ;;  %v7318_v36 = vunpack.i.h.bf16 %v6402_v40  ;;  %2847 = vmatmul.bf16.vlgmr.msra.gmra.mxu0 %v6706_v6 }
 0xbac   : > { %2891 = vmatpush.bf16.msrb.mxu0 %v2785_v50  ;;  %v7317_v50 = vpack.c.bf16 %v6206_v7, %v6417_v38  ;;  %v7320_v7 = vunpack.i.h.bf16 %v6408_v39  ;;  %v4050_v39 = vunpack.i.l.bf16 %v6518_v10 }
 0xbad   : > { %2881 = vmatpush.bf16.msra.mxu1 %v2752_v3  ;;  %v4100_v3 = vunpack.i.l.bf16 %v6656_v60  ;;  %v2743_v60 = vpack.c.bf16 %v6343_v18, %v6484_v52  ;;  %v7322_v52 = vunpack.i.l.bf16 %v6456_v63  ;;  %v7343_v63 = vld [vmem:[#allocation31_spill] sm:$0xff] }
 0xbaf   : > { %v2717_v8 = vsel %vm7323_vm3, %v7322_v52, %v6516_v56  ;;  %v4115_v52 = vunpack.i.l.bf16 %v6598_v16 }
 0xbb1   : > { %v4104_v2 = vpop.permute.xlu1 %4103  ;;  %2882 = vmatpush.bf16.msra.mxu1 %v7312_v47  ;;  %v6708_v19 = vpop.permute.xlu2 %4158  ;;  %v4051_v47 = vunpack.i.h.bf16 %v6518_v10  ;;  %v4061_v10 = vunpack.i.h.bf16 %v6570_v35 }
 0xbb2   : > { %v6700_v14 = vpop.permute.xlu0 %4138  ;;  %v4106_v54 = vunpack.i.h.bf16 %v4104_v2  ;;  %v6702_v41 = vunpack.i.l.bf16 %v4104_v2  ;;  %v4160_v40 = vunpack.i.l.bf16 %v6708_v19 }
 0xbb3   : > { %v4141_v59 = vunpack.i.h.bf16 %v6700_v14  ;;  %v4140_v13 = vunpack.i.l.bf16 %v6700_v14 }
 0xbb4   : > { %v2718_v20 = vsel %vm7313_vm0, %v4106_v54, %v4025_v57  ;;  %v2723_v58 = vsel %vm7316_vm2, %v4096_v11, %v6702_v41  ;;  %v2719_v11 = vsel %vm7319_vm10, %v4025_v57, %v4041_v28  ;;  %v4056_v57 = vunpack.i.h.bf16 %v6540_v26 }
 0xbb5   : > { %2883 = vmatpush.bf16.msra.mxu1 %v7317_v50  ;;  %v2802_v9 = vpack.c.bf16 %v2720_v33, %v2718_v20  ;;  %v2806_v61 = vpack.c.bf16 %v2723_v58, %v2723_v58  ;;  %v6724_v27 = vsel %vm509_vm6, %v7318_v36, %v4140_v13  ;;  %v6736_v38 = vsel %vm509_vm6, %v7320_v7, %v4141_v59  ;;  %v7326_v36 = vld [vmem:[#allocation41_spill] sm:$0xff] }
 0xbb6   : > { %v2779_v2 = vpack.c.bf16 %v6736_v38, %v6724_v27  ;;  %v4055_v54 = vunpack.i.l.bf16 %v6540_v26  ;;  %v2803_v18 = vpack.c.bf16 %v6429_v30, %v2719_v11  ;;  %v4136_v33 = vunpack.i.h.bf16 %v6654_v1 }
 0xbb7   : > { %2867 = vmatpush.bf16.msrb.mxu3 %v2802_v9  ;;  %v2834_v53 = vsel %vm7321_vm12, %v2806_v61, 0  ;;  %v2667_v26 = vsel %vm533_vm5, %v4100_v3, %v4101_v51  ;;  %v4060_v58 = vunpack.i.l.bf16 %v6570_v35  ;;  %v7324_v30 = vunpack.i.h.bf16 %v6572_v15  ;;  %v7328_v3 = vld [vmem:[#allocation42_spill] sm:$0xff] }
 0xbb8   : > { %2905 = vmatpush.bf16.msra.mxu2 %v2834_v53  ;;  %v7325_v9 = vunpack.i.h.bf16 %v6406_v42  ;;  %v7327_v11 = vpack.c.bf16 %v6471_v21, %v7326_v36  ;;  %v2800_v7 = vpack.c.bf16 %v2717_v8, %v7328_v3  ;;  %v2786_v35 = vpack.c.bf16 %v4066_v32, %v4065_v34  ;;  %v2810_v53 = vld [vmem:[#allocation14] sm:$0xff] }
 0xbb9   : > { %v6751_v20 = vpop.permute.xlu1 %4108  ;;  %2884 = vmatpush.bf16.msra.mxu1 %v2743_v60  ;;  %v6770_v50 = vsel %vm497_vm7, %v7324_v30, %v4160_v40  ;;  %v2665_v42 = vsel %vm533_vm5, %v4050_v39, %v4051_v47  ;;  %v4116_v60 = vunpack.i.h.bf16 %v6598_v16  ;;  %v2661_v8 = vsel %vm533_vm5, %v4055_v54, %v4056_v57 }
 0xbba   : > { %v6761_v45 = vpop.permute.xlu0 %2523  ;;  %v2796_v21 = vpack.c.bf16 %v2667_v26, %v2665_v42  ;;  %v4534_v30 = vmov 4   ;;  %v4111_v55 = vunpack.i.h.bf16 %v6751_v20  ;;  %v4110_v32 = vunpack.i.l.bf16 %v6751_v20 }
 0xbbb   : > { %v6776_v61 = vsel %vm509_vm6, %v7325_v9, %v6761_v45  ;;  %2868 = vmatpush.bf16.msrb.mxu3 %v7327_v11  ;;  %4162 = vset.pattern.permute.xlu1 %v4534_v30  ;;  %v2666_v34 = vsel %vm533_vm5, %v4051_v47, %v4135_v25  ;;  %v2668_v39 = vsel %vm533_vm5, %v4101_v51, %v4136_v33  ;;  %v7089_v54 = vunpack.i.l.bf16 %v6658_v62 }
 0xbbc   : > { %v2776_v15 = vpack.c.bf16 %v6776_v61, %v6770_v50  ;;  %2906 = vmatpush.bf16.msra.mxu2 %v2803_v18  ;;  %2813 = vperm.xlu1 %4162, %v2810_v53   ;;  %v2663_v18 = vsel %vm533_vm5, %v4060_v58, %v4061_v10  ;;  %v4126_v26 = vunpack.i.h.bf16 %v6616_v43  ;;  %v4131_v47 = vunpack.i.h.bf16 %v6684_v29  ;;  %v7339_v50 = vld [vmem:[#allocation34_spill] sm:$0xff] }
 0xbbd   : > { %2885 = vmatpush.bf16.msra.mxu1 %v2740_v5  ;;  %v7088_v5 = vunpack.i.h.bf16 %v6658_v62  ;;  %4163 = vset.pattern.permute.xlu0 %v4534_v30  ;;  %v2793_v20 = vpack.c.bf16 %v2663_v18, %v2661_v8  ;;  %v2797_v36 = vpack.c.bf16 %v2668_v39, %v2666_v34  ;;  %v2659_v51 = vsel %vm533_vm5, %v4115_v52, %v4116_v60  ;;  %v7329_v8 = vld [vmem:[#allocation37_spill] sm:$0xff]  ;;  %v7332_v34 = vld [vmem:[#allocation44_spill] sm:$0xff] }
 0xbbe   : > { %v4130_v11 = vunpack.i.l.bf16 %v6684_v29  ;;  %v4125_v42 = vunpack.i.l.bf16 %v6616_v43  ;;  %v2662_v52 = vsel %vm533_vm5, %v4056_v57, %v7089_v54  ;;  %v7333_v39 = vunpack.i.h.bf16 %v7332_v34  ;;  %v7334_v54 = vld [vmem:[#allocation24_spill] sm:$0xff]  ;;  %v7348_v34 = vld [vmem:[#allocation39_spill] sm:$0xff] }
 0xbbf   : > { %2869 = vmatpush.bf16.msrb.mxu3 %v2796_v21  ;;  %v2664_v29 = vsel %vm533_vm5, %v4061_v10, %v7088_v5  ;;  %v2809_v21 = vld [vmem:[#allocation12 + $0x8] sm:$0xf]  ;;  %v2660_v14 = vsel %vm533_vm5, %v4116_v60, %v6682_v44  ;;  %v2759_v27 = vpack.c.bf16 %v3941_v37, %v3935_v48  ;;  %v2807_v16 = vpack.c.bf16 %v6702_v41, %v6702_v41  ;;  %v7337_v48 = vld [vmem:[#allocation30_spill] sm:$0xff]  ;;  %vm7338_vm5 = vmmov %vm7321_vm12 }
 0xbc0   : > { %2907 = vmatpush.bf16.msra.mxu2 %v2800_v7  ;;  %2886 = vmatmul.bf16.vlgmr.msra.gmra.mxu1 %v6706_v6  ;;  %v2612_v7 = vsel %vm521_vm4, %v4110_v32, %v4111_v55  ;;  %v7330_v32 = vld [vmem:[#allocation29_spill] sm:$0xff]  ;;  %v2610_v10 = vsel %vm521_vm4, %v4130_v11, %v4131_v47  ;;  %v2820_v5 = vunpack.c.l.b16 %v2809_v21  ;;  %v7340_v41 = vunpack.i.l.bf16 %v7339_v50 }
 0xbc1   : > { %2930 = vmatpush.bf16.msrb.mxu1 %v2786_v35  ;;  %v4144_v9 = vpop.permute.xlu1 %4143  ;;  %v7331_v0 = vunpack.i.h.bf16 %v7330_v32  ;;  %v7341_v4 = vunpack.i.h.bf16 %v7339_v50 }
 0xbc2   : > { %v6810_v3 = vpop.permute.xlu0 %2437  ;;  %v4146_v58 = vunpack.i.h.bf16 %v4144_v9  ;;  %v4145_v35 = vunpack.i.l.bf16 %v4144_v9  ;;  %v2794_v9 = vpack.c.bf16 %v2664_v29, %v2662_v52  ;;  %v2804_v61 = vpack.c.bf16 %v7340_v41, %v4041_v28 }
 0xbc3   : > { %v6818_v53 = vsel %vm485_vm8, %v4081_v46, %v6810_v3  ;;  %2870 = vmatpush.bf16.msrb.mxu3 %v2793_v20  ;;  %v2790_v20 = vpack.c.bf16 %v2659_v51, %v2612_v7  ;;  %v7335_v7 = vld [vmem:[#allocation32_spill] sm:$0xff] }
 0xbc4   : > { %v2767_v30 = vpack.c.bf16 %v6818_v53, %v7329_v8  ;;  %v2783_v43 = vpack.c.bf16 %v4146_v58, %v4145_v35  ;;  %2908 = vmatpush.bf16.msra.mxu2 %v2797_v36  ;;  %v2556_v46 = vsel %vm509_vm6, %v7331_v0, %v4145_v35  ;;  %v2558_v18 = vsel %vm509_vm6, %v7333_v39, %v4146_v58 }
 0xbc5   : > { %v2782_v57 = vpack.c.bf16 %v2558_v18, %v2556_v46  ;;  %2975 = vrot.lane.b32.xlu1 %v7334_v54, %s4520_s13  ;;  %v2780_v36 = vpack.c.bf16 %v4141_v59, %v4140_v13  ;;  %v2608_v58 = vsel %vm521_vm4, %v4125_v42, %v4126_v26  ;;  %v7336_v11 = vunpack.i.l.bf16 %v7335_v7  ;;  %s4440_s13 = sshra.s32 %s3005_s5, 4  ;;  %s4441_s13 = int_to_ptr.hbm [resolvable:$true] %s4440_s13 }
 0xbc6   : > { %2931 = vmatpush.bf16.msrb.mxu1 %v2783_v43  ;;  %v2787_v35 = vpack.c.bf16 %v2610_v10, %v2608_v58  ;;  %v6848_v54 = vpack.c.b16 %v2820_v5, %v2820_v5  ;;  %vm2826_vm6 = vcmask 850944   ;;  %v2475_v43 = vpop.permute.xlu2 %2474  ;;  %v7347_v0 = vunpack.i.h.bf16 %v6404_v49  ;;  %v7351_v10 = vld [vmem:[#allocation40_spill] sm:$0xff]  ;;  %v7352_v49 = vld [vmem:[#allocation27_spill] sm:$0xff]  ;;  %s4442_s19 = scalar_lea.hbm %s4441_s13, 24  ;;  %p4447_p13 = scmp.lt.s32.totalorder %s4441_s13, %s6987_s8 }
 0xbc7   : > { %2871 = vmatpush.bf16.msrb.mxu3 %v2790_v20  ;;  %2892 = vmatpush.bf16.msrb.mxu0 %v2782_v57  ;;  %v2762_v52 = vpack.c.bf16 %v7336_v11, %v6621_v23  ;;  %v2777_v23 = vpack.c.bf16 %v6761_v45, %v4160_v40  ;;  %v2753_v45 = vpack.c.bf16 %v6678_v17, %v3911_v24  ;;  %v7349_v39 = vunpack.i.h.bf16 %v7348_v34  ;;  %v7350_v57 = vld [vmem:[#allocation38_spill] sm:$0xff]  ;;  %v4185_v11 = vld [vmem:[#allocation2 + $0x28] sm:$0xff]  ;;  %p4443_p1 = scmp.ne.s32.totalorder %s4441_s13, %s4442_s19  ;;  %p4448_p8 = scmp.lt.s32.totalorder %s4446_s14, %s4442_s19 }
 0xbc8   : > { %2909 = vmatpush.bf16.msra.mxu2 %v2794_v9  ;;  %v2801_v24 = vpack.c.bf16 %v6516_v56, %v7341_v4  ;;  %v2798_v56 = vpack.c.bf16 %v4136_v33, %v4135_v25  ;;  %v7353_v58 = vunpack.i.l.bf16 %v6658_v62  ;;  %v7355_v33 = vld [vmem:[#allocation36_spill] sm:$0xff] }
 0xbc9   : > { %v6842_v51 = vpop.permute.xlu1 %4148  ;;  %v2497_v18 = vsel %vm497_vm7, %v7349_v39, %v2475_v43  ;;  %v7356_v25 = vunpack.i.h.bf16 %v7355_v33  ;;  %p4444_p3 = pnand %p4443_p1, %p4676_p0  ;;  %p4449_p7 = por %p4448_p8, %p4447_p13 }
 0xbca   : > { %v4150_v29 = vunpack.i.l.bf16 %v6842_v51  ;;  %2932 = vmatpush.bf16.msrb.mxu1 %v2780_v36  ;;  %v4151_v38 = vunpack.i.h.bf16 %v6842_v51  ;;  %v2744_v36 = vpack.c.bf16 %v7352_v49, %v7351_v10 }
 0xbcb   : > { %2872 = vmatpush.bf16.msrb.mxu3 %v2787_v35  ;;  %2893 = vmatpush.bf16.msrb.mxu0 %v2779_v2  ;;  %v2837_v2 = vsel %vm7338_vm5, %v2807_v16, 0  ;;  %v7354_v35 = vunpack.i.h.bf16 %v6658_v62  ;;  %v2768_v7 = vpack.c.bf16 %v6810_v3, %v7356_v25  ;;  %v7358_v62 = vld [vmem:[#allocation28_spill] sm:$0xff]  ;;  %v7360_v3 = vld [vmem:[#allocation25_spill] sm:$0xff]  ;;  %p4445_p4 = pneg %p4444_p3 }
 0xbcc   : > { %v2613_v59 = vsel %vm521_vm4, %v4111_v55, %v4150_v29  ;;  %v2609_v22 = vsel %vm521_vm4, %v4126_v26, %v4151_v38  ;;  %v7342_v26 = vld [vmem:[#allocation35_spill] sm:$0xff] }
 0xbcd   : > { %v2791_v13 = vpack.c.bf16 %v2660_v14, %v2613_v59  ;;  %v2795_v1 = vpack.c.bf16 %v7354_v35, %v7353_v58  ;;  %v7359_v59 = vld [vmem:[#allocation26_spill] sm:$0xff]  ;;  %p4450_p9 = pnand %p4449_p7, %p4445_p4 }
 0xbce   : > { %2933 = vmatpush.bf16.msrb.mxu1 %v2777_v23  ;;  %3173 = vmatmul.msk.bf16.vlgmr.msrb.gmra.mxu3 %vm2826_vm6, %v6848_v54  ;;  %v2792_v23 = vpack.c.bf16 %v6682_v44, %v4150_v29 }
 0xbcf   : > { %2917 = vmatpush.bf16.msra.mxu3 %v2762_v52  ;;  %2894 = vmatpush.bf16.msrb.mxu0 %v2776_v15  ;;  %v4161_v15 = vunpack.i.h.bf16 %v6708_v19  ;;  %v7345_v19 = vld [vmem:[#allocation33_spill] sm:$0xff]  ;;  %v7357_v52 = vld [vmem:[#allocation43_spill] sm:$0xff] }
 0xbd0   : > { %2910 = vmatpush.bf16.msra.mxu2 %v2791_v13  ;;  %v7346_v42 = vunpack.i.h.bf16 %v7345_v19  ;;  %v2741_v14 = vpack.c.bf16 %v4185_v11, %v7357_v52  ;;  %v7361_v13 = vpack.c.bf16 %v7359_v59, %v7360_v3 }
 0xbd1   : > { %v2597_v40 = vpop.permute.xlu1 %2596 }
 0xbd2   : > { %v2611_v31 = vsel %vm521_vm4, %v4131_v47, %v2597_v40  ;;  %v7344_v47 = vunpack.i.h.bf16 %v7343_v63 }
 0xbd3   : > { %2918 = vmatpush.bf16.msra.mxu3 %v2759_v27  ;;  %v2788_v37 = vpack.c.bf16 %v2611_v31, %v2609_v22  ;;  %v2789_v27 = vpack.c.bf16 %v2597_v40, %v4151_v38  ;;  %v2972_v40 = vpop.permute.xlu2 %2971 }
 0xbd4   : > { %v2499_v28 = vsel %vm497_vm7, %v7344_v47, %v4161_v15 }
 0xbd5   : > { %2911 = vmatpush.bf16.msra.mxu2 %v2788_v37  ;;  %v2974_v37 = vpop.permute.xlu0 %2973 }
 0xbd7   : > { %2919 = vmatpush.bf16.msra.mxu3 %v7337_v48 }
 0xbd8   : > { %3174 = vmatmul.msk.bf16.vlgmr.msra.gmra.mxu2 %vm2826_vm6, %v6848_v54 }
 0xbd9   : > { %2944 = vmatpush.bf16.msrb.mxu2 %v2837_v2  ;;  %v4154_v60 = vpop.permute.xlu1 %4153  ;;  %v2977_v2 = vsel %vm497_vm7, %v2972_v40, %v2974_v37 }
 0xbda   : > { %v4156_v55 = vunpack.i.h.bf16 %v4154_v60  ;;  %v4155_v5 = vunpack.i.l.bf16 %v4154_v60 }
 0xbdb   : > { %2920 = vmatpush.bf16.msra.mxu3 %v2753_v45 }
 0xbdc   : > { %v2774_v17 = vpack.c.bf16 %v4155_v5, %v4161_v15  ;;  %v2501_v21 = vsel %vm497_vm7, %v7346_v42, %v4155_v5  ;;  %v2495_v46 = vsel %vm497_vm7, %v7347_v0, %v4156_v55  ;;  %v2771_v20 = vpack.c.bf16 %v2475_v43, %v4156_v55 }
 0xbdd   : > { %2945 = vmatpush.bf16.msrb.mxu2 %v2804_v61  ;;  %v2773_v32 = vpack.c.bf16 %v2501_v21, %v2499_v28  ;;  %v2770_v9 = vpack.c.bf16 %v2497_v18, %v2495_v46 }
 0xbde   : > { %2934 = vmatpush.bf16.msrb.mxu1 %v2774_v17 }
 0xbdf   : > { %2921 = vmatpush.bf16.msra.mxu3 %v7342_v26  ;;  %2895 = vmatpush.bf16.msrb.mxu0 %v2773_v32 }
 0xbe1   : > { %2946 = vmatpush.bf16.msrb.mxu2 %v2801_v24 }
 0xbe2   : > { %2935 = vmatpush.bf16.msrb.mxu1 %v2771_v20 }
 0xbe3   : > { %2922 = vmatpush.bf16.msra.mxu3 %v7350_v57  ;;  %2896 = vmatpush.bf16.msrb.mxu0 %v2770_v9 }
 0xbe5   : > { %2947 = vmatpush.bf16.msrb.mxu2 %v2798_v56 }
 0xbe6   : > { %2936 = vmatpush.bf16.msrb.mxu1 %v2768_v7 }
 0xbe7   : > { %2923 = vmatpush.bf16.msra.mxu3 %v2744_v36  ;;  %2897 = vmatpush.bf16.msrb.mxu0 %v2767_v30 }
 0xbe9   : > { %2948 = vmatpush.bf16.msrb.mxu2 %v2795_v1 }
 0xbea   : > { %2937 = vmatpush.bf16.msrb.mxu1 %v7358_v62 }
 0xbeb   : > { %2924 = vmatpush.bf16.msra.mxu3 %v2741_v14  ;;  %2898 = vmatpush.bf16.msrb.mxu0 %v7361_v13 }
 0xbed   : > { %2949 = vmatpush.bf16.msrb.mxu2 %v2792_v23  ;;  %2938 = vmatmul.bf16.vlgmr.msrb.gmra.mxu1 %v6680_v12 }
 0xbee   : > { %2925 = vmatmul.bf16.vlgmr.msra.gmra.mxu3 %v6706_v6  ;;  %2899 = vmatmul.bf16.vlgmr.msrb.gmra.mxu0 %v6680_v12 }
 0xbf1   : > { %2950 = vmatpush.bf16.msrb.mxu2 %v2789_v27 }
 0xbf4   : > { %3175 = vmatmul.msk.bf16.vlgmr.msrb.gmra.mxu2 %vm2826_vm6, %v6848_v54 }
 0xc26   : > { %v2861_v44 = vpop.f32.mrf.mxu2 }
 0xc28   : > { %v2848_v53 = vpop.f32.mrf.mxu0 }
 0xc2e   : > { %v2863_v8 = vpop.f32.mrf.mxu2  ;;  %v2814_v16 = vpop.permute.xlu1 %2813 }
 0xc2f   : > { %v2849_v22 = vadd.f32 %v2848_v53, %v2814_v16 }
 0xc30   : > { %v2850_v30 = vpop.f32.mrf.mxu0 }
 0xc31   : > { %v2862_v31 = vadd.f32 %v2861_v44, %v2849_v22 }
 0xc37   : > { %v2976_v26 = vpop.permute.xlu1 %2975 }
 0xc38   : > { %v2978_v42 = vsel %vm497_vm7, %v2974_v37, %v2976_v26 }
 0xc3d   : > { %v2887_v51 = vpop.f32.mrf.mxu1 }
 0xc3e   : > { %v2888_v15 = vadd.f32 %v2887_v51, %v2814_v16 }
 0xc45   : > { %v2889_v29 = vpop.f32.mrf.mxu1 }
 0xc51   : > { %v2874_v6 = vpop.f32.mrf.mxu3 }
 0xc52   : > { %v2875_v38 = vadd.f32 %v2874_v6, %v2862_v31 }
 0xc54   : > { %vm2956_vm4 = vcmp.gt.f32.partialorder %v2875_v38, 0.0  ;;  %v2959_v12 = vmul.f32 0.2, %v2875_v38 }
 0xc56   : > { %v2962_v48 = vsel %vm2956_vm4, %v2875_v38, %v2959_v12 }
 0xc57   : > { %v2965_v54 = vmul.f32 0.2, %v2962_v48 }
 0xc59   : > { %v2982_v45 = vadd.f32 %v2977_v2, %v2965_v54  ;;  %v2876_v50 = vpop.f32.mrf.mxu3 }
 0xc5b   : > { %2985 = vst [vmem:[%s6938_s10] sm:$0xff] %v2982_v45  ;;  %v2913_v41 = vpop.f32.mrf.mxu2 }
 0xc63   : > { %v2915_v61 = vpop.f32.mrf.mxu2 }
 0xc6a   : > { %v2939_v60 = vpop.f32.mrf.mxu1 }
 0xc6b   : > { %v2900_v55 = vpop.f32.mrf.mxu0 }
 0xc6c   : > { %v2901_v5 = vadd.f32 %v2900_v55, %v2888_v15 }
 0xc6e   : > { %v2914_v4 = vadd.f32 %v2913_v41, %v2901_v5 }
 0xc70   : > { %vm2957_vm8 = vcmp.gt.f32.partialorder %v2914_v4, 0.0  ;;  %v2960_v63 = vmul.f32 0.2, %v2914_v4 }
 0xc71   : > { %v2926_v24 = vpop.f32.mrf.mxu3 }
 0xc72   : > { %v2927_v17 = vadd.f32 %v2926_v24, %v2814_v16  ;;  %v2941_v28 = vpop.f32.mrf.mxu1  ;;  %v2963_v19 = vsel %vm2957_vm8, %v2914_v4, %v2960_v63 }
 0xc73   : > { %v2966_v21 = vmul.f32 0.2, %v2963_v19  ;;  %v2902_v43 = vpop.f32.mrf.mxu0 }
 0xc74   : > { %v2940_v47 = vadd.f32 %v2939_v60, %v2927_v17 }
 0xc75   : > { %v2983_v0 = vadd.f32 %v2978_v42, %v2966_v21 }
 0xc77   : > { %v2952_v32 = vpop.f32.mrf.mxu2  ;;  %2986 = vst [vmem:[%s6938_s10 + $0x8] sm:$0xff] %v2983_v0 }
 0xc78   : > { %v2953_v46 = vadd.f32 %v2952_v32, %v2940_v47 }
 0xc79   : > { %v2928_v56 = vpop.f32.mrf.mxu3 }
 0xc7a   : > { %vm2958_vm14 = vcmp.gt.f32.partialorder %v2953_v46, 0.0  ;;  %v2961_v34 = vmul.f32 0.2, %v2953_v46 }
 0xc7c   : > { %v2964_v39 = vsel %vm2958_vm14, %v2953_v46, %v2961_v34 }
 0xc7d   : > { %v2967_v18 = vmul.f32 0.2, %v2964_v39 }
 0xc7f   : > { %v2984_v20 = vadd.f32 %v2976_v26, %v2967_v18  ;;  %v2954_v57 = vpop.f32.mrf.mxu2 }
 0xc81   : > { %2987 = vst.msk [vmem:[%s6938_s10 + $0x10] sm:$0xff] %vm2066_vm11, %v2984_v20 }
 0xc82   : > { %4453 = shalt.err (!%p4450_p9)
}
 0xc83   : > { %3213 = dma.vmem_to_hbm [thread:$0]  (%p4676_p0), %s3003_s2, 384, %s3005_s5, %s2989_s12  }
 0xc84 PF: > { %s3016_s23 = sand.u32 1, %s4496_s27   ;;  %p7362_p10 = scmp.ge.s32.totalorder %s4508_s30, 2 }
 0xc85   : > { %s3017_s11 = scalar_lea.sflag [#allocation5], %s3016_s23 }
 0xc86   : > { %p3242_p11 = pnand %p7362_p10, %p4682_p6 }
 0xc88   : > { %p3243_p12 = pneg %p3242_p11 }
 0xc8a   : > { %4491 = dma.done.wait (%p3243_p12), %s3017_s11, 384  }
 0xc8b   : > { %4493 = vsyncadd (%p3243_p12), %s3017_s11, 4294966912  ;;  %p25_p2 = scmp.ge.s32.totalorder %s4656_s22, 4   ;;  %s7363_s27 = smov %s4500_s28 }
 0xc8c   : > { %s7364_s28 = smov %s4504_s29  ;;  %s7365_s29 = smov %s4668_s18 }
 0xc8d   : > { %s7366_s30 = smov %s4656_s22  ;;  %27 = sbr.rel (!%p25_p2) target bundleno = 15 (0xf), region = 125 }
 0xc92   :  { %3023 = vsyncpa [#allocation4], 1 }
 0xc93   :  { %3025 = vsyncpa [#allocation4 + $0x1], 1 }
 0xc94   :  { %3026 = vsyncpa [#allocation7], 1 }
 0xc95   :  { %3027 = vsyncpa [#allocation10], 1 }
 0xc96   :  { %3028 = vsyncpa [#allocation13], 1 }
 0xc97   :  { %3029 = vsyncpa [#allocation16], 1 }
 0xc98   :  { %3030 = vsyncpa [#allocation5], 1 }
 0xc99   :  { %3032 = vsyncpa [#allocation5 + $0x1], 1 }

</bundles_post_ra>
